<compile_context>
chip_gen: v5e
topology: v5e:2x2
jax: 0.10.0
libtpu: 0.0.40
codegen_flags: <defaults>
</compile_context>

<pallas_src>
import jax
import jax.numpy as jnp
from jax import lax
from jax.experimental import pallas as pl
from jax.experimental.pallas import tpu as pltpu

# ---------------- problem sizes (small, consistent with the module) ----------------
D = 64            # config.hidden_size (small stand-in)
WIN = 4           # utterances in the window (rows of utt_pos_mask)
SEQ = 16          # PLM sequence length
NUM_CLASS = 7
VOCAB = 50        # stand-in vocab for the stubbed encoder
VOCAB_PAD = 64    # vocab padded to a sublane-friendly size
ROWS = 8          # WIN padded to 8 sublanes (rows WIN..ROWS-1 are dummies, never read)
LANES = 2 * D     # 128: fused feature width == lane-dense output width

B = 64            # total windows per forward call (batched per perf review)
BT = 32           # windows per grid step  -> BT*ROWS = 256 matmul rows per step
GRID = B // BT    # 2 steps; "parallel" -> both v7x TensorCores
assert B % BT == 0 and WIN < ROWS

# packed parameter slab row offsets (all sublane-aligned, multiples of 8)
SLAB_EMB = 0
SLAB_W1 = SLAB_EMB + VOCAB_PAD       # 64
SLAB_W2 = SLAB_W1 + 2 * D            # 192
SLAB_B = SLAB_W2 + 2 * D             # 320
SLAB_ROWS = SLAB_B + 8               # 328


# ---------------- fused, batched forward kernel ----------------
def _fused_kernel(ids_ref, mask_ref, slab_ref, o_ref):
    # static, zero-cost sublane views into the single packed bf16 parameter slab
    emb = slab_ref[SLAB_EMB:SLAB_EMB + VOCAB_PAD, :]     # [64, 128]  hidden duplicated on lanes
    w1 = slab_ref[SLAB_W1:SLAB_W1 + 2 * D, :]            # [128, 128] fused first-layer weights
    w2 = slab_ref[SLAB_W2:SLAB_W2 + 2 * D, :]            # [128, 128] fused second-layer weights
    bias = slab_ref[SLAB_B:SLAB_B + 8, :].astype(jnp.float32)
    b1 = bias[0:1, :]                                    # [1, 128] fused first-layer bias
    b2 = bias[1:2, :]                                    # [1, 128] fused second-layer bias

    # TODO(synk): pretrained RoBERTa encoder is not reproducible from the module alone; stubbed
    # as a token-embedding lookup (one-hot matmul). With a real vocab/hidden size this must become
    # an HBM-resident table + scalar-prefetch row gather (pl.Element index_map) or manual DMA
    # gather, NOT a one-hot matmul.
    ids = ids_ref[...]                                                     # [BT*SEQ, 1] int32
    onehot = (lax.broadcasted_iota(jnp.int32, (BT * SEQ, VOCAB_PAD), 1)
              == ids).astype(jnp.bfloat16)                                 # [BT*SEQ, 64]
    x = jnp.dot(onehot, emb, preferred_element_type=jnp.float32)           # [BT*SEQ, 128]

    # masked mean pooling per utterance (exact division — kernel is latency-, not VALU-bound)
    m3 = mask_ref[...]                                                     # [BT, ROWS, SEQ]
    x3 = x.reshape(BT, SEQ, 2 * D)                                         # tile-preserving split
    num = jnp.einsum('brt,btd->brd', m3, x3,
                     preferred_element_type=jnp.float32)                   # [BT, ROWS, 128]
    den = jnp.sum(m3, axis=-1, keepdims=True)                              # [BT, ROWS, 1]
    utt3 = num / den                                                       # both lane halves == utt

    # cause features without a concat: lanes >= D become the per-window LAST utterance.
    last = jnp.broadcast_to(utt3[:, WIN - 1:WIN, :],
                            (BT, ROWS, 2 * D)).reshape(BT * ROWS, 2 * D)
    utt = utt3.reshape(BT * ROWS, 2 * D)
    lane = lax.broadcasted_iota(jnp.int32, (BT * ROWS, 2 * D), 1)
    utt_aug = jnp.where(lane >= D, last, utt)                              # [BT*ROWS, 128]

    # fused heads: two K=128 matmuls cover both branches (emo -> lanes 0..D-1, cause -> D..2D-1)
    h = jnp.tanh(jnp.dot(utt_aug.astype(jnp.bfloat16), w1,
                         preferred_element_type=jnp.float32) + b1)         # [BT*ROWS, 128]
    out = jnp.dot(h.astype(jnp.bfloat16), w2,
                  preferred_element_type=jnp.float32) + b2                 # [BT*ROWS, 128]

    # lane-dense output: lanes 0..NUM_CLASS-1 = emotion logits, lane NUM_CLASS = cause probability
    out_lane = lax.broadcasted_iota(jnp.int32, (BT * ROWS, LANES), 1)
    o_ref[...] = jnp.where(out_lane == NUM_CLASS, jax.nn.sigmoid(out), out)


_fused_call = pl.pallas_call(
    _fused_kernel,
    out_shape=jax.ShapeDtypeStruct((B * ROWS, LANES), jnp.float32),
    grid_spec=pltpu.PrefetchScalarGridSpec(
        num_scalar_prefetch=0,
        grid=(GRID,),
        in_specs=[
            pl.BlockSpec((BT * SEQ, 1), lambda i: (i, 0)),        # token ids (column-major ints)
            pl.BlockSpec((BT, ROWS, SEQ), lambda i: (i, 0, 0)),   # padded utterance-position masks
            pl.BlockSpec((SLAB_ROWS, LANES), lambda i: (0, 0)),   # packed bf16 params (resident)
        ],
        out_specs=pl.BlockSpec((BT * ROWS, LANES), lambda i: (i, 0)),
    ),
    compiler_params=pltpu.CompilerParams(
        dimension_semantics=("parallel",)),                       # v7x: split batch over 2 TCs
)


# ---------------- parameters (deterministic synthetic init, f32 masters) ----------------
def init_params(key):
    ks = jax.random.split(key, 10)
    s = 0.05
    return {
        # stand-in embedding table for the (stubbed) PLM encoder output
        'tok_emb': s * jax.random.normal(ks[0], (VOCAB, D), jnp.float32),
        # cu_utt_emo_prediction_layers: Linear(D,D) -> Tanh -> Dropout -> Linear(D,num_class)
        'emo_w1': s * jax.random.normal(ks[1], (D, D), jnp.float32),
        'emo_b1': s * jax.random.normal(ks[2], (1, D), jnp.float32),
        'emo_w2': s * jax.random.normal(ks[3], (D, NUM_CLASS), jnp.float32),
        'emo_b2': s * jax.random.normal(ks[4], (1, NUM_CLASS), jnp.float32),
        # cause_emo_prediction_layers: Linear(2D,D) -> Tanh -> Dropout -> Linear(D,1) -> Sigmoid
        'cse_w1': s * jax.random.normal(ks[5], (2 * D, D), jnp.float32),
        'cse_b1': s * jax.random.normal(ks[6], (1, D), jnp.float32),
        'cse_w2': s * jax.random.normal(ks[7], (D, 1), jnp.float32),
        'cse_b2': s * jax.random.normal(ks[8], (1, 1), jnp.float32),
    }


def pack_params(p):
    """One-time layout prep (outside the hot path): pack ALL static params into a single
    contiguous bf16 slab [SLAB_ROWS, 128]."""
    # embedding, duplicated across both lane halves (so pooled utt fills all 128 lanes)
    emb = jnp.zeros((VOCAB_PAD, 2 * D), jnp.float32)
    emb = emb.at[:VOCAB, :D].set(p['tok_emb']).at[:VOCAB, D:].set(p['tok_emb'])
    # fused first layer: cols 0..D-1 = emo branch, cols D..2D-1 = cause branch
    w1p = jnp.zeros((2 * D, 2 * D), jnp.float32)
    w1p = w1p.at[:D, :D].set(p['emo_w1'])          # emo head sees only utt (rows D.. stay 0)
    w1p = w1p.at[:D, D:].set(p['cse_w1'][:D])      # cause: utt part
    w1p = w1p.at[D:, D:].set(p['cse_w1'][D:])      # cause: last-utterance part
    # fused second layer: emo logits -> lanes 0..NUM_CLASS-1, cause logit -> lane NUM_CLASS
    w2p = jnp.zeros((2 * D, LANES), jnp.float32)
    w2p = w2p.at[:D, :NUM_CLASS].set(p['emo_w2'])
    w2p = w2p.at[D:, NUM_CLASS:NUM_CLASS + 1].set(p['cse_w2'])
    # biases (row 0 = first layer, row 1 = second layer), padded to 8 sublanes
    bias = jnp.zeros((8, LANES), jnp.float32)
    bias = bias.at[0, :D].set(p['emo_b1'][0]).at[0, D:].set(p['cse_b1'][0])
    bias = bias.at[1, :NUM_CLASS].set(p['emo_b2'][0]).at[1, NUM_CLASS].set(p['cse_b2'][0, 0])
    slab = jnp.concatenate([emb, w1p, w2p, bias], axis=0)    # [328, 128]
    assert slab.shape == (SLAB_ROWS, LANES)
    return slab.astype(jnp.bfloat16)


# ---------------- batched forward (single fused Pallas call for B windows) ----------------
@jax.jit
def casual_roberta_forward(param_slab, ids_flat, attn_mask, mask_pad):
    """B windows per call; per-window semantics identical to the torch module's forward."""
    # TODO(synk): attn_mask is only consumed by the (stubbed) RoBERTa encoder.
    del attn_mask
    slab = _fused_call(ids_flat, mask_pad, param_slab)        # [B*ROWS, 128]
    out = slab.reshape(B, ROWS, LANES)
    # rows WIN..ROWS-1 are sublane padding (dummy masks) — never read them.
    emo_logits = out[:, :WIN, :NUM_CLASS]                     # [B, WIN, NUM_CLASS]
    cause_prob = out[:, :WIN, NUM_CLASS]                      # [B, WIN] (== transpose+squeeze per window)
    return emo_logits, cause_prob


# ---------------- pure-JAX per-window reference for validation ----------------
def reference_forward(params, inputs, utt_pos_mask):
    x = params['tok_emb'][inputs]                                   # [SEQ, D]
    m = utt_pos_mask.astype(jnp.float32)                            # [WIN, SEQ]
    utt = (m @ x) / jnp.sum(m, -1, keepdims=True)                   # [WIN, D]
    cfeat = jnp.concatenate(
        [utt, jnp.broadcast_to(utt[-1][None, :], (utt.shape[0], D))], axis=-1)
    emo = jnp.tanh(utt @ params['emo_w1'] + params['emo_b1']) @ params['emo_w2'] + params['emo_b2']
    cse = jax.nn.sigmoid(
        jnp.tanh(cfeat @ params['cse_w1'] + params['cse_b1']) @ params['cse_w2'] + params['cse_b2'])
    return emo, cse[:, 0]


if __name__ == "__main__":
    key = jax.random.PRNGKey(0)
    kparam, kin = jax.random.split(key, 2)
    params = init_params(kparam)
    param_slab = pack_params(params)

    # batched example inputs: B windows, each with SEQ token ids and a [WIN, SEQ] utterance mask
    inputs = jax.random.randint(kin, (B, SEQ), 0, VOCAB, dtype=jnp.int32)   # token ids
    attn_mask = jnp.ones((B, SEQ), jnp.int32)                               # PLM attention mask
    per_utt = SEQ // WIN
    tok_idx = jnp.arange(SEQ)[None, :]
    utt_idx = jnp.arange(WIN)[:, None]
    upm = ((tok_idx >= utt_idx * per_utt) &
           (tok_idx < (utt_idx + 1) * per_utt)).astype(jnp.float32)         # [WIN, SEQ]
    utt_pos_mask = jnp.broadcast_to(upm, (B, WIN, SEQ))

    # one-time input layout prep (outside the hot path):
    #  * ids as a [B*SEQ, 1] column for the in-kernel one-hot
    #  * utterance masks padded WIN=4 -> ROWS=8 sublanes; padded rows get an all-ones dummy mask
    #    (finite denominator) and their outputs are DISCARDED — never read rows >= WIN.
    ids_flat = inputs.reshape(B * SEQ, 1)
    mask_pad = jnp.concatenate(
        [utt_pos_mask, jnp.ones((B, ROWS - WIN, SEQ), jnp.float32)], axis=1)

    emo_logits, cause_prob = casual_roberta_forward(param_slab, ids_flat, attn_mask, mask_pad)
    jax.block_until_ready((emo_logits, cause_prob))

    # validate the fused Pallas kernel against the pure-JAX f32 reference (per window)
    ref_emo, ref_cse = jax.vmap(reference_forward, in_axes=(None, 0, 0))(
        params, inputs, utt_pos_mask)
    assert emo_logits.shape == (B, WIN, NUM_CLASS)
    assert cause_prob.shape == (B, WIN)
    # tolerance accounts for bf16 weight/activation storage in the kernel (f32 MXU accumulation)
    assert jnp.allclose(emo_logits, ref_emo, atol=3e-3, rtol=0.0)
    assert jnp.allclose(cause_prob, ref_cse, atol=3e-3, rtol=0.0)

    print("KERNEL_OK")
</pallas_src>

<mosaic_0001>
module attributes {stable_mosaic.version = 11 : i64} {
  func.func @_fused_kernel(%arg0: i32, %arg1: memref<512x1xi32, #tpu.memory_space<vmem>>, %arg2: memref<32x8x16xf32, #tpu.memory_space<vmem>>, %arg3: memref<328x128xbf16, #tpu.memory_space<vmem>>, %arg4: memref<256x128xf32, #tpu.memory_space<vmem>>) attributes {dimension_semantics = [#tpu.dimension_semantics<parallel>], iteration_bounds = array<i64: 2>, scalar_prefetch = 0 : i64, scratch_operands = 0 : i64, tpu.core_type = #tpu.core_type<tc>, window_params = [{transform_indices = @transform_0, window_bounds = array<i64: 512, 1>}, {transform_indices = @transform_1, window_bounds = array<i64: 32, 8, 16>}, {pipeline_mode = #tpu.pipeline_mode<synchronous>, transform_indices = @transform_2, window_bounds = array<i64: 328, 128>}, {transform_indices = @transform_3, window_bounds = array<i64: 256, 128>}]} {
    %c0 = arith.constant 0 : index
    %c0_0 = arith.constant 0 : index
    %0 = vector.load %arg3[%c0, %c0_0] : memref<328x128xbf16, #tpu.memory_space<vmem>>, vector<64x128xbf16>
    %c64 = arith.constant 64 : index
    %c0_1 = arith.constant 0 : index
    %1 = vector.load %arg3[%c64, %c0_1] : memref<328x128xbf16, #tpu.memory_space<vmem>>, vector<128x128xbf16>
    %c192 = arith.constant 192 : index
    %c0_2 = arith.constant 0 : index
    %2 = vector.load %arg3[%c192, %c0_2] : memref<328x128xbf16, #tpu.memory_space<vmem>>, vector<128x128xbf16>
    %c320 = arith.constant 320 : index
    %c0_3 = arith.constant 0 : index
    %3 = vector.load %arg3[%c320, %c0_3] : memref<328x128xbf16, #tpu.memory_space<vmem>>, vector<8x128xbf16>
    %4 = arith.extf %3 : vector<8x128xbf16> to vector<8x128xf32>
    %5 = vector.extract_strided_slice %4 {offsets = [0, 0], sizes = [1, 128], strides = [1, 1]} : vector<8x128xf32> to vector<1x128xf32>
    %6 = vector.extract_strided_slice %4 {offsets = [1, 0], sizes = [1, 128], strides = [1, 1]} : vector<8x128xf32> to vector<1x128xf32>
    %c0_4 = arith.constant 0 : index
    %c0_5 = arith.constant 0 : index
    %7 = vector.load %arg1[%c0_4, %c0_5] : memref<512x1xi32, #tpu.memory_space<vmem>>, vector<512x1xi32>
    %8 = tpu.iota {dimensions = array<i32: 1>} : vector<512x64xi32>
    %9 = vector.broadcast %7 : vector<512x1xi32> to vector<512x64xi32>
    %10 = arith.cmpi eq, %8, %9 : vector<512x64xi32>
    %11 = arith.extui %10 : vector<512x64xi1> to vector<512x64xi32>
    %12 = arith.sitofp %11 : vector<512x64xi32> to vector<512x64xf32>
    %13 = arith.truncf %12 : vector<512x64xf32> to vector<512x64xbf16>
    %cst = arith.constant dense<0.000000e+00> : vector<512x128xf32>
    %14 = tpu.matmul %13, %0, %cst {dimension_numbers = #tpu.dot_dimension_numbers<[1], [0], [0], [1], [0, 0, 1, 1], [], []>} : vector<512x64xbf16>, vector<64x128xbf16>, vector<512x128xf32> -> vector<512x128xf32>
    %c0_6 = arith.constant 0 : index
    %c0_7 = arith.constant 0 : index
    %c0_8 = arith.constant 0 : index
    %15 = vector.load %arg2[%c0_6, %c0_7, %c0_8] : memref<32x8x16xf32, #tpu.memory_space<vmem>>, vector<32x8x16xf32>
    %16 = vector.shape_cast %14 : vector<512x128xf32> to vector<32x16x128xf32>
    "tpu.trace_start"() <{level = 10 : i32, message = "brt,btd->brd"}> : () -> ()
    %cst_9 = arith.constant dense<0.000000e+00> : vector<32x8x128xf32>
    %17 = tpu.matmul %15, %16, %cst_9 {dimension_numbers = #tpu.dot_dimension_numbers<[2], [1], [1], [2], [0, 0, 0, 1, 1, 2], [0], [0]>} : vector<32x8x16xf32>, vector<32x16x128xf32>, vector<32x8x128xf32> -> vector<32x8x128xf32>
    "tpu.trace_stop"() : () -> ()
    %cst_10 = arith.constant dense<0.000000e+00> : vector<32x8xf32>
    %18 = vector.multi_reduction <add>, %15, %cst_10 [2] : vector<32x8x16xf32> to vector<32x8xf32>
    %19 = vector.shape_cast %18 : vector<32x8xf32> to vector<32x8x1xf32>
    %20 = vector.broadcast %19 : vector<32x8x1xf32> to vector<32x8x128xf32>
    %21 = arith.divf %17, %20 : vector<32x8x128xf32>
    %22 = vector.extract_strided_slice %21 {offsets = [0, 3, 0], sizes = [32, 1, 128], strides = [1, 1, 1]} : vector<32x8x128xf32> to vector<32x1x128xf32>
    %23 = vector.shape_cast %22 : vector<32x1x128xf32> to vector<32x1x128xf32>
    %24 = vector.broadcast %23 : vector<32x1x128xf32> to vector<32x8x128xf32>
    %25 = vector.shape_cast %24 : vector<32x8x128xf32> to vector<256x128xf32>
    %26 = vector.shape_cast %21 : vector<32x8x128xf32> to vector<256x128xf32>
    %27 = tpu.iota {dimensions = array<i32: 1>} : vector<256x128xi32>
    %c64_i32 = arith.constant 64 : i32
    %28 = vector.broadcast %c64_i32 : i32 to vector<256x128xi32>
    %29 = arith.cmpi sge, %27, %28 : vector<256x128xi32>
    %30 = arith.select %29, %25, %26 : vector<256x128xi1>, vector<256x128xf32>
    %31 = arith.truncf %30 : vector<256x128xf32> to vector<256x128xbf16>
    %cst_11 = arith.constant dense<0.000000e+00> : vector<256x128xf32>
    %32 = tpu.matmul %31, %1, %cst_11 {dimension_numbers = #tpu.dot_dimension_numbers<[1], [0], [0], [1], [0, 0, 1, 1], [], []>} : vector<256x128xbf16>, vector<128x128xbf16>, vector<256x128xf32> -> vector<256x128xf32>
    %33 = vector.broadcast %5 : vector<1x128xf32> to vector<256x128xf32>
    %34 = arith.addf %32, %33 : vector<256x128xf32>
    %35 = math.tanh %34 : vector<256x128xf32>
    %36 = arith.truncf %35 : vector<256x128xf32> to vector<256x128xbf16>
    %cst_12 = arith.constant dense<0.000000e+00> : vector<256x128xf32>
    %37 = tpu.matmul %36, %2, %cst_12 {dimension_numbers = #tpu.dot_dimension_numbers<[1], [0], [0], [1], [0, 0, 1, 1], [], []>} : vector<256x128xbf16>, vector<128x128xbf16>, vector<256x128xf32> -> vector<256x128xf32>
    %38 = vector.broadcast %6 : vector<1x128xf32> to vector<256x128xf32>
    %39 = arith.addf %37, %38 : vector<256x128xf32>
    %40 = tpu.iota {dimensions = array<i32: 1>} : vector<256x128xi32>
    %c7_i32 = arith.constant 7 : i32
    %41 = vector.broadcast %c7_i32 : i32 to vector<256x128xi32>
    %42 = arith.cmpi eq, %40, %41 : vector<256x128xi32>
    %43 = arith.negf %39 : vector<256x128xf32>
    %44 = math.exp %43 : vector<256x128xf32>
    %cst_13 = arith.constant 1.000000e+00 : f32
    %45 = vector.broadcast %cst_13 : f32 to vector<256x128xf32>
    %46 = arith.addf %45, %44 : vector<256x128xf32>
    %47 = arith.divf %45, %46 : vector<256x128xf32>
    %48 = arith.select %42, %47, %39 : vector<256x128xi1>, vector<256x128xf32>
    %c0_14 = arith.constant 0 : index
    %c0_15 = arith.constant 0 : index
    %49 = vector.load %arg4[%c0_14, %c0_15] : memref<256x128xf32, #tpu.memory_space<vmem>>, vector<256x128xf32>
    tpu.vector_store %arg4[%c0_14, %c0_15], %48 {strides = array<i32>} : memref<256x128xf32, #tpu.memory_space<vmem>>, vector<256x128xf32>,
    return
  }
  func.func @transform_0(%arg0: i32) -> (i32, i32) {
    %c0_i32 = arith.constant 0 : i32
    %c0_i32_0 = arith.constant 0 : i32
    return %arg0, %c0_i32 : i32, i32
  }
  func.func @transform_1(%arg0: i32) -> (i32, i32, i32) {
    %c0_i32 = arith.constant 0 : i32
    %c0_i32_0 = arith.constant 0 : i32
    %c0_i32_1 = arith.constant 0 : i32
    return %arg0, %c0_i32, %c0_i32_0 : i32, i32, i32
  }
  func.func @transform_2(%arg0: i32) -> (i32, i32) {
    %c0_i32 = arith.constant 0 : i32
    %c0_i32_0 = arith.constant 0 : i32
    %c0_i32_1 = arith.constant 0 : i32
    return %c0_i32, %c0_i32_0 : i32, i32
  }
  func.func @transform_3(%arg0: i32) -> (i32, i32) {
    %c0_i32 = arith.constant 0 : i32
    %c0_i32_0 = arith.constant 0 : i32
    return %arg0, %c0_i32 : i32, i32
  }
}

</mosaic_0001>

<bundles_post_ra>
// kernel: casual_roberta_forward.1
= control target key start
LH: loop header
LB: loop body
LE: loop exit
PB: predicated region body
PF: predicated region fallthrough
CT: control target
= control target key end

     0   :  { %s4086_s12 = smov 0   ;;  %s5691_s0 = inlined_call_operand.vmem [shape: s32[1024,1], index: 0, kind: input, shape index: {}]   ;;  %s5692_s1 = inlined_call_operand.vmem [shape: f32[64,8,16], index: 1, kind: input, shape index: {}]   ;;  %s5693_s2 = inlined_call_operand.vmem [shape: bf16[328,128], index: 2, kind: input, shape index: {}]   ;;  %s5694_s3 = inlined_call_operand.vmem [shape: f32[512,128], index: 3, kind: output, shape index: {}]  }
   0x1 LB: > { %s3502_s13 = sadd.s32 4294967295, %s4062_s12   ;;  %p3506_p0 = scmp.ge.s32.totalorder %s4062_s12, 1  ;;  %s4062_s12 = sphi %s4086_s12, %s13_s12  }
   0x2   : > { %p149_p1 = scmp.lt.s32.totalorder %s4062_s12, 3 }
   0x4   : > { %p150_p2 = pnand %p3506_p0, %p149_p1 }
   0x5   : > { %s3507_s14 = sshll.u32 (!%p150_p2), %s3502_s13, 6  ;;  %s3509_s27 = sshll.u32 (!%p150_p2), %s3502_s13, 5 }
   0x6   : > { %153 = sbr.rel (%p150_p2) target bundleno = 1211 (0x4bb), region = 32  ;;  %p179_p3 = scmp.lt.s32.totalorder (!%p150_p2), %s3507_s14, 127 }
   0x7   : > { %p185_p4 = scmp.lt.s32.totalorder (!%p150_p2), %s3509_s27, 63 }
   0xb   : > { %v4064_v0 = vmov 0   ;;  %s5758_s14 = smov (!%p179_p3, %s3507_s14), 127  ;;  %v3758_v31 = vld [vmem:[%s5693_s2 + $0x18] sm:$0xff]  ;;  %v3757_v35 = vld [vmem:[%s5693_s2 + $0x10] sm:$0xff]  ;;  %v3756_v38 = vld [vmem:[%s5693_s2 + $0x8] sm:$0xff]  ;;  %v303_v53 = vlaneseq  ;;  %vm745_vm2 = vcmask 523264  }
   0xc   : > { %3799 = vset.pattern.permute.xlu2 %v4064_v0  ;;  %3798 = vset.pattern.permute.xlu1 %v4064_v0  ;;  %s3508_s15 = sshll.u32 %s5758_s14, 3  ;;  %v3755_v41 = vld [vmem:[%s5693_s2] sm:$0xff]  ;;  %s5760_s27 = smov (!%p185_p4, %s3509_s27), 63 }
   0xd   : > { %3797 = vset.pattern.permute.xlu0 %v4064_v0  ;;  %s4099_s18 = scalar_lea.vmem %s5691_s0, %s3508_s15  ;;  %846 = vmatpush.bf16.msra.mxu0 %v3758_v31  ;;  %v4168_v59 = vand.u32 127, %v303_v53  ;;  %v4065_v0 = vmov 0.0   ;;  %s3510_s28 = sshll.u32 %s5760_s27, 3 }
   0xe   : > { %v243_v1 = vld [vmem:[%s4099_s18 + $0x20] sm:$0xff]  ;;  %v241_v2 = vld [vmem:[%s4099_s18 + $0x10] sm:$0xff]  ;;  %v244_v4 = vld [vmem:[%s4099_s18 + $0x28] sm:$0xff]  ;;  %3775 = vmatpush.bf16.msra.mxu2 %v3758_v31  ;;  %s4496_s4 = scalar_lea.vmem %s5692_s1, %s3510_s28 }
   0xf   : > { %v239_v3 = vld [vmem:[%s4099_s18] sm:$0xff]  ;;  %318 = vperm.xlu2 %3799, %v243_v1   ;;  %312 = vperm.xlu1 %3798, %v241_v2   ;;  %v242_v5 = vld [vmem:[%s4099_s18 + $0x18] sm:$0xff]  ;;  %v240_v6 = vld [vmem:[%s4099_s18 + $0x8] sm:$0xff] }
  0x10   : > { %306 = vperm.xlu0 %3797, %v239_v3   ;;  %v247_v7 = vld [vmem:[%s4099_s18 + $0x40] sm:$0xff]  ;;  %v246_v8 = vld [vmem:[%s4099_s18 + $0x38] sm:$0xff]  ;;  %v245_v9 = vld [vmem:[%s4099_s18 + $0x30] sm:$0xff] }
  0x11   : > { %v250_v10 = vld [vmem:[%s4099_s18 + $0x58] sm:$0xff]  ;;  %v249_v11 = vld [vmem:[%s4099_s18 + $0x50] sm:$0xff]  ;;  %v248_v12 = vld [vmem:[%s4099_s18 + $0x48] sm:$0xff]  ;;  %847 = vmatpush.bf16.msra.mxu0 %v3757_v35 }
  0x12   : > { %v253_v13 = vld [vmem:[%s4099_s18 + $0x70] sm:$0xff]  ;;  %v252_v14 = vld [vmem:[%s4099_s18 + $0x68] sm:$0xff]  ;;  %v251_v15 = vld [vmem:[%s4099_s18 + $0x60] sm:$0xff]  ;;  %3776 = vmatpush.bf16.msra.mxu2 %v3757_v35 }
  0x13   : > { %v256_v16 = vld [vmem:[%s4099_s18 + $0x88] sm:$0xff]  ;;  %v255_v17 = vld [vmem:[%s4099_s18 + $0x80] sm:$0xff]  ;;  %v254_v18 = vld [vmem:[%s4099_s18 + $0x78] sm:$0xff] }
  0x14   : > { %v259_v19 = vld [vmem:[%s4099_s18 + $0xa0] sm:$0xff]  ;;  %v258_v20 = vld [vmem:[%s4099_s18 + $0x98] sm:$0xff]  ;;  %v257_v21 = vld [vmem:[%s4099_s18 + $0x90] sm:$0xff] }
  0x15   : > { %v262_v22 = vld [vmem:[%s4099_s18 + $0xb8] sm:$0xff]  ;;  %v261_v23 = vld [vmem:[%s4099_s18 + $0xb0] sm:$0xff]  ;;  %v260_v24 = vld [vmem:[%s4099_s18 + $0xa8] sm:$0xff]  ;;  %848 = vmatpush.bf16.msra.mxu0 %v3756_v38 }
  0x16   : > { %v263_v25 = vld [vmem:[%s4099_s18 + $0xc0] sm:$0xff]  ;;  %v282_v26 = vld [vmem:[%s4099_s18 + $0x158] sm:$0xff]  ;;  %v281_v27 = vld [vmem:[%s4099_s18 + $0x150] sm:$0xff]  ;;  %3777 = vmatpush.bf16.msra.mxu2 %v3756_v38 }
  0x17   : > { %321 = vperm.xlu2 %3799, %v244_v4   ;;  %315 = vperm.xlu1 %3798, %v242_v5   ;;  %v284_v28 = vld [vmem:[%s4099_s18 + $0x168] sm:$0xff]  ;;  %v283_v29 = vld [vmem:[%s4099_s18 + $0x160] sm:$0xff]  ;;  %v285_v32 = vld [vmem:[%s4099_s18 + $0x170] sm:$0xff] }
  0x18   : > { %309 = vperm.xlu0 %3797, %v240_v6   ;;  %v264_v30 = vld [vmem:[%s4099_s18 + $0xc8] sm:$0xff]  ;;  %v266_v33 = vld [vmem:[%s4099_s18 + $0xd8] sm:$0xff]  ;;  %v265_v34 = vld [vmem:[%s4099_s18 + $0xd0] sm:$0xff] }
  0x19   : > { %v268_v36 = vld [vmem:[%s4099_s18 + $0xe8] sm:$0xff]  ;;  %v267_v37 = vld [vmem:[%s4099_s18 + $0xe0] sm:$0xff]  ;;  %v286_v39 = vld [vmem:[%s4099_s18 + $0x178] sm:$0xff]  ;;  %849 = vmatpush.bf16.msra.mxu0 %v3755_v41 }
  0x1a   : > { %v269_v42 = vld [vmem:[%s4099_s18 + $0xf0] sm:$0xff]  ;;  %v288_v43 = vld [vmem:[%s4099_s18 + $0x188] sm:$0xff]  ;;  %v287_v44 = vld [vmem:[%s4099_s18 + $0x180] sm:$0xff]  ;;  %3778 = vmatpush.bf16.msra.mxu2 %v3755_v41 }
  0x1b   : > { %v290_v46 = vld [vmem:[%s4099_s18 + $0x198] sm:$0xff]  ;;  %v289_v47 = vld [vmem:[%s4099_s18 + $0x190] sm:$0xff]  ;;  %v291_v50 = vld [vmem:[%s4099_s18 + $0x1a0] sm:$0xff] }
  0x1c   : > { %v270_v48 = vld [vmem:[%s4099_s18 + $0xf8] sm:$0xff]  ;;  %v272_v51 = vld [vmem:[%s4099_s18 + $0x108] sm:$0xff]  ;;  %v271_v52 = vld [vmem:[%s4099_s18 + $0x100] sm:$0xff] }
  0x1d   : > { %v274_v57 = vld [vmem:[%s4099_s18 + $0x118] sm:$0xff]  ;;  %v273_v58 = vld [vmem:[%s4099_s18 + $0x110] sm:$0xff]  ;;  %v292_v60 = vld [vmem:[%s4099_s18 + $0x1a8] sm:$0xff] }
  0x1e   : > { %v275_v3 = vld [vmem:[%s4099_s18 + $0x120] sm:$0xff]  ;;  %v294_v5 = vld [vmem:[%s4099_s18 + $0x1b8] sm:$0xff]  ;;  %v293_v6 = vld [vmem:[%s4099_s18 + $0x1b0] sm:$0xff] }
  0x1f   : > { %330 = vperm.xlu2 %3799, %v247_v7   ;;  %327 = vperm.xlu1 %3798, %v246_v8   ;;  %v301_v41 = vld [vmem:[%s4099_s18 + $0x1f0] sm:$0xff]  ;;  %v302_v53 = vld [vmem:[%s4099_s18 + $0x1f8] sm:$0xff] }
  0x20   : > { %324 = vperm.xlu0 %3797, %v245_v9  }
  0x27   : > { %339 = vperm.xlu2 %3799, %v250_v10   ;;  %336 = vperm.xlu1 %3798, %v249_v11   ;;  %v296_v10 = vld [vmem:[%s4099_s18 + $0x1c8] sm:$0xff]  ;;  %v295_v11 = vld [vmem:[%s4099_s18 + $0x1c0] sm:$0xff] }
  0x28   : > { %333 = vperm.xlu0 %3797, %v248_v12   ;;  %v276_v12 = vld [vmem:[%s4099_s18 + $0x128] sm:$0xff] }
  0x2f   : > { %348 = vperm.xlu2 %3799, %v253_v13   ;;  %345 = vperm.xlu1 %3798, %v252_v14  }
  0x30   : > { %342 = vperm.xlu0 %3797, %v251_v15  }
  0x37   : > { %357 = vperm.xlu2 %3799, %v256_v16   ;;  %354 = vperm.xlu1 %3798, %v255_v17  }
  0x38   : > { %351 = vperm.xlu0 %3797, %v254_v18   ;;  %v297_v18 = vld [vmem:[%s4099_s18 + $0x1d0] sm:$0xff] }
  0x3f   : > { %366 = vperm.xlu2 %3799, %v259_v19   ;;  %363 = vperm.xlu1 %3798, %v258_v20   ;;  %v278_v20 = vld [vmem:[%s4099_s18 + $0x138] sm:$0xff] }
  0x40   : > { %360 = vperm.xlu0 %3797, %v257_v21   ;;  %v277_v21 = vld [vmem:[%s4099_s18 + $0x130] sm:$0xff] }
  0x47   : > { %375 = vperm.xlu2 %3799, %v262_v22   ;;  %372 = vperm.xlu1 %3798, %v261_v23  }
  0x48   : > { %369 = vperm.xlu0 %3797, %v260_v24  }
  0x4f   : > { %378 = vperm.xlu2 %3799, %v263_v25   ;;  %435 = vperm.xlu1 %3798, %v282_v26  }
  0x50   : > { %432 = vperm.xlu0 %3797, %v281_v27   ;;  %v280_v27 = vld [vmem:[%s4099_s18 + $0x148] sm:$0xff] }
  0x57   : > { %441 = vperm.xlu2 %3799, %v284_v28   ;;  %438 = vperm.xlu1 %3798, %v283_v29   ;;  %v279_v29 = vld [vmem:[%s4099_s18 + $0x140] sm:$0xff] }
  0x58   : > { %381 = vperm.xlu0 %3797, %v264_v30   ;;  %v298_v30 = vld [vmem:[%s4099_s18 + $0x1d8] sm:$0xff] }
  0x5f   : > { %444 = vperm.xlu2 %3799, %v285_v32   ;;  %387 = vperm.xlu1 %3798, %v266_v33  }
  0x60   : > { %384 = vperm.xlu0 %3797, %v265_v34  }
  0x67   : > { %393 = vperm.xlu2 %3799, %v268_v36   ;;  %390 = vperm.xlu1 %3798, %v267_v37  }
  0x68   : > { %447 = vperm.xlu0 %3797, %v286_v39  }
  0x69   : > { %v4146_v40 = vpop.permute.xlu2 %318 }
  0x6a   : > { %vm501_vm7 = vcmp.eq.s32.totalorder %v4168_v59, %v4146_v40 }
  0x6b   : > { %v3517_v33 = vsel %vm501_vm7, 1.0, %v4065_v0 }
  0x6f   : > { %396 = vperm.xlu2 %3799, %v269_v42   ;;  %453 = vperm.xlu1 %3798, %v288_v43  }
  0x70   : > { %450 = vperm.xlu0 %3797, %v287_v44   ;;  %v300_v44 = vld [vmem:[%s4099_s18 + $0x1e8] sm:$0xff] }
  0x71   : > { %v4154_v45 = vpop.permute.xlu2 %321 }
  0x72   : > { %vm502_vm8 = vcmp.eq.s32.totalorder %v4168_v59, %v4154_v45  ;;  %v299_v45 = vld [vmem:[%s4099_s18 + $0x1e0] sm:$0xff]  ;;  %s5445_s18 = scalar_lea.vmem %s5694_s3, %s3510_s28 }
  0x73   : > { %v3518_v34 = vsel %vm502_vm8, 1.0, %v4065_v0 }
  0x74   : > { %v691_v42 = vpack.c.bf16 %v3518_v34, %v3517_v33 }
  0x77   : > { %459 = vperm.xlu2 %3799, %v290_v46   ;;  %456 = vperm.xlu1 %3798, %v289_v47  }
  0x78   : > { %399 = vperm.xlu0 %3797, %v270_v48  }
  0x79   : > { %v4159_v49 = vpop.permute.xlu2 %330 }
  0x7a   : > { %vm505_vm8 = vcmp.eq.s32.totalorder %v4168_v59, %v4159_v49 }
  0x7f   : > { %462 = vperm.xlu2 %3799, %v291_v50   ;;  %405 = vperm.xlu1 %3798, %v272_v51  }
  0x80   : > { %402 = vperm.xlu0 %3797, %v271_v52  }
  0x81   : > { %v4164_v54 = vpop.permute.xlu2 %339  ;;  %v313_v55 = vpop.permute.xlu1 %312 }
  0x82   : > { %v307_v56 = vpop.permute.xlu0 %306  ;;  %vm499_vm3 = vcmp.eq.s32.totalorder %v4168_v59, %v313_v55 }
  0x83   : > { %vm497_vm0 = vcmp.eq.s32.totalorder %v4168_v59, %v307_v56  ;;  %v3515_v15 = vsel %vm499_vm3, 1.0, %v4065_v0 }
  0x84   : > { %v3513_v1 = vsel %vm497_vm0, 1.0, %v4065_v0 }
  0x87   : > { %411 = vperm.xlu2 %3799, %v274_v57   ;;  %408 = vperm.xlu1 %3798, %v273_v58  }
  0x88   : > { %465 = vperm.xlu0 %3797, %v292_v60  }
  0x89   : > { %v4172_v61 = vpop.permute.xlu2 %348  ;;  %v316_v62 = vpop.permute.xlu1 %315 }
  0x8a   : > { %v310_v63 = vpop.permute.xlu0 %309  ;;  %vm500_vm4 = vcmp.eq.s32.totalorder %v4168_v59, %v316_v62  ;;  %vm511_vm10 = vcmp.eq.s32.totalorder %v4168_v59, %v4172_v61 }
  0x8b   : > { %vm498_vm1 = vcmp.eq.s32.totalorder %v4168_v59, %v310_v63  ;;  %v3516_v16 = vsel %vm500_vm4, 1.0, %v4065_v0  ;;  %v4235_v38 = vsel %vm511_vm10, 1.0, %v4065_v0 }
  0x8c   : > { %v3514_v2 = vsel %vm498_vm1, 1.0, %v4065_v0  ;;  %v690_v19 = vpack.c.bf16 %v3516_v16, %v3515_v15 }
  0x8d   : > { %v689_v4 = vpack.c.bf16 %v3514_v2, %v3513_v1 }
  0x8f   : > { %3593 = vmatmul.msk.bf16.vlgmr.msra.gmra.mxu0 %vm745_vm2, %v689_v4  ;;  %414 = vperm.xlu2 %3799, %v275_v3  }
  0x90   : > { %471 = vperm.xlu1 %3798, %v294_v5   ;;  %468 = vperm.xlu0 %3797, %v293_v6  }
  0x91   : > { %v358_v7 = vpop.permute.xlu2 %357  ;;  %v4181_v8 = vpop.permute.xlu1 %327 }
  0x92   : > { %v4183_v9 = vpop.permute.xlu0 %324  ;;  %vm514_vm9 = vcmp.eq.s32.totalorder %v4168_v59, %v358_v7  ;;  %vm504_vm15 = vcmp.eq.s32.totalorder %v4168_v59, %v4181_v8 }
  0x93   : > { %v4228_v36 = vsel %vm514_vm9, 1.0, %v4065_v0  ;;  %vm503_vm0 = vcmp.eq.s32.totalorder %v4168_v59, %v4183_v9  ;;  %v3520_v56 = vsel %vm504_vm15, 1.0, %v4065_v0 }
  0x94   : > { %v3519_v57 = vsel %vm503_vm0, 1.0, %v4065_v0  ;;  %vm508_vm0 = vcmp.eq.s32.totalorder %v4168_v59, %v4164_v54 }
  0x95   : > { %v692_v3 = vpack.c.bf16 %v3520_v56, %v3519_v57  ;;  %v3524_v33 = vsel %vm508_vm0, 1.0, %v4065_v0 }
  0x97   : > { %477 = vperm.xlu2 %3799, %v296_v10  }
  0x98   : > { %474 = vperm.xlu1 %3798, %v295_v11   ;;  %417 = vperm.xlu0 %3797, %v276_v12   ;;  %v3521_v12 = vsel %vm505_vm8, 1.0, %v4065_v0 }
  0x99   : > { %v4190_v13 = vpop.permute.xlu2 %366  ;;  %v4192_v14 = vpop.permute.xlu1 %336 }
  0x9a   : > { %v4196_v17 = vpop.permute.xlu0 %333  ;;  %vm517_vm3 = vcmp.eq.s32.totalorder %v4168_v59, %v4190_v13 }
  0x9b   : > { %v4279_v63 = vsel %vm517_vm3, 1.0, %v4065_v0  ;;  %vm506_vm9 = vcmp.eq.s32.totalorder %v4168_v59, %v4196_v17 }
  0x9c   : > { %v3522_v13 = vsel %vm506_vm9, 1.0, %v4065_v0 }
  0x9d   : > { %v693_v17 = vpack.c.bf16 %v3522_v13, %v3521_v12 }
  0x9f   : > { %3594 = vmatmul.msk.bf16.gmra.mxu0 %vm745_vm2, %v690_v19  ;;  %480 = vperm.xlu2 %3799, %v297_v18  }
  0xa0   : > { %423 = vperm.xlu1 %3798, %v278_v20   ;;  %420 = vperm.xlu0 %3797, %v277_v21  }
  0xa1   : > { %v376_v22 = vpop.permute.xlu2 %375  ;;  %v346_v23 = vpop.permute.xlu1 %345 }
  0xa2   : > { %vm510_vm5 = vcmp.eq.s32.totalorder %v4168_v59, %v346_v23  ;;  %v343_v24 = vpop.permute.xlu0 %342  ;;  %vm520_vm1 = vcmp.eq.s32.totalorder %v4168_v59, %v376_v22 }
  0xa3   : > { %v4204_v25 = vsel %vm510_vm5, 1.0, %v4065_v0  ;;  %vm509_vm6 = vcmp.eq.s32.totalorder %v4168_v59, %v343_v24  ;;  %v4270_v60 = vsel %vm520_vm1, 1.0, %v4065_v0  ;;  %vm507_vm1 = vcmp.eq.s32.totalorder %v4168_v59, %v4192_v14 }
  0xa4   : > { %v4208_v26 = vsel %vm509_vm6, 1.0, %v4065_v0  ;;  %v3523_v34 = vsel %vm507_vm1, 1.0, %v4065_v0 }
  0xa5   : > { %v695_v28 = vpack.c.bf16 %v4204_v25, %v4208_v26 }
  0xa7   : > { %429 = vperm.xlu2 %3799, %v280_v27  }
  0xa8   : > { %426 = vperm.xlu1 %3798, %v279_v29   ;;  %483 = vperm.xlu0 %3797, %v298_v30  }
  0xa9   : > { %v4222_v31 = vpop.permute.xlu2 %378  ;;  %v355_v32 = vpop.permute.xlu1 %354 }
  0xaa   : > { %vm513_vm11 = vcmp.eq.s32.totalorder %v4168_v59, %v355_v32  ;;  %v352_v35 = vpop.permute.xlu0 %351  ;;  %vm521_vm10 = vcmp.eq.s32.totalorder %v4168_v59, %v4222_v31 }
  0xab   : > { %v4231_v37 = vsel %vm513_vm11, 1.0, %v4065_v0  ;;  %vm512_vm12 = vcmp.eq.s32.totalorder %v4168_v59, %v352_v35  ;;  %v4304_v16 = vsel %vm521_vm10, 1.0, %v4065_v0 }
  0xac   : > { %v697_v39 = vpack.c.bf16 %v4228_v36, %v4231_v37  ;;  %v4240_v40 = vsel %vm512_vm12, 1.0, %v4065_v0 }
  0xad   : > { %v696_v43 = vpack.c.bf16 %v4240_v40, %v4235_v38 }
  0xaf   : > { %3595 = vmatmul.msk.bf16.gmra.mxu0 %vm745_vm2, %v691_v42  ;;  %492 = vperm.xlu2 %3799, %v301_v41   ;;  %v694_v42 = vpack.c.bf16 %v3524_v33, %v3523_v34 }
  0xb0   : > { %489 = vperm.xlu1 %3798, %v300_v44   ;;  %486 = vperm.xlu0 %3797, %v299_v45  }
  0xb1   : > { %v442_v46 = vpop.permute.xlu2 %441  ;;  %v364_v47 = vpop.permute.xlu1 %363 }
  0xb2   : > { %vm516_vm13 = vcmp.eq.s32.totalorder %v4168_v59, %v364_v47  ;;  %v361_v48 = vpop.permute.xlu0 %360 }
  0xb3   : > { %v4250_v50 = vsel %vm516_vm13, 1.0, %v4065_v0  ;;  %vm515_vm14 = vcmp.eq.s32.totalorder %v4168_v59, %v361_v48  ;;  %vm542_vm13 = vcmp.eq.s32.totalorder %v4168_v59, %v442_v46 }
  0xb4   : > { %v4254_v51 = vsel %vm515_vm14, 1.0, %v4065_v0  ;;  %v3558_v24 = vsel %vm542_vm13, 1.0, %v4065_v0 }
  0xb5   : > { %v698_v52 = vpack.c.bf16 %v4250_v50, %v4254_v51 }
  0xb8   : > { %495 = vperm.xlu0 %3797, %v302_v53  }
  0xb9   : > { %v373_v55 = vpop.permute.xlu1 %372  ;;  %v4272_v61 = vpop.permute.xlu2 %444 }
  0xba   : > { %vm519_vm4 = vcmp.eq.s32.totalorder %v4168_v59, %v373_v55  ;;  %v370_v58 = vpop.permute.xlu0 %369 }
  0xbb   : > { %v4275_v62 = vsel %vm519_vm4, 1.0, %v4065_v0  ;;  %vm518_vm5 = vcmp.eq.s32.totalorder %v4168_v59, %v370_v58 }
  0xbc   : > { %v700_v1 = vpack.c.bf16 %v4270_v60, %v4275_v62  ;;  %v4284_v2 = vsel %vm518_vm5, 1.0, %v4065_v0 }
  0xbd   : > { %v699_v4 = vpack.c.bf16 %v4284_v2, %v4279_v63 }
  0xbf   : > { %3596 = vmatmul.msk.bf16.gmra.mxu0 %vm745_vm2, %v692_v3 }
  0xc1   : > { %v436_v5 = vpop.permute.xlu1 %435  ;;  %v394_v9 = vpop.permute.xlu2 %393 }
  0xc2   : > { %vm540_vm6 = vcmp.eq.s32.totalorder %v4168_v59, %v436_v5  ;;  %v433_v6 = vpop.permute.xlu0 %432  ;;  %vm526_vm3 = vcmp.eq.s32.totalorder %v4168_v59, %v394_v9 }
  0xc3   : > { %v3556_v7 = vsel %vm540_vm6, 1.0, %v4065_v0  ;;  %vm539_vm7 = vcmp.eq.s32.totalorder %v4168_v59, %v433_v6  ;;  %v4336_v41 = vsel %vm526_vm3, 1.0, %v4065_v0  ;;  %vm543_vm6 = vcmp.eq.s32.totalorder %v4168_v59, %v4272_v61 }
  0xc4   : > { %v3555_v8 = vsel %vm539_vm7, 1.0, %v4065_v0  ;;  %v3559_v48 = vsel %vm543_vm6, 1.0, %v4065_v0 }
  0xc5   : > { %v710_v10 = vpack.c.bf16 %v3556_v7, %v3555_v8 }
  0xc7   : > { %3614 = vmatmul.msk.bf16.vlgmr.msra.gmra.mxu2 %vm745_vm2, %v710_v10 }
  0xc9   : > { %v439_v11 = vpop.permute.xlu1 %438  ;;  %v397_v19 = vpop.permute.xlu2 %396 }
  0xca   : > { %v382_v15 = vpop.permute.xlu0 %381  ;;  %vm541_vm12 = vcmp.eq.s32.totalorder %v4168_v59, %v439_v11  ;;  %vm527_vm7 = vcmp.eq.s32.totalorder %v4168_v59, %v397_v19 }
  0xcb   : > { %vm522_vm11 = vcmp.eq.s32.totalorder %v4168_v59, %v382_v15  ;;  %v3557_v21 = vsel %vm541_vm12, 1.0, %v4065_v0  ;;  %v4353_v57 = vsel %vm527_vm7, 1.0, %v4065_v0 }
  0xcc   : > { %v4307_v49 = vsel %vm522_vm11, 1.0, %v4065_v0  ;;  %v711_v29 = vpack.c.bf16 %v3558_v24, %v3557_v21 }
  0xcd   : > { %v701_v18 = vpack.c.bf16 %v4307_v49, %v4304_v16 }
  0xcf   : > { %3597 = vmatmul.msk.bf16.gmra.mxu0 %vm745_vm2, %v693_v17 }
  0xd1   : > { %v388_v20 = vpop.permute.xlu1 %387  ;;  %v460_v31 = vpop.permute.xlu2 %459 }
  0xd2   : > { %vm524_vm14 = vcmp.eq.s32.totalorder %v4168_v59, %v388_v20  ;;  %v385_v22 = vpop.permute.xlu0 %384  ;;  %vm548_vm0 = vcmp.eq.s32.totalorder %v4168_v59, %v460_v31 }
  0xd3   : > { %v4317_v23 = vsel %vm524_vm14, 1.0, %v4065_v0  ;;  %vm523_vm15 = vcmp.eq.s32.totalorder %v4168_v59, %v385_v22  ;;  %v3564_v24 = vsel %vm548_vm0, 1.0, %v4065_v0 }
  0xd4   : > { %v4322_v27 = vsel %vm523_vm15, 1.0, %v4065_v0 }
  0xd5   : > { %v702_v30 = vpack.c.bf16 %v4317_v23, %v4322_v27  ;;  %v1011_v27 = vld [vmem:[%s4496_s4] sm:$0xff] }
  0xd7   : > { %3615 = vmatmul.msk.bf16.gmra.mxu2 %vm745_vm2, %v711_v29 }
  0xd9   : > { %v391_v32 = vpop.permute.xlu1 %390  ;;  %v463_v47 = vpop.permute.xlu2 %462 }
  0xda   : > { %vm525_vm4 = vcmp.eq.s32.totalorder %v4168_v59, %v391_v32  ;;  %v448_v35 = vpop.permute.xlu0 %447 }
  0xdb   : > { %v4339_v54 = vsel %vm525_vm4, 1.0, %v4065_v0  ;;  %vm544_vm5 = vcmp.eq.s32.totalorder %v4168_v59, %v448_v35 }
  0xdc   : > { %v703_v14 = vpack.c.bf16 %v4336_v41, %v4339_v54  ;;  %v3560_v45 = vsel %vm544_vm5, 1.0, %v4065_v0  ;;  %vm549_vm5 = vcmp.eq.s32.totalorder %v4168_v59, %v463_v47  ;;  %v1012_v41 = vld [vmem:[%s4496_s4 + $0x8] sm:$0xff] }
  0xdd   : > { %v712_v53 = vpack.c.bf16 %v3560_v45, %v3559_v48  ;;  %v3565_v45 = vsel %vm549_vm5, 1.0, %v4065_v0  ;;  %vm1043_vm5 = vcmask 130048  }
  0xdf   : > { %3598 = vmatmul.msk.bf16.gmra.mxu0 %vm745_vm2, %v694_v42 }
  0xe1   : > { %v454_v44 = vpop.permute.xlu1 %453  ;;  %v412_v61 = vpop.permute.xlu2 %411 }
  0xe2   : > { %v451_v46 = vpop.permute.xlu0 %450  ;;  %vm546_vm9 = vcmp.eq.s32.totalorder %v4168_v59, %v454_v44  ;;  %vm532_vm13 = vcmp.eq.s32.totalorder %v4168_v59, %v412_v61 }
  0xe3   : > { %vm545_vm10 = vcmp.eq.s32.totalorder %v4168_v59, %v451_v46  ;;  %v3562_v6 = vsel %vm546_vm9, 1.0, %v4065_v0  ;;  %v4382_v13 = vsel %vm532_vm13, 1.0, %v4065_v0 }
  0xe4   : > { %v3561_v7 = vsel %vm545_vm10, 1.0, %v4065_v0 }
  0xe5   : > { %v713_v11 = vpack.c.bf16 %v3562_v6, %v3561_v7 }
  0xe7   : > { %3616 = vmatmul.msk.bf16.gmra.mxu2 %vm745_vm2, %v712_v53 }
  0xe9   : > { %v457_v55 = vpop.permute.xlu1 %456  ;;  %v415_v26 = vpop.permute.xlu2 %414 }
  0xea   : > { %v400_v56 = vpop.permute.xlu0 %399  ;;  %vm547_vm15 = vcmp.eq.s32.totalorder %v4168_v59, %v457_v55  ;;  %vm533_vm1 = vcmp.eq.s32.totalorder %v4168_v59, %v415_v26 }
  0xeb   : > { %vm528_vm8 = vcmp.eq.s32.totalorder %v4168_v59, %v400_v56  ;;  %v3563_v20 = vsel %vm547_vm15, 1.0, %v4065_v0  ;;  %v4401_v38 = vsel %vm533_vm1, 1.0, %v4065_v0 }
  0xec   : > { %v4356_v58 = vsel %vm528_vm8, 1.0, %v4065_v0  ;;  %v714_v29 = vpack.c.bf16 %v3564_v24, %v3563_v20 }
  0xed   : > { %v704_v3 = vpack.c.bf16 %v4356_v58, %v4353_v57  ;;  %v1015_v57 = vld [vmem:[%s4496_s4 + $0x20] sm:$0xff] }
  0xef   : > { %3599 = vmatmul.msk.bf16.gmra.mxu0 %vm745_vm2, %v695_v28 }
  0xf1   : > { %v406_v5 = vpop.permute.xlu1 %405  ;;  %v478_v19 = vpop.permute.xlu2 %477 }
  0xf2   : > { %vm530_vm11 = vcmp.eq.s32.totalorder %v4168_v59, %v406_v5  ;;  %v403_v8 = vpop.permute.xlu0 %402  ;;  %vm554_vm13 = vcmp.eq.s32.totalorder %v4168_v59, %v478_v19 }
  0xf3   : > { %v4370_v9 = vsel %vm530_vm11, 1.0, %v4065_v0  ;;  %vm529_vm12 = vcmp.eq.s32.totalorder %v4168_v59, %v403_v8  ;;  %v3570_v51 = vsel %vm554_vm13, 1.0, %v4065_v0  ;;  %vm2388_vm13 = vcmp.ge.s32.totalorder %v4168_v59, 64 }
  0xf4   : > { %v4374_v10 = vsel %vm529_vm12, 1.0, %v4065_v0 }
  0xf5   : > { %v705_v25 = vpack.c.bf16 %v4370_v9, %v4374_v10 }
  0xf7   : > { %3617 = vmatmul.msk.bf16.gmra.mxu2 %vm745_vm2, %v713_v11 }
  0xf9   : > { %v409_v28 = vpop.permute.xlu1 %408  ;;  %v481_v40 = vpop.permute.xlu2 %480 }
  0xfa   : > { %vm531_vm14 = vcmp.eq.s32.totalorder %v4168_v59, %v409_v28  ;;  %v466_v12 = vpop.permute.xlu0 %465  ;;  %vm555_vm15 = vcmp.eq.s32.totalorder %v4168_v59, %v481_v40 }
  0xfb   : > { %v4385_v15 = vsel %vm531_vm14, 1.0, %v4065_v0  ;;  %vm550_vm4 = vcmp.eq.s32.totalorder %v4168_v59, %v466_v12  ;;  %v3571_v2 = vsel %vm555_vm15, 1.0, %v4065_v0 }
  0xfc   : > { %v706_v17 = vpack.c.bf16 %v4382_v13, %v4385_v15  ;;  %v3566_v35 = vsel %vm550_vm4, 1.0, %v4065_v0 }
  0xfd   : > { %v715_v37 = vpack.c.bf16 %v3566_v35, %v3565_v45  ;;  %v1013_v35 = vld [vmem:[%s4496_s4 + $0x10] sm:$0xff]  ;;  %v1016_v45 = vld [vmem:[%s4496_s4 + $0x28] sm:$0xff] }
  0xff   : > { %3600 = vmatmul.msk.bf16.gmra.mxu0 %vm745_vm2, %v696_v43 }
 0x101   : > { %v430_v47 = vpop.permute.xlu2 %429 }
 0x102   : > { %v472_v21 = vpop.permute.xlu1 %471  ;;  %v469_v22 = vpop.permute.xlu0 %468  ;;  %vm538_vm8 = vcmp.eq.s32.totalorder %v4168_v59, %v430_v47 }
 0x103   : > { %v4430_v55 = vsel %vm538_vm8, 1.0, %v4065_v0  ;;  %vm552_vm10 = vcmp.eq.s32.totalorder %v4168_v59, %v472_v21  ;;  %vm551_vm11 = vcmp.eq.s32.totalorder %v4168_v59, %v469_v22 }
 0x104   : > { %v3568_v6 = vsel %vm552_vm10, 1.0, %v4065_v0  ;;  %v3567_v7 = vsel %vm551_vm11, 1.0, %v4065_v0 }
 0x105   : > { %v716_v11 = vpack.c.bf16 %v3568_v6, %v3567_v7  ;;  %v1783_v7 = vsel %vm1043_vm5, %v1012_v41, 0.0 }
 0x106   : > { %1784 = vadd.xlane.f32.xlu2 %v1783_v7  ;;  %v1031_v7 = vld [vmem:[%s4496_s4 + $0xa0] sm:$0xff] }
 0x107   : > { %3618 = vmatmul.msk.bf16.gmra.mxu2 %vm745_vm2, %v714_v29 }
 0x109   : > { %v493_v40 = vpop.permute.xlu2 %492 }
 0x10a   : > { %v475_v32 = vpop.permute.xlu1 %474  ;;  %v418_v33 = vpop.permute.xlu0 %417  ;;  %vm559_vm4 = vcmp.eq.s32.totalorder %v4168_v59, %v493_v40  ;;  %v1026_v40 = vld [vmem:[%s4496_s4 + $0x78] sm:$0xff] }
 0x10b   : > { %vm534_vm3 = vcmp.eq.s32.totalorder %v4168_v59, %v418_v33  ;;  %vm553_vm12 = vcmp.eq.s32.totalorder %v4168_v59, %v475_v32  ;;  %v3575_v49 = vsel %vm559_vm4, 1.0, %v4065_v0 }
 0x10c   : > { %v4404_v43 = vsel %vm534_vm3, 1.0, %v4065_v0  ;;  %v851_v31 = vpop.f32.mrf.mxu0  ;;  %v3569_v50 = vsel %vm553_vm12, 1.0, %v4065_v0 }
 0x10d   : > { %v707_v34 = vpack.c.bf16 %v4404_v43, %v4401_v38  ;;  %v717_v28 = vpack.c.bf16 %v3570_v51, %v3569_v50  ;;  %v1018_v43 = vld [vmem:[%s4496_s4 + $0x38] sm:$0xff]  ;;  %v1786_v50 = vsel %vm1043_vm5, %v1013_v35, 0.0 }
 0x10e   : > { %1787 = vadd.xlane.f32.xlu0 %v1786_v50  ;;  %v1035_v50 = vld [vmem:[%s4496_s4 + $0xc0] sm:$0xff] }
 0x10f   : > { %3601 = vmatmul.msk.bf16.gmra.mxu0 %vm745_vm2, %v697_v39 }
 0x112   : > { %v424_v42 = vpop.permute.xlu1 %423  ;;  %v421_v44 = vpop.permute.xlu0 %420 }
 0x113   : > { %vm536_vm6 = vcmp.eq.s32.totalorder %v4168_v59, %v424_v42  ;;  %vm535_vm7 = vcmp.eq.s32.totalorder %v4168_v59, %v421_v44  ;;  %v1014_v42 = vld [vmem:[%s4496_s4 + $0x18] sm:$0xff] }
 0x114   : > { %v4419_v46 = vsel %vm536_vm6, 1.0, %v4065_v0  ;;  %v4422_v48 = vsel %vm535_vm7, 1.0, %v4065_v0  ;;  %v853_v36 = vpop.f32.mrf.mxu0 }
 0x115   : > { %v708_v39 = vpack.c.bf16 %v4419_v46, %v4422_v48  ;;  %1061 = vmatpush.msrb.mxu2 %v853_v36  ;;  %v1019_v48 = vld [vmem:[%s4496_s4 + $0x40] sm:$0xff] }
 0x117   : > { %3619 = vmatmul.msk.bf16.gmra.mxu2 %vm745_vm2, %v715_v37 }
 0x118   : > { %1062 = vmatpush.msrb.mxu2 %v851_v31 }
 0x11a   : > { %v427_v53 = vpop.permute.xlu1 %426  ;;  %v484_v12 = vpop.permute.xlu0 %483 }
 0x11b   : > { %vm537_vm9 = vcmp.eq.s32.totalorder %v4168_v59, %v427_v53  ;;  %vm556_vm14 = vcmp.eq.s32.totalorder %v4168_v59, %v484_v12  ;;  %v1792_v12 = vsel %vm1043_vm5, %v1015_v57, 0.0 }
 0x11c   : > { %v4433_v56 = vsel %vm537_vm9, 1.0, %v4065_v0  ;;  %v856_v61 = vpop.f32.mrf.mxu0  ;;  %v3572_v63 = vsel %vm556_vm14, 1.0, %v4065_v0 }
 0x11d   : > { %v709_v5 = vpack.c.bf16 %v4430_v55, %v4433_v56  ;;  %v718_v19 = vpack.c.bf16 %v3572_v63, %v3571_v2  ;;  %v1020_v56 = vld [vmem:[%s4496_s4 + $0x48] sm:$0xff]  ;;  %v1021_v2 = vld [vmem:[%s4496_s4 + $0x50] sm:$0xff] }
 0x11f   : > { %3602 = vmatmul.msk.bf16.gmra.mxu0 %vm745_vm2, %v698_v52 }
 0x122   : > { %v490_v21 = vpop.permute.xlu1 %489  ;;  %v487_v22 = vpop.permute.xlu0 %486 }
 0x123   : > { %vm558_vm0 = vcmp.eq.s32.totalorder %v4168_v59, %v490_v21  ;;  %vm557_vm1 = vcmp.eq.s32.totalorder %v4168_v59, %v487_v22 }
 0x124   : > { %v858_v8 = vpop.f32.mrf.mxu0  ;;  %v3574_v60 = vsel %vm558_vm0, 1.0, %v4065_v0  ;;  %v3573_v62 = vsel %vm557_vm1, 1.0, %v4065_v0 }
 0x125   : > { %1084 = vmatpush.msra.mxu2 %v858_v8  ;;  %v719_v29 = vpack.c.bf16 %v3574_v60, %v3573_v62  ;;  %v1780_v8 = vsel %vm1043_vm5, %v1011_v27, 0.0  ;;  %v1022_v60 = vld [vmem:[%s4496_s4 + $0x58] sm:$0xff]  ;;  %v1023_v62 = vld [vmem:[%s4496_s4 + $0x60] sm:$0xff] }
 0x126   : > { %1781 = vadd.xlane.f32.xlu1 %v1780_v8  ;;  %v1840_v8 = vsel %vm1043_vm5, %v1031_v7, 0.0 }
 0x127   : > { %3620 = vmatmul.msk.bf16.gmra.mxu2 %vm745_vm2, %v716_v11 }
 0x128   : > { %1085 = vmatpush.msra.mxu2 %v856_v61  ;;  %v1017_v61 = vld [vmem:[%s4496_s4 + $0x30] sm:$0xff] }
 0x129   : > { %v1798_v21 = vsel %vm1043_vm5, %v1017_v61, 0.0 }
 0x12a   : > { %v496_v32 = vpop.permute.xlu0 %495  ;;  %1799 = vadd.xlane.f32.xlu0 %v1798_v21 }
 0x12b   : > { %vm560_vm3 = vcmp.eq.s32.totalorder %v4168_v59, %v496_v32  ;;  %v1804_v32 = vsel %vm1043_vm5, %v1019_v48, 0.0 }
 0x12c   : > { %v861_v26 = vpop.f32.mrf.mxu0  ;;  %v3576_v16 = vsel %vm560_vm3, 1.0, %v4065_v0 }
 0x12d   : > { %v720_v31 = vpack.c.bf16 %v3576_v16, %v3575_v49 }
 0x12e   : > { %1793 = vadd.xlane.f32.xlu1 %v1792_v12  ;;  %v1038_v12 = vld [vmem:[%s4496_s4 + $0xd8] sm:$0xff] }
 0x12f   : > { %3603 = vmatmul.msk.bf16.gmra.mxu0 %vm745_vm2, %v699_v4 }
 0x134   : > { %v863_v52 = vpop.f32.mrf.mxu0 }
 0x137   : > { %3621 = vmatmul.msk.bf16.gmra.mxu2 %vm745_vm2, %v717_v28  ;;  %v1795_v28 = vsel %vm1043_vm5, %v1016_v45, 0.0 }
 0x13c   : > { %v866_v20 = vpop.f32.mrf.mxu0 }
 0x13f   : > { %3604 = vmatmul.msk.bf16.gmra.mxu0 %vm745_vm2, %v700_v1 }
 0x144   : > { %v868_v4 = vpop.f32.mrf.mxu0 }
 0x145   : > { %1130 = vmatpush.msra.mxu1 %v868_v4 }
 0x147   : > { %3622 = vmatmul.msk.bf16.gmra.mxu2 %vm745_vm2, %v718_v19  ;;  %1131 = vmatpush.msra.mxu1 %v866_v20  ;;  %v1801_v19 = vsel %vm1043_vm5, %v1018_v43, 0.0 }
 0x148   : > { %3628 = vmatmul.msk.f32.vlgmr.msra.gmra.mxu1 %vm1043_vm5, %v1014_v42  ;;  %1802 = vadd.xlane.f32.xlu1 %v1801_v19 }
 0x14a   : > { %v4506_v54 = vpop.f32.mrf.mxu2 }
 0x14c   : > { %v871_v24 = vpop.f32.mrf.mxu0 }
 0x14f   : > { %3605 = vmatmul.msk.bf16.gmra.mxu0 %vm745_vm2, %v701_v18 }
 0x152   : > { %v4513_v58 = vpop.f32.mrf.mxu2 }
 0x154   : > { %v873_v1 = vpop.f32.mrf.mxu0 }
 0x157   : > { %3623 = vmatmul.msk.bf16.gmra.mxu2 %vm745_vm2, %v719_v29 }
 0x15a   : > { %v4521_v36 = vpop.f32.mrf.mxu2 }
 0x15c   : > { %v876_v33 = vpop.f32.mrf.mxu0 }
 0x15f   : > { %3606 = vmatmul.msk.bf16.gmra.mxu0 %vm745_vm2, %v702_v30 }
 0x162   : > { %v4528_v9 = vpop.f32.mrf.mxu2 }
 0x164   : > { %v878_v18 = vpop.f32.mrf.mxu0 }
 0x167   : > { %3624 = vmatmul.msk.bf16.gmra.mxu2 %vm745_vm2, %v720_v31 }
 0x16a   : > { %v4530_v47 = vpop.f32.mrf.mxu2 }
 0x16c   : > { %v881_v23 = vpop.f32.mrf.mxu0 }
 0x16f   : > { %3607 = vmatmul.msk.bf16.gmra.mxu0 %vm745_vm2, %v703_v14 }
 0x172   : > { %v4538_v13 = vpop.f32.mrf.mxu2 }
 0x174   : > { %v883_v0 = vpop.f32.mrf.mxu0 }
 0x175   : > { %1199 = vmatpush.msrb.mxu1 %v883_v0  ;;  %v1813_v0 = vsel %vm1043_vm5, %v1022_v60, 0.0 }
 0x177   : > { %3625 = vmatmul.msk.f32.vlgmr.msrb.gmra.mxu2 %vm1043_vm5, %v1011_v27  ;;  %1200 = vmatpush.msrb.mxu1 %v881_v23  ;;  %v1810_v27 = vsel %vm1043_vm5, %v1021_v2, 0.0 }
 0x178   : > { %1107 = vmatpush.msrb.mxu2 %v863_v52  ;;  %3631 = vmatmul.msk.f32.vlgmr.msrb.gmra.mxu1 %vm1043_vm5, %v1017_v61 }
 0x179   : > { %1811 = vadd.xlane.f32.xlu1 %v1810_v27 }
 0x17a   : > { %1108 = vmatpush.msrb.mxu2 %v861_v26  ;;  %v1789_v26 = vsel %vm1043_vm5, %v1014_v42, 0.0 }
 0x17b   : > { %1790 = vadd.xlane.f32.xlu2 %v1789_v26 }
 0x17c   : > { %v886_v30 = vpop.f32.mrf.mxu0 }
 0x17f   : > { %3608 = vmatmul.msk.bf16.gmra.mxu0 %vm745_vm2, %v704_v3  ;;  %3626 = vmatmul.msk.f32.vlgmr.msra.gmra.mxu2 %vm1043_vm5, %v1012_v41  ;;  %v1027_v41 = vld [vmem:[%s4496_s4 + $0x80] sm:$0xff] }
 0x180   : > { %1153 = vmatpush.msra.mxu2 %v873_v1 }
 0x182   : > { %1154 = vmatpush.msra.mxu2 %v871_v24 }
 0x183   : > { %1796 = vadd.xlane.f32.xlu2 %v1795_v28 }
 0x184   : > { %v888_v14 = vpop.f32.mrf.mxu0 }
 0x187   : > { %3627 = vmatmul.msk.f32.vlgmr.msrb.gmra.mxu2 %vm1043_vm5, %v1013_v35  ;;  %v1025_v35 = vld [vmem:[%s4496_s4 + $0x70] sm:$0xff] }
 0x188   : > { %1176 = vmatpush.msrb.mxu2 %v878_v18  ;;  %v1024_v18 = vld [vmem:[%s4496_s4 + $0x68] sm:$0xff]  ;;  %v1822_v42 = vsel %vm1043_vm5, %v1025_v35, 0.0 }
 0x18a   : > { %1177 = vmatpush.msrb.mxu2 %v876_v33  ;;  %v1807_v33 = vsel %vm1043_vm5, %v1020_v56, 0.0 }
 0x18b   : > { %1805 = vadd.xlane.f32.xlu2 %v1804_v32  ;;  %1808 = vadd.xlane.f32.xlu0 %v1807_v33  ;;  %v3766_v32 = vld [vmem:[%s5693_s2 + $0x58] sm:$0xff] }
 0x18c   : > { %v891_v44 = vpop.f32.mrf.mxu0 }
 0x18f   : > { %3609 = vmatmul.msk.bf16.gmra.mxu0 %vm745_vm2, %v705_v25  ;;  %3629 = vmatmul.msk.f32.vlgmr.msra.gmra.mxu2 %vm1043_vm5, %v1015_v57  ;;  %v1825_v57 = vsel %vm1043_vm5, %v1026_v40, 0.0 }
 0x190   : > { %1222 = vmatpush.msra.mxu2 %v888_v14 }
 0x192   : > { %1223 = vmatpush.msra.mxu2 %v886_v30  ;;  %v1816_v30 = vsel %vm1043_vm5, %v1023_v62, 0.0 }
 0x193   : > { %1814 = vadd.xlane.f32.xlu2 %v1813_v0  ;;  %1817 = vadd.xlane.f32.xlu0 %v1816_v30 }
 0x194   : > { %v893_v3 = vpop.f32.mrf.mxu0 }
 0x195   : > { %1245 = vmatpush.msra.mxu3 %v893_v3 }
 0x197   : > { %1246 = vmatpush.msra.mxu3 %v891_v44  ;;  %3630 = vmatmul.msk.f32.vlgmr.msrb.gmra.mxu2 %vm1043_vm5, %v1016_v45  ;;  %v1819_v44 = vsel %vm1043_vm5, %v1024_v18, 0.0 }
 0x198   : > { %3633 = vmatmul.msk.f32.vlgmr.msra.gmra.mxu3 %vm1043_vm5, %v1019_v48  ;;  %1820 = vadd.xlane.f32.xlu1 %v1819_v44  ;;  %v3763_v44 = vld [vmem:[%s5693_s2 + $0x40] sm:$0xff] }
 0x19b   : > { %1823 = vadd.xlane.f32.xlu2 %v1822_v42  ;;  %1826 = vadd.xlane.f32.xlu0 %v1825_v57 }
 0x19c   : > { %v896_v37 = vpop.f32.mrf.mxu0 }
 0x19f   : > { %3610 = vmatmul.msk.bf16.gmra.mxu0 %vm745_vm2, %v706_v17  ;;  %v4544_v17 = vpop.f32.mrf.mxu2  ;;  %3632 = vmatmul.msk.f32.vlgmr.msra.gmra.mxu2 %vm1043_vm5, %v1018_v43  ;;  %v1032_v43 = vld [vmem:[%s4496_s4 + $0xa8] sm:$0xff] }
 0x1a0   : > { %v1843_v48 = vsel %vm1043_vm5, %v1032_v43, 0.0 }
 0x1a4   : > { %v898_v10 = vpop.f32.mrf.mxu0 }
 0x1a5   : > { %1268 = vmatpush.msra.mxu1 %v898_v10 }
 0x1a7   : > { %1269 = vmatpush.msra.mxu1 %v896_v37  ;;  %v1028_v37 = vld [vmem:[%s4496_s4 + $0x88] sm:$0xff] }
 0x1a8   : > { %3634 = vmatmul.msk.f32.vlgmr.msra.gmra.mxu1 %vm1043_vm5, %v1020_v56  ;;  %v1831_v10 = vsel %vm1043_vm5, %v1028_v37, 0.0  ;;  %v1034_v56 = vld [vmem:[%s4496_s4 + $0xb8] sm:$0xff] }
 0x1a9   : > { %1832 = vadd.xlane.f32.xlu2 %v1831_v10 }
 0x1ac   : > { %v901_v25 = vpop.f32.mrf.mxu0 }
 0x1af   : > { %3611 = vmatmul.msk.bf16.gmra.mxu0 %vm745_vm2, %v707_v34  ;;  %v4548_v34 = vpop.f32.mrf.mxu2 }
 0x1b1   : > { %1841 = vadd.xlane.f32.xlu2 %v1840_v8 }
 0x1b4   : > { %v903_v53 = vpop.f32.mrf.mxu0 }
 0x1b5   : > { %1291 = vmatpush.msrb.mxu2 %v903_v53  ;;  %v1029_v53 = vld [vmem:[%s4496_s4 + $0x90] sm:$0xff] }
 0x1b6   : > { %v1834_v61 = vsel %vm1043_vm5, %v1029_v53, 0.0 }
 0x1b7   : > { %1292 = vmatpush.msrb.mxu2 %v901_v25  ;;  %v1828_v25 = vsel %vm1043_vm5, %v1027_v41, 0.0  ;;  %1835 = vadd.xlane.f32.xlu0 %v1834_v61 }
 0x1b8   : > { %3635 = vmatmul.msk.f32.vlgmr.msrb.gmra.mxu2 %vm1043_vm5, %v1021_v2  ;;  %1829 = vadd.xlane.f32.xlu1 %v1828_v25  ;;  %v1861_v2 = vsel %vm1043_vm5, %v1038_v12, 0.0 }
 0x1bc   : > { %v906_v15 = vpop.f32.mrf.mxu0 }
 0x1bf   : > { %3612 = vmatmul.msk.bf16.gmra.mxu0 %vm745_vm2, %v708_v39  ;;  %v4558_v39 = vpop.f32.mrf.mxu2  ;;  %1844 = vadd.xlane.f32.xlu0 %v1843_v48 }
 0x1c4   : > { %v908_v38 = vpop.f32.mrf.mxu0 }
 0x1c5   : > { %1314 = vmatpush.msrb.mxu3 %v908_v38 }
 0x1c7   : > { %1315 = vmatpush.msrb.mxu3 %v906_v15  ;;  %v4562_v51 = vpop.f32.mrf.mxu2 }
 0x1c8   : > { %3636 = vmatmul.msk.f32.vlgmr.msrb.gmra.mxu3 %vm1043_vm5, %v1022_v60  ;;  %v1039_v60 = vld [vmem:[%s4496_s4 + $0xe0] sm:$0xff] }
 0x1cc   : > { %v911_v6 = vpop.f32.mrf.mxu0 }
 0x1cf   : > { %3613 = vmatmul.msk.bf16.gmra.mxu0 %vm745_vm2, %v709_v5  ;;  %v4566_v5 = vpop.f32.mrf.mxu2 }
 0x1d4   : > { %v913_v46 = vpop.f32.mrf.mxu0 }
 0x1d5   : > { %1337 = vmatpush.msrb.mxu1 %v913_v46 }
 0x1d7   : > { %1338 = vmatpush.msrb.mxu1 %v911_v6  ;;  %v4570_v20 = vpop.f32.mrf.mxu2  ;;  %v1030_v6 = vld [vmem:[%s4496_s4 + $0x98] sm:$0xff] }
 0x1d8   : > { %3637 = vmatmul.msk.f32.vlgmr.msrb.gmra.mxu1 %vm1043_vm5, %v1023_v62  ;;  %v1837_v46 = vsel %vm1043_vm5, %v1030_v6, 0.0 }
 0x1d9   : > { %1838 = vadd.xlane.f32.xlu1 %v1837_v46 }
 0x1dc   : > { %v916_v11 = vpop.f32.mrf.mxu0 }
 0x1df   : > { %v4576_v22 = vpop.f32.mrf.mxu2 }
 0x1e4   : > { %v918_v55 = vpop.f32.mrf.mxu0 }
 0x1e5   : > { %1360 = vmatpush.msra.mxu2 %v918_v55  ;;  %v1033_v55 = vld [vmem:[%s4496_s4 + $0xb0] sm:$0xff] }
 0x1e6   : > { %v1846_v28 = vsel %vm1043_vm5, %v1033_v55, 0.0 }
 0x1e7   : > { %1361 = vmatpush.msra.mxu2 %v916_v11  ;;  %v4581_v1 = vpop.f32.mrf.mxu2  ;;  %1847 = vadd.xlane.f32.xlu1 %v1846_v28 }
 0x1e8   : > { %3638 = vmatmul.msk.f32.vlgmr.msra.gmra.mxu2 %vm1043_vm5, %v1024_v18 }
 0x1ec   : > { %v921_v52 = vpop.f32.mrf.mxu0 }
 0x1ef   : > { %v4588_v16 = vpop.f32.mrf.mxu2 }
 0x1f4   : > { %v923_v63 = vpop.f32.mrf.mxu0 }
 0x1f5   : > { %1383 = vmatpush.msra.mxu3 %v923_v63 }
 0x1f7   : > { %1384 = vmatpush.msra.mxu3 %v921_v52  ;;  %v4592_v31 = vpop.f32.mrf.mxu2  ;;  %v1849_v52 = vsel %vm1043_vm5, %v1034_v56, 0.0 }
 0x1f8   : > { %3639 = vmatmul.msk.f32.vlgmr.msra.gmra.mxu3 %vm1043_vm5, %v1025_v35  ;;  %1850 = vadd.xlane.f32.xlu2 %v1849_v52  ;;  %v3760_v52 = vld [vmem:[%s5693_s2 + $0x28] sm:$0xff] }
 0x1fc   : > { %v926_v4 = vpop.f32.mrf.mxu0 }
 0x1ff   : > { %v4603_v3 = vpop.f32.mrf.mxu2 }
 0x204   : > { %v928_v24 = vpop.f32.mrf.mxu0 }
 0x205   : > { %1406 = vmatpush.msra.mxu1 %v928_v24  ;;  %v1040_v24 = vld [vmem:[%s4496_s4 + $0xe8] sm:$0xff] }
 0x206   : > { %v1867_v62 = vsel %vm1043_vm5, %v1040_v24, 0.0 }
 0x207   : > { %1407 = vmatpush.msra.mxu1 %v926_v4  ;;  %v4612_v15 = vpop.f32.mrf.mxu2 }
 0x208   : > { %3640 = vmatmul.msk.f32.vlgmr.msra.gmra.mxu1 %vm1043_vm5, %v1026_v40 }
 0x20c   : > { %v931_v29 = vpop.f32.mrf.mxu0 }
 0x20f   : > { %v1001_v11 = vpop.f32.mrf.mxu2 }
 0x214   : > { %v933_v49 = vpop.f32.mrf.mxu0 }
 0x215   : > { %1429 = vmatpush.msrb.mxu2 %v933_v49 }
 0x217   : > { %1430 = vmatpush.msrb.mxu2 %v931_v29 }
 0x218   : > { %3641 = vmatmul.msk.f32.vlgmr.msrb.gmra.mxu2 %vm1043_vm5, %v1027_v41 }
 0x21c   : > { %v936_v23 = vpop.f32.mrf.mxu0 }
 0x224   : > { %v938_v14 = vpop.f32.mrf.mxu0 }
 0x225   : > { %1452 = vmatpush.msrb.mxu3 %v938_v14 }
 0x227   : > { %1453 = vmatpush.msrb.mxu3 %v936_v23 }
 0x228   : > { %3642 = vmatmul.msk.f32.vlgmr.msrb.gmra.mxu3 %vm1043_vm5, %v1028_v37 }
 0x22c   : > { %v941_v45 = vpop.f32.mrf.mxu0 }
 0x234   : > { %v943_v38 = vpop.f32.mrf.mxu0 }
 0x235   : > { %1475 = vmatpush.msrb.mxu1 %v943_v38  ;;  %v3762_v38 = vld [vmem:[%s5693_s2 + $0x38] sm:$0xff] }
 0x237   : > { %1476 = vmatpush.msrb.mxu1 %v941_v45 }
 0x238   : > { %3643 = vmatmul.msk.f32.vlgmr.msrb.gmra.mxu1 %vm1043_vm5, %v1029_v53 }
 0x239   : > { %1544 = vmatpush.msra.mxu1 %v4513_v58  ;;  %v1852_v58 = vsel %vm1043_vm5, %v1035_v50, 0.0 }
 0x23a   : > { %1853 = vadd.xlane.f32.xlu0 %v1852_v58 }
 0x23b   : > { %1545 = vmatpush.msra.mxu1 %v4506_v54  ;;  %v1003_v54 = vpop.f32.mrf.mxu2 }
 0x23c   : > { %v946_v26 = vpop.f32.mrf.mxu0 }
 0x23d   : > { %1613 = vmatpush.msrb.mxu1 %v4548_v34  ;;  %v1037_v34 = vld [vmem:[%s4496_s4 + $0xd0] sm:$0xff] }
 0x23e   : > { %v1858_v63 = vsel %vm1043_vm5, %v1037_v34, 0.0 }
 0x23f   : > { %1614 = vmatpush.msrb.mxu1 %v4544_v17  ;;  %1859 = vadd.xlane.f32.xlu2 %v1858_v63 }
 0x240   : > { %3646 = vmatmul.msk.f32.vlgmr.msra.gmra.mxu1 %vm1043_vm5, %v1032_v43 }
 0x241   : > { %1682 = vmatpush.msra.mxu1 %v4581_v1  ;;  %v1864_v1 = vsel %vm1043_vm5, %v1039_v60, 0.0 }
 0x242   : > { %1862 = vadd.xlane.f32.xlu0 %v1861_v2 }
 0x243   : > { %1683 = vmatpush.msra.mxu1 %v4576_v22  ;;  %v1006_v19 = vpop.f32.mrf.mxu2  ;;  %v1782_v22 = vpop.xlane.xlu1 %1781 }
 0x244   : > { %v948_v17 = vpop.f32.mrf.mxu0  ;;  %vm1881_vm2 = vweird.f32 %v1782_v22  ;;  %v1885_v27 = vand.u32 2147483647, %v1782_v22  ;;  %v1887_v30 = vand.u32 2147483648, %v1782_v22 }
 0x245   : > { %1498 = vmatpush.msra.mxu2 %v948_v17 }
 0x246   : > { %vm1886_vm11 = vcmp.eq.f32.partialorder %v1885_v27, 8.507059e+37  ;;  %v1888_v37 = vor.u32 1.1754944e-38, %v1887_v30 }
 0x247   : > { %1499 = vmatpush.msra.mxu2 %v946_v26  ;;  %1868 = vadd.xlane.f32.xlu2 %v1867_v62 }
 0x248   : > { %3644 = vmatmul.msk.f32.vlgmr.msra.gmra.mxu2 %vm1043_vm5, %v1030_v6  ;;  %3649 = vmatmul.msk.f32.vlgmr.msrb.gmra.mxu1 %vm1043_vm5, %v1035_v50 }
 0x249   : > { %1567 = vmatpush.msrb.mxu2 %v4528_v9  ;;  %1751 = vmatpush.msrb.mxu1 %v1003_v54  ;;  %v1036_v9 = vld [vmem:[%s4496_s4 + $0xc8] sm:$0xff] }
 0x24b   : > { %1568 = vmatpush.msrb.mxu2 %v4521_v36  ;;  %1752 = vmatpush.msrb.mxu1 %v1001_v11  ;;  %v1855_v36 = vsel %vm1043_vm5, %v1036_v9, 0.0  ;;  %v3761_v11 = vld [vmem:[%s5693_s2 + $0x30] sm:$0xff]  ;;  %v4713_v26 = vpop.xlane.xlu1 %1793 }
 0x24c   : > { %v951_v4 = vpop.f32.mrf.mxu0  ;;  %1856 = vadd.xlane.f32.xlu1 %v1855_v36  ;;  %v1947_v42 = vand.u32 2147483648, %v4713_v26 }
 0x24d   : > { %1636 = vmatpush.msra.mxu2 %v4562_v51  ;;  %v1008_v51 = vpop.f32.mrf.mxu2 }
 0x24f   : > { %1637 = vmatpush.msra.mxu2 %v4558_v39  ;;  %v4652_v39 = vpop.xlane.xlu2 %1784 }
 0x250   : > { %3647 = vmatmul.msk.f32.vlgmr.msrb.gmra.mxu2 %vm1043_vm5, %v1033_v55  ;;  %3652 = vmatmul.msk.f32.vlgmr.msra.gmra.mxu1 %vm1043_vm5, %v1038_v12  ;;  %3800 = vrcp.f32 %v4652_v39  ;;  %vm1896_vm7 = vweird.f32 %v4652_v39  ;;  %v1902_v41 = vand.u32 2147483648, %v4652_v39 }
 0x251   : > { %1705 = vmatpush.msrb.mxu2 %v4592_v31  ;;  %3802 = vrcp.f32 %v1782_v22  ;;  %v3764_v31 = vld [vmem:[%s5693_s2 + $0x48] sm:$0xff] }
 0x252   : > { %v1903_v25 = vor.u32 1.1754944e-38, %v1902_v41 }
 0x253   : > { %1706 = vmatpush.msrb.mxu2 %v4588_v16  ;;  %v3765_v16 = vld [vmem:[%s5693_s2 + $0x50] sm:$0xff] }
 0x254   : > { %v953_v21 = vpop.f32.mrf.mxu0  ;;  %1865 = vadd.xlane.f32.xlu1 %v1864_v1 }
 0x255   : > { %1521 = vmatpush.msra.mxu3 %v953_v21  ;;  %v1064_v0 = vpop.f32.mrf.mxu2 }
 0x257   : > { %1522 = vmatpush.msra.mxu3 %v951_v4  ;;  %v4677_v49 = vpop.xlane.xlu2 %1790  ;;  %v3759_v4 = vld [vmem:[%s5693_s2 + $0x20] sm:$0xff] }
 0x258   : > { %3645 = vmatmul.msk.f32.vlgmr.msra.gmra.mxu3 %vm1043_vm5, %v1031_v7  ;;  %3650 = vmatmul.msk.f32.vlgmr.msra.gmra.mxu2 %vm1043_vm5, %v1036_v9  ;;  %vm1926_vm0 = vweird.f32 %v4677_v49  ;;  %v1932_v63 = vand.u32 2147483648, %v4677_v49  ;;  %v1930_v21 = vand.u32 2147483647, %v4677_v49 }
 0x259   : > { %1590 = vmatpush.msrb.mxu3 %v4538_v13  ;;  %1774 = vmatpush.msra.mxu2 %v1008_v51 }
 0x25a   : > { %v1933_v1 = vor.u32 1.1754944e-38, %v1932_v63 }
 0x25b   : > { %1591 = vmatpush.msrb.mxu3 %v4530_v47  ;;  %1775 = vmatpush.msra.mxu2 %v1006_v19  ;;  %v3801_v47 = vpop.eup %3800 }
 0x25c   : > { %v3803_v13 = vpop.eup %3802  ;;  %vm1897_vm8 = vweird.f32 %v3801_v47 }
 0x25d   : > { %1659 = vmatpush.msra.mxu3 %v4570_v20  ;;  %v1892_v20 = vmul.f32 %v3801_v47, %v4652_v39  ;;  %v1877_v29 = vmul.f32 %v3803_v13, %v1782_v22  ;;  %vm1882_vm6 = vweird.f32 %v3803_v13  ;;  %vm1898_vm10 = vmor %vm1896_vm7, %vm1897_vm8  ;;  %v1087_v7 = vpop.f32.mrf.mxu2  ;;  %vm1941_vm7 = vweird.f32 %v4713_v26 }
 0x25e   : > { %vm4689_vm9 = vmor %vm1881_vm2, %vm1882_vm6  ;;  %vm1931_vm6 = vcmp.eq.f32.partialorder %v1930_v21, 8.507059e+37 }
 0x25f   : > { %1660 = vmatpush.msra.mxu3 %v4566_v5  ;;  %v4672_v5 = vpop.xlane.xlu0 %1787  ;;  %v1893_v33 = vsub.f32 1.0, %v1892_v20  ;;  %v1878_v40 = vsub.f32 1.0, %v1877_v29  ;;  %v4708_v46 = vpop.xlane.xlu2 %1796 }
 0x260   : > { %3648 = vmatmul.msk.f32.vlgmr.msrb.gmra.mxu3 %vm1043_vm5, %v1034_v56  ;;  %3653 = vmatmul.msk.f32.vlgmr.msrb.gmra.mxu2 %vm1043_vm5, %v1039_v60  ;;  %3804 = vrcp.f32 %v4672_v5  ;;  %vm1911_vm14 = vweird.f32 %v4672_v5  ;;  %v1917_v12 = vand.u32 2147483648, %v4672_v5 }
 0x261   : > { %1728 = vmatpush.msrb.mxu3 %v4612_v15  ;;  %3806 = vrcp.f32 %v4677_v49  ;;  %v1879_v18 = vmul.f32 %v3803_v13, %v1878_v40  ;;  %v1894_v23 = vmul.f32 %v3801_v47, %v1893_v33  ;;  %v4759_v40 = vpop.xlane.xlu1 %1802 }
 0x262   : > { %3808 = vrcp.f32 %v4708_v46  ;;  %v1918_v62 = vor.u32 1.1754944e-38, %v1917_v12  ;;  %v1992_v19 = vand.u32 2147483648, %v4759_v40 }
 0x263   : > { %1729 = vmatpush.msrb.mxu3 %v4603_v3  ;;  %v1880_v35 = vadd.f32 %v3803_v13, %v1879_v18  ;;  %v1895_v57 = vadd.f32 %v3801_v47, %v1894_v23  ;;  %v1900_v3 = vand.u32 2147483647, %v4652_v39  ;;  %3810 = vrcp.f32 %v4713_v26 }
 0x264   : > { %3812 = vrcp.f32 %v4759_v40 }
 0x265   : > { %v1884_v53 = vsel %vm4689_vm9, %v3803_v13, %v1880_v35  ;;  %v1899_v15 = vsel %vm1898_vm10, %v3801_v47, %v1895_v57  ;;  %vm1901_vm12 = vcmp.eq.f32.partialorder %v1900_v3, 8.507059e+37  ;;  %vm1956_vm9 = vweird.f32 %v4708_v46 }
 0x266   : > { %v4687_v14 = vpop.eup %3804  ;;  %v1889_v43 = vsel %vm1886_vm11, %v1888_v37, %v1884_v53  ;;  %v1904_v8 = vsel %vm1901_vm12, %v1903_v25, %v1899_v15  ;;  %v1945_v35 = vand.u32 2147483647, %v4713_v26  ;;  %v1962_v57 = vand.u32 2147483648, %v4708_v46 }
 0x267   : > { %v4697_v45 = vpop.eup %3806  ;;  %v1907_v10 = vmul.f32 %v4687_v14, %v4672_v5  ;;  %v1890_v50 = vmul.f32 %v1889_v43, %v1064_v0  ;;  %v1905_v55 = vmul.f32 %v1904_v8, %v1087_v7  ;;  %vm1912_vm15 = vweird.f32 %v4687_v14  ;;  %v4761_v18 = vpop.xlane.xlu0 %1799 }
 0x268   : > { %3651 = vmatmul.msk.f32.vlgmr.msra.gmra.mxu3 %vm1043_vm5, %v1037_v34  ;;  %v1922_v61 = vmul.f32 %v4697_v45, %v4677_v49  ;;  %vm1927_vm1 = vweird.f32 %v4697_v45  ;;  %v1915_v34 = vand.u32 2147483647, %v4672_v5  ;;  %v4731_v2 = vpop.eup %3808  ;;  %vm4736_vm3 = vmor %vm1911_vm14, %vm1912_vm15  ;;  %v1133_v5 = vpop.f32.mrf.mxu1  ;;  %3814 = vrcp.f32 %v4761_v18 }
 0x269   : > { %2486 = vmatpush.bf16.msra.mxu3 %v3766_v32  ;;  %v1908_v6 = vsub.f32 1.0, %v1907_v10  ;;  %v2356_v58 = vperm.slane %v1890_v50, 3  ;;  %v2357_v54 = vperm.slane %v1905_v55, 3  ;;  %v3811_v36 = vpop.eup %3810  ;;  %vm4742_vm4 = vmor %vm1926_vm0, %vm1927_vm1  ;;  %v1952_v47 = vmul.f32 %v4731_v2, %v4708_v46 }
 0x26a   : > { %v1923_v48 = vsub.f32 1.0, %v1922_v61  ;;  %vm1916_vm2 = vcmp.eq.f32.partialorder %v1915_v34, 8.507059e+37  ;;  %v1937_v13 = vmul.f32 %v3811_v36, %v4713_v26  ;;  %vm1942_vm8 = vweird.f32 %v3811_v36  ;;  %v4773_v3 = vpop.eup %3812 }
 0x26b   : > { %v1909_v56 = vmul.f32 %v4687_v14, %v1908_v6  ;;  %v2389_v39 = vsel %vm2388_vm13, %v2356_v58, %v1890_v50  ;;  %v2390_v22 = vsel %vm2388_vm13, %v2357_v54, %v1905_v55  ;;  %vm1957_vm10 = vweird.f32 %v4731_v2  ;;  %vm4775_vm11 = vmor %vm1941_vm7, %vm1942_vm8  ;;  %v4790_v50 = vpop.xlane.xlu2 %1805 }
 0x26c   : > { %v1924_v28 = vmul.f32 %v4697_v45, %v1923_v48  ;;  %v2421_v29 = vpack.c.bf16 %v2390_v22, %v2389_v39  ;;  %v1938_v49 = vsub.f32 1.0, %v1937_v13  ;;  %vm1958_vm12 = vmor %vm1956_vm9, %vm1957_vm10  ;;  %vm1946_vm14 = vcmp.eq.f32.partialorder %v1945_v35, 8.507059e+37 }
 0x26d   : > { %2487 = vmatpush.bf16.msra.mxu3 %v3765_v16  ;;  %v1910_v17 = vadd.f32 %v4687_v14, %v1909_v56  ;;  %v1953_v16 = vsub.f32 1.0, %v1952_v47  ;;  %v1948_v15 = vor.u32 1.1754944e-38, %v1947_v42  ;;  %v1982_v6 = vmul.f32 %v4773_v3, %v4759_v40 }
 0x26e   : > { %v1925_v9 = vadd.f32 %v4697_v45, %v1924_v28  ;;  %v1939_v0 = vmul.f32 %v3811_v36, %v1938_v49  ;;  %v3815_v25 = vpop.eup %3814  ;;  %3816 = vrcp.f32 %v4790_v50  ;;  %vm1971_vm0 = vweird.f32 %v4761_v18 }
 0x26f   : > { %v1914_v60 = vsel %vm4736_vm3, %v4687_v14, %v1910_v17  ;;  %v1954_v27 = vmul.f32 %v4731_v2, %v1953_v16  ;;  %v1967_v7 = vmul.f32 %v3815_v25, %v4761_v18  ;;  %v1983_v55 = vsub.f32 1.0, %v1982_v6 }
 0x270   : > { %3654 = vmatmul.msk.f32.vlgmr.msrb.gmra.mxu3 %vm1043_vm5, %v1040_v24  ;;  %v1110_v24 = vpop.f32.mrf.mxu2  ;;  %v1929_v20 = vsel %vm4742_vm4, %v4697_v45, %v1925_v9  ;;  %v1919_v32 = vsel %vm1916_vm2, %v1918_v62, %v1914_v60  ;;  %v1940_v45 = vadd.f32 %v3811_v36, %v1939_v0  ;;  %vm1972_vm1 = vweird.f32 %v3815_v25 }
 0x271   : > { %2488 = vmatpush.bf16.msra.mxu3 %v3764_v31  ;;  %v1934_v33 = vsel %vm1931_vm6, %v1933_v1, %v1929_v20  ;;  %v1920_v31 = vmul.f32 %v1919_v32, %v1110_v24  ;;  %v1955_v10 = vadd.f32 %v4731_v2, %v1954_v27  ;;  %v1968_v56 = vsub.f32 1.0, %v1967_v7  ;;  %vm4804_vm2 = vmor %vm1971_vm0, %vm1972_vm1 }
 0x272   : > { %v1935_v23 = vmul.f32 %v1934_v33, %v1133_v5  ;;  %v1944_v43 = vsel %vm4775_vm11, %v3811_v36, %v1940_v45  ;;  %v1984_v17 = vmul.f32 %v4773_v3, %v1983_v55  ;;  %vm1986_vm3 = vweird.f32 %v4759_v40  ;;  %v1202_v5 = vpop.f32.mrf.mxu1 }
 0x273   : > { %v2358_v41 = vperm.slane %v1920_v31, 3  ;;  %v1959_v8 = vsel %vm1958_vm12, %v4731_v2, %v1955_v10  ;;  %v1949_v48 = vsel %vm1946_vm14, %v1948_v15, %v1944_v43  ;;  %v1969_v54 = vmul.f32 %v3815_v25, %v1968_v56  ;;  %v4824_v49 = vpop.xlane.xlu2 %1814 }
 0x274   : > { %v2359_v14 = vperm.slane %v1935_v23, 3  ;;  %vm1987_vm4 = vweird.f32 %v4773_v3  ;;  %v1975_v63 = vand.u32 2147483647, %v4761_v18  ;;  %v1977_v2 = vand.u32 2147483648, %v4761_v18  ;;  %v3817_v9 = vpop.eup %3816 }
 0x275   : > { %2489 = vmatpush.bf16.msra.mxu3 %v3763_v44  ;;  %v1960_v44 = vand.u32 2147483647, %v4708_v46  ;;  %v2391_v53 = vsel %vm2388_vm13, %v2358_v41, %v1920_v31  ;;  %v1970_v21 = vadd.f32 %v3815_v25, %v1969_v54  ;;  %v1985_v51 = vadd.f32 %v4773_v3, %v1984_v17  ;;  %vm4809_vm6 = vmor %vm1986_vm3, %vm1987_vm4 }
 0x276   : > { %v2392_v61 = vsel %vm2388_vm13, %v2359_v14, %v1935_v23  ;;  %vm1976_vm7 = vcmp.eq.f32.partialorder %v1975_v63, 8.507059e+37  ;;  %v1978_v62 = vor.u32 1.1754944e-38, %v1977_v2  ;;  %v1993_v1 = vor.u32 1.1754944e-38, %v1992_v19  ;;  %v4826_v23 = vpop.xlane.xlu1 %1811  ;;  %v1041_v63 = vld [vmem:[%s4496_s4 + $0xf0] sm:$0xff] }
 0x277   : > { %vm1961_vm15 = vcmp.eq.f32.partialorder %v1960_v44, 8.507059e+37  ;;  %v2422_v46 = vpack.c.bf16 %v2392_v61, %v2391_v53  ;;  %v1997_v47 = vmul.f32 %v3817_v9, %v4790_v50  ;;  %v1974_v20 = vsel %vm4804_vm2, %v3815_v25, %v1970_v21  ;;  %3655 = vmatmul.msk.f32.vlgmr.msrb.gmra.mxu1 %vm1043_vm5, %v1041_v63 }
 0x278   : > { %v1156_v30 = vpop.f32.mrf.mxu2  ;;  %v1979_v33 = vsel %vm1976_vm7, %v1978_v62, %v1974_v20  ;;  %vm2001_vm9 = vweird.f32 %v4790_v50  ;;  %vm2002_vm10 = vweird.f32 %v3817_v9  ;;  %v2005_v42 = vand.u32 2147483647, %v4790_v50 }
 0x279   : > { %2490 = vmatpush.bf16.msra.mxu3 %v3762_v38  ;;  %v1963_v38 = vor.u32 1.1754944e-38, %v1962_v57  ;;  %v1950_v28 = vmul.f32 %v1949_v48, %v1156_v30  ;;  %v1998_v18 = vsub.f32 1.0, %v1997_v47  ;;  %v1980_v0 = vmul.f32 %v1979_v33, %v1202_v5  ;;  %vm4838_vm14 = vmor %vm2001_vm9, %vm2002_vm10 }
 0x27a   : > { %v2007_v44 = vand.u32 2147483648, %v4790_v50  ;;  %vm2006_vm0 = vcmp.eq.f32.partialorder %v2005_v42, 8.507059e+37  ;;  %v1271_v55 = vpop.f32.mrf.mxu1  ;;  %vm2031_vm3 = vweird.f32 %v4826_v23  ;;  %vm2046_vm2 = vweird.f32 %v4824_v49 }
 0x27b   : > { %v1964_v26 = vsel %vm1961_vm15, %v1963_v38, %v1959_v8  ;;  %v2360_v34 = vperm.slane %v1950_v28, 3  ;;  %v1999_v30 = vmul.f32 %v3817_v9, %v1998_v18  ;;  %v2362_v14 = vperm.slane %v1980_v0, 3 }
 0x27c   : > { %v2008_v43 = vor.u32 1.1754944e-38, %v2007_v44  ;;  %v2035_v21 = vand.u32 2147483647, %v4826_v23  ;;  %v2037_v36 = vand.u32 2147483648, %v4826_v23  ;;  %v2050_v62 = vand.u32 2147483647, %v4824_v49 }
 0x27d   : > { %2491 = vmatpush.bf16.msra.mxu3 %v3761_v11  ;;  %v2393_v24 = vsel %vm2388_vm13, %v2360_v34, %v1950_v28  ;;  %v2000_v37 = vadd.f32 %v3817_v9, %v1999_v30  ;;  %v2395_v15 = vsel %vm2388_vm13, %v2362_v14, %v1980_v0  ;;  %v4910_v0 = vpop.xlane.xlu2 %1823 }
 0x27e   : > { %v4863_v34 = vpop.xlane.xlu1 %1820  ;;  %vm2036_vm9 = vcmp.eq.f32.partialorder %v2035_v21, 8.507059e+37  ;;  %vm2051_vm10 = vcmp.eq.f32.partialorder %v2050_v62, 8.507059e+37 }
 0x27f   : > { %v2082_v61 = vand.u32 2147483648, %v4863_v34 }
 0x280   : > { %v1179_v11 = vpop.f32.mrf.mxu2 }
 0x281   : > { %2492 = vmatpush.bf16.msra.mxu3 %v3760_v52  ;;  %v4792_v52 = vpop.xlane.xlu0 %1808  ;;  %v1965_v58 = vmul.f32 %v1964_v26, %v1179_v11  ;;  %v1248_v26 = vpop.f32.mrf.mxu3 }
 0x282   : > { %3818 = vrcp.f32 %v4792_v52  ;;  %vm2016_vm11 = vweird.f32 %v4792_v52  ;;  %v2020_v57 = vand.u32 2147483647, %v4792_v52 }
 0x283   : > { %v2361_v12 = vperm.slane %v1965_v58, 3  ;;  %3820 = vrcp.f32 %v4824_v49 }
 0x284   : > { %3822 = vrcp.f32 %v4826_v23  ;;  %vm2021_vm1 = vcmp.eq.f32.partialorder %v2020_v57, 8.507059e+37 }
 0x285   : > { %2493 = vmatpush.bf16.msra.mxu3 %v3759_v4  ;;  %v1990_v4 = vand.u32 2147483647, %v4759_v40  ;;  %v2394_v60 = vsel %vm2388_vm13, %v2361_v12, %v1965_v58  ;;  %v1042_v12 = vld [vmem:[%s4496_s4 + $0xf8] sm:$0xff] }
 0x286   : > { %v2423_v32 = vpack.c.bf16 %v2394_v60, %v2393_v24  ;;  %3656 = vmatmul.msk.f32.vlgmr.msra.gmra.mxu2 %vm1043_vm5, %v1042_v12 }
 0x287   : > { %vm1991_vm8 = vcmp.eq.f32.partialorder %v1990_v4, 8.507059e+37 }
 0x288   : > { %2494 = vmatmul.bf16.vlgmr.msra.gmra.mxu3 %v2421_v29  ;;  %v3819_v39 = vpop.eup %3818  ;;  %v1989_v29 = vsel %vm4809_vm6, %v4773_v3, %v1985_v51  ;;  %v1225_v40 = vpop.f32.mrf.mxu2  ;;  %v2022_v3 = vand.u32 2147483648, %v4792_v52  ;;  %v2052_v51 = vand.u32 2147483648, %v4824_v49 }
 0x289   : > { %v2012_v13 = vmul.f32 %v3819_v39, %v4792_v52  ;;  %v1994_v16 = vsel %vm1991_vm8, %v1993_v1, %v1989_v29  ;;  %vm2017_vm12 = vweird.f32 %v3819_v39  ;;  %v4836_v45 = vpop.eup %3820  ;;  %v4860_v58 = vpop.xlane.xlu0 %1817 }
 0x28a   : > { %v1995_v27 = vmul.f32 %v1994_v16, %v1225_v40  ;;  %v4842_v53 = vpop.eup %3822  ;;  %vm4844_vm15 = vmor %vm2016_vm11, %vm2017_vm12  ;;  %v2023_v6 = vor.u32 1.1754944e-38, %v2022_v3  ;;  %v2042_v7 = vmul.f32 %v4836_v45, %v4824_v49  ;;  %3824 = vrcp.f32 %v4860_v58  ;;  %v1317_v30 = vpop.f32.mrf.mxu3 }
 0x28b   : > { %v2013_v31 = vsub.f32 1.0, %v2012_v13  ;;  %v2027_v8 = vmul.f32 %v4842_v53, %v4826_v23  ;;  %3826 = vrcp.f32 %v4863_v34  ;;  %vm2032_vm4 = vweird.f32 %v4842_v53 }
 0x28c   : > { %v2363_v35 = vperm.slane %v1995_v27, 3  ;;  %v2043_v52 = vsub.f32 1.0, %v2042_v7  ;;  %vm2047_vm6 = vweird.f32 %v4836_v45  ;;  %vm4882_vm7 = vmor %vm2031_vm3, %vm2032_vm4  ;;  %v2053_v5 = vor.u32 1.1754944e-38, %v2052_v51 }
 0x28d   : > { %v2014_v41 = vmul.f32 %v3819_v39, %v2013_v31  ;;  %v2028_v28 = vsub.f32 1.0, %v2027_v8  ;;  %vm4890_vm8 = vmor %vm2046_vm2, %vm2047_vm6  ;;  %v1873_v31 = vsel %vm1043_vm5, %v1042_v12, 0.0  ;;  %v1870_v23 = vsel %vm1043_vm5, %v1041_v63, 0.0 }
 0x28e   : > { %v2396_v38 = vsel %vm2388_vm13, %v2363_v35, %v1995_v27  ;;  %v2044_v2 = vmul.f32 %v4836_v45, %v2043_v52  ;;  %1874 = vadd.xlane.f32.xlu1 %v1873_v31  ;;  %1871 = vadd.xlane.f32.xlu0 %v1870_v23  ;;  %3828 = vrcp.f32 %v4910_v0  ;;  %vm2061_vm5 = vweird.f32 %v4860_v58 }
 0x28f   : > { %v2015_v25 = vadd.f32 %v3819_v39, %v2014_v41  ;;  %v2424_v11 = vpack.c.bf16 %v2396_v38, %v2395_v15  ;;  %v2029_v4 = vmul.f32 %v4842_v53, %v2028_v28  ;;  %vm2076_vm12 = vweird.f32 %v4863_v34 }
 0x290   : > { %v2045_v60 = vadd.f32 %v4836_v45, %v2044_v2  ;;  %v1294_v18 = vpop.f32.mrf.mxu2  ;;  %v2080_v7 = vand.u32 2147483647, %v4863_v34  ;;  %v3774_v2 = vld [vmem:[%s5693_s2 + $0x98] sm:$0xff]  ;;  %vm2091_vm4 = vweird.f32 %v4910_v0 }
 0x291   : > { %v2019_v48 = vsel %vm4844_vm15, %v3819_v39, %v2015_v25  ;;  %v4879_v39 = vpop.eup %3824  ;;  %v2030_v22 = vadd.f32 %v4842_v53, %v2029_v4  ;;  %v4912_v42 = vpop.xlane.xlu0 %1826  ;;  %v2065_v25 = vand.u32 2147483647, %v4860_v58  ;;  %2672 = vmatpush.bf16.msra.mxu1 %v3774_v2  ;;  %3779 = vmatpush.bf16.msrb.mxu2 %v3774_v2 }
 0x292   : > { %v2024_v56 = vsel %vm2021_vm1, %v2023_v6, %v2019_v48  ;;  %v4888_v1 = vpop.eup %3826  ;;  %v2057_v29 = vmul.f32 %v4879_v39, %v4860_v58  ;;  %v2049_v16 = vsel %vm4890_vm8, %v4836_v45, %v2045_v60  ;;  %3830 = vrcp.f32 %v4912_v42 }
 0x293   : > { %v2025_v17 = vmul.f32 %v2024_v56, %v1271_v55  ;;  %v2072_v33 = vmul.f32 %v4888_v1, %v4863_v34  ;;  %v2034_v40 = vsel %vm4882_vm7, %v4842_v53, %v2030_v22  ;;  %v2054_v41 = vsel %vm2051_vm10, %v2053_v5, %v2049_v16  ;;  %v4956_v34 = vpop.xlane.xlu2 %1832 }
 0x294   : > { %v2058_v14 = vsub.f32 1.0, %v2057_v29  ;;  %v2055_v57 = vmul.f32 %v2054_v41, %v1317_v30  ;;  %vm2062_vm11 = vweird.f32 %v4879_v39  ;;  %v2067_v53 = vand.u32 2147483648, %v4860_v58  ;;  %v4925_v15 = vpop.eup %3828  ;;  %v4954_v58 = vpop.f32.mrf.mxu3 }
 0x295   : > { %v2073_v35 = vsub.f32 1.0, %v2072_v33  ;;  %vm4928_vm15 = vmor %vm2061_vm5, %vm2062_vm11  ;;  %vm2066_vm1 = vcmp.eq.f32.partialorder %v2065_v25, 8.507059e+37  ;;  %v2083_v55 = vor.u32 1.1754944e-38, %v2082_v61  ;;  %vm2081_vm3 = vcmp.eq.f32.partialorder %v2080_v7, 8.507059e+37 }
 0x296   : > { %v2059_v3 = vmul.f32 %v4879_v39, %v2058_v14  ;;  %v2367_v10 = vperm.slane %v2055_v57, 3  ;;  %3832 = vrcp.f32 %v4956_v34  ;;  %vm2092_vm2 = vweird.f32 %v4925_v15 }
 0x297   : > { %v2074_v45 = vmul.f32 %v4888_v1, %v2073_v35  ;;  %vm2106_vm6 = vweird.f32 %v4912_v42  ;;  %vm4981_vm8 = vmor %vm2091_vm4, %vm2092_vm2  ;;  %v2095_v5 = vand.u32 2147483647, %v4910_v0 }
 0x298   : > { %2499 = vmatmul.bf16.gmra.mxu3 %v2422_v46  ;;  %v2004_v46 = vsel %vm4838_vm14, %v3817_v9, %v2000_v37  ;;  %v2365_v9 = vperm.slane %v2025_v17, 3  ;;  %vm2077_vm14 = vweird.f32 %v4888_v1  ;;  %v2060_v38 = vadd.f32 %v4879_v39, %v2059_v3  ;;  %v4934_v8 = vpop.eup %3830  ;;  %v1363_v21 = vpop.f32.mrf.mxu2 }
 0x299   : > { %v2009_v50 = vsel %vm2006_vm0, %v2008_v43, %v2004_v46  ;;  %v2075_v6 = vadd.f32 %v4888_v1, %v2074_v45  ;;  %vm4936_vm0 = vmor %vm2076_vm12, %vm2077_vm14  ;;  %v2102_v56 = vmul.f32 %v4934_v8, %v4912_v42  ;;  %vm2107_vm7 = vweird.f32 %v4934_v8  ;;  %v3772_v45 = vld [vmem:[%s5693_s2 + $0x88] sm:$0xff]  ;;  %v5013_v25 = vpop.xlane.xlu0 %1835 }
 0x29a   : > { %v2010_v54 = vmul.f32 %v2009_v50, %v1248_v26  ;;  %v2398_v20 = vsel %vm2388_vm13, %v2365_v9, %v2025_v17  ;;  %v2087_v26 = vmul.f32 %v4925_v15, %v4910_v0  ;;  %v2068_v50 = vor.u32 1.1754944e-38, %v2067_v53  ;;  %v1340_v9 = vpop.f32.mrf.mxu1 }
 0x29b   : > { %v2064_v52 = vsel %vm4928_vm15, %v4879_v39, %v2060_v38  ;;  %v2079_v28 = vsel %vm4936_vm0, %v4888_v1, %v2075_v6  ;;  %v2103_v4 = vsub.f32 1.0, %v2102_v56  ;;  %vm2096_vm10 = vcmp.eq.f32.partialorder %v2095_v5, 8.507059e+37  ;;  %v3771_v6 = vld [vmem:[%s5693_s2 + $0x80] sm:$0xff] }
 0x29c   : > { %v2364_v19 = vperm.slane %v2010_v54, 3  ;;  %v2088_v17 = vsub.f32 1.0, %v2087_v26  ;;  %v2069_v12 = vsel %vm2066_vm1, %v2068_v50, %v2064_v52  ;;  %v2084_v63 = vsel %vm2081_vm3, %v2083_v55, %v2079_v28  ;;  %v4979_v29 = vpop.eup %3832  ;;  %v3770_v26 = vld [vmem:[%s5693_s2 + $0x78] sm:$0xff] }
 0x29d   : > { %v2070_v51 = vmul.f32 %v2069_v12, %v1340_v9  ;;  %v2085_v39 = vmul.f32 %v2084_v63, %v1363_v21  ;;  %v2104_v24 = vmul.f32 %v4934_v8, %v2103_v4  ;;  %v2132_v23 = vmul.f32 %v4979_v29, %v4956_v34 }
 0x29e   : > { %v2397_v13 = vsel %vm2388_vm13, %v2364_v19, %v2010_v54  ;;  %v4961_v19 = vpop.xlane.xlu1 %1829  ;;  %v2089_v22 = vmul.f32 %v4925_v15, %v2088_v17  ;;  %vm2136_vm14 = vweird.f32 %v4956_v34  ;;  %vm2137_vm15 = vweird.f32 %v4979_v29 }
 0x29f   : > { %v2425_v49 = vpack.c.bf16 %v2398_v20, %v2397_v13  ;;  %3834 = vrcp.f32 %v4961_v19  ;;  %v2368_v60 = vperm.slane %v2070_v51, 3  ;;  %v2369_v62 = vperm.slane %v2085_v39, 3  ;;  %vm5050_vm1 = vmor %vm2136_vm14, %vm2137_vm15 }
 0x2a0   : > { %v2090_v47 = vadd.f32 %v4925_v15, %v2089_v22  ;;  %v2097_v13 = vand.u32 2147483648, %v4910_v0  ;;  %v2112_v20 = vand.u32 2147483648, %v4912_v42  ;;  %v2105_v33 = vadd.f32 %v4934_v8, %v2104_v24  ;;  %v1432_v24 = vpop.f32.mrf.mxu2 }
 0x2a1   : > { %v2402_v31 = vsel %vm2388_vm13, %v2369_v62, %v2085_v39  ;;  %3836 = vrcp.f32 %v5013_v25  ;;  %vm2121_vm11 = vweird.f32 %v4961_v19  ;;  %v2125_v52 = vand.u32 2147483647, %v4961_v19  ;;  %v5071_v39 = vpop.xlane.xlu2 %1841  ;;  %v5073_v22 = vpop.xlane.xlu0 %1844 }
 0x2a2   : > { %v2094_v0 = vsel %vm4981_vm8, %v4925_v15, %v2090_v47  ;;  %v2113_v30 = vor.u32 1.1754944e-38, %v2112_v20  ;;  %v3768_v47 = vld [vmem:[%s5693_s2 + $0x68] sm:$0xff]  ;;  %vm2151_vm2 = vweird.f32 %v5013_v25  ;;  %vm2196_vm15 = vweird.f32 %v5073_v22 }
 0x2a3   : > { %vm2126_vm3 = vcmp.eq.f32.partialorder %v2125_v52, 8.507059e+37 }
 0x2a5   : > { %v4988_v16 = vpop.eup %3834 }
 0x2a6   : > { %v2117_v41 = vmul.f32 %v4988_v16, %v4961_v19  ;;  %v5016_v53 = vpop.xlane.xlu1 %1838  ;;  %vm2122_vm12 = vweird.f32 %v4988_v16 }
 0x2a7   : > { %3838 = vrcp.f32 %v5016_v53  ;;  %v5029_v46 = vpop.eup %3836  ;;  %vm5039_vm0 = vmor %vm2121_vm11, %vm2122_vm12  ;;  %vm2181_vm12 = vweird.f32 %v5071_v39 }
 0x2a8   : > { %2504 = vmatmul.bf16.gmra.mxu3 %v2423_v32  ;;  %v2038_v32 = vor.u32 1.1754944e-38, %v2037_v36  ;;  %v3773_v36 = vld [vmem:[%s5693_s2 + $0x90] sm:$0xff]  ;;  %v2147_v2 = vmul.f32 %v5029_v46, %v5013_v25  ;;  %3840 = vrcp.f32 %v5071_v39 }
 0x2a9   : > { %2673 = vmatpush.bf16.msra.mxu1 %v3773_v36  ;;  %3780 = vmatpush.bf16.msrb.mxu2 %v3773_v36  ;;  %3842 = vrcp.f32 %v5073_v22 }
 0x2aa   : > { %v2039_v27 = vsel %vm2036_vm9, %v2038_v32, %v2034_v40  ;;  %v2110_v40 = vand.u32 2147483647, %v4912_v42  ;;  %vm4990_vm9 = vmor %vm2106_vm6, %vm2107_vm7  ;;  %vm2152_vm6 = vweird.f32 %v5029_v46  ;;  %vm2166_vm7 = vweird.f32 %v5016_v53 }
 0x2ab   : > { %v2040_v44 = vmul.f32 %v2039_v27, %v1294_v18  ;;  %v4974_v1 = vpop.f32.mrf.mxu3  ;;  %v2401_v18 = vsel %vm2388_vm13, %v2368_v60, %v2070_v51  ;;  %v2098_v27 = vor.u32 1.1754944e-38, %v2097_v13  ;;  %v2109_v14 = vsel %vm4990_vm9, %v4934_v8, %v2105_v33  ;;  %v3769_v51 = vld [vmem:[%s5693_s2 + $0x70] sm:$0xff]  ;;  %vm5099_vm9 = vmor %vm2151_vm2, %vm2152_vm6 }
 0x2ac   : > { %vm2111_vm5 = vcmp.eq.f32.partialorder %v2110_v40, 8.507059e+37  ;;  %v2427_v35 = vpack.c.bf16 %v2402_v31, %v2401_v18  ;;  %v2148_v13 = vsub.f32 1.0, %v2147_v2  ;;  %v2157_v31 = vand.u32 2147483648, %v5013_v25 }
 0x2ad   : > { %v2366_v37 = vperm.slane %v2040_v44, 3  ;;  %v2114_v3 = vsel %vm2111_vm5, %v2113_v30, %v2109_v14  ;;  %2674 = vmatpush.bf16.msra.mxu1 %v3772_v45  ;;  %3781 = vmatpush.bf16.msrb.mxu2 %v3772_v45  ;;  %v5036_v50 = vpop.eup %3838 }
 0x2ae   : > { %v2162_v4 = vmul.f32 %v5036_v50, %v5016_v53  ;;  %v2149_v33 = vmul.f32 %v5029_v46, %v2148_v13  ;;  %vm2167_vm8 = vweird.f32 %v5036_v50 }
 0x2af   : > { %v2399_v48 = vsel %vm2388_vm13, %v2366_v37, %v2040_v44  ;;  %v2099_v44 = vsel %vm2096_vm10, %v2098_v27, %v2094_v0  ;;  %v2133_v37 = vsub.f32 1.0, %v2132_v23  ;;  %v2172_v23 = vand.u32 2147483648, %v5016_v53  ;;  %vm5106_vm10 = vmor %vm2166_vm7, %vm2167_vm8 }
 0x2b0   : > { %v2100_v61 = vmul.f32 %v2099_v44, %v4954_v58  ;;  %v2140_v58 = vand.u32 2147483647, %v4956_v34  ;;  %v2163_v20 = vsub.f32 1.0, %v2162_v4  ;;  %v2150_v27 = vadd.f32 %v5029_v46, %v2149_v33 }
 0x2b1   : > { %v2134_v38 = vmul.f32 %v4979_v29, %v2133_v37  ;;  %2675 = vmatpush.bf16.msra.mxu1 %v3771_v6  ;;  %3782 = vmatpush.bf16.msrb.mxu2 %v3771_v6  ;;  %v5131_v6 = vld [vmem:[%s5693_s2 + $0xa0] sm:$0xf] }
 0x2b2   : > { %v2370_v7 = vperm.slane %v2100_v61, 3  ;;  %vm2141_vm4 = vcmp.eq.f32.partialorder %v2140_v58, 8.507059e+37  ;;  %v2164_v40 = vmul.f32 %v5036_v50, %v2163_v20 }
 0x2b3   : > { %v2135_v28 = vadd.f32 %v4979_v29, %v2134_v38  ;;  %v5126_v38 = vpop.xlane.xlu2 %1850 }
 0x2b4   : > { %v2403_v12 = vsel %vm2388_vm13, %v2370_v7, %v2100_v61  ;;  %v2165_v14 = vadd.f32 %v5036_v50, %v2164_v40  ;;  %v2154_v61 = vsel %vm5099_vm9, %v5029_v46, %v2150_v27  ;;  %v5133_v7 = vpop.xlane.xlu1 %1847  ;;  %3844 = vrcp.f32 %v5126_v38 }
 0x2b5   : > { %2676 = vmatpush.bf16.msra.mxu1 %v3770_v26  ;;  %v2139_v21 = vsel %vm5050_vm1, %v4979_v29, %v2135_v28  ;;  %3783 = vmatpush.bf16.msrb.mxu2 %v3770_v26  ;;  %v238_v26 = vunpack.c.l.bf16 %v5131_v6  ;;  %3846 = vrcp.f32 %v5133_v7  ;;  %vm2211_vm6 = vweird.f32 %v5133_v7 }
 0x2b6   : > { %vm2226_vm8 = vweird.f32 %v5126_v38 }
 0x2b8   : > { %2509 = vmatmul.bf16.gmra.mxu3 %v2424_v11  ;;  %v2400_v11 = vsel %vm2388_vm13, %v2367_v10, %v2055_v57  ;;  %v1409_v57 = vpop.f32.mrf.mxu1  ;;  %v2118_v10 = vsub.f32 1.0, %v2117_v41  ;;  %v2155_v41 = vand.u32 2147483647, %v5013_v25  ;;  %v2158_v25 = vor.u32 1.1754944e-38, %v2157_v31 }
 0x2b9   : > { %v2426_v54 = vpack.c.bf16 %v2400_v11, %v2399_v48  ;;  %v2115_v15 = vmul.f32 %v2114_v3, %v1409_v57  ;;  %v2127_v48 = vand.u32 2147483648, %v4961_v19  ;;  %v2142_v11 = vand.u32 2147483648, %v4956_v34  ;;  %2677 = vmatpush.bf16.msra.mxu1 %v3769_v51  ;;  %3784 = vmatpush.bf16.msrb.mxu2 %v3769_v51 }
 0x2ba   : > { %v2119_v43 = vmul.f32 %v4988_v16, %v2118_v10  ;;  %vm2156_vm5 = vcmp.eq.f32.partialorder %v2155_v41, 8.507059e+37  ;;  %v2185_v51 = vand.u32 2147483647, %v5071_v39 }
 0x2bb   : > { %v2371_v8 = vperm.slane %v2115_v15, 3  ;;  %v2128_v19 = vor.u32 1.1754944e-38, %v2127_v48  ;;  %v2143_v9 = vor.u32 1.1754944e-38, %v2142_v11  ;;  %v2159_v48 = vsel %vm2156_vm5, %v2158_v25, %v2154_v61 }
 0x2bc   : > { %v2120_v55 = vadd.f32 %v4988_v16, %v2119_v43 }
 0x2bd   : > { %v2404_v63 = vsel %vm2388_vm13, %v2371_v8, %v2115_v15  ;;  %v2144_v62 = vsel %vm2141_vm4, %v2143_v9, %v2139_v21  ;;  %2678 = vmatpush.bf16.msra.mxu1 %v3768_v47  ;;  %3785 = vmatpush.bf16.msrb.mxu2 %v3768_v47  ;;  %v2169_v15 = vsel %vm5106_vm10, %v5036_v50, %v2165_v14  ;;  %v2202_v21 = vand.u32 2147483648, %v5073_v22 }
 0x2be   : > { %v2124_v34 = vsel %vm5039_vm0, %v4988_v16, %v2120_v55  ;;  %v2428_v36 = vpack.c.bf16 %v2404_v63, %v2403_v12  ;;  %v2145_v32 = vmul.f32 %v2144_v62, %v4974_v1  ;;  %v3767_v16 = vld [vmem:[%s5693_s2 + $0x60] sm:$0xff]  ;;  %v5092_v1 = vpop.eup %3840  ;;  %v5142_v12 = vperm.slane %v238_v26, 0 }
 0x2bf   : > { %v2129_v60 = vsel %vm2126_vm3, %v2128_v19, %v2124_v34  ;;  %v5096_v0 = vpop.eup %3842  ;;  %v2177_v37 = vmul.f32 %v5092_v1, %v5071_v39  ;;  %vm2182_vm14 = vweird.f32 %v5092_v1  ;;  %v2187_v34 = vand.u32 2147483648, %v5071_v39 }
 0x2c0   : > { %v2130_v29 = vmul.f32 %v2129_v60, %v1432_v24  ;;  %v2373_v18 = vperm.slane %v2145_v32, 3  ;;  %v2192_v10 = vmul.f32 %v5096_v0, %v5073_v22  ;;  %v1478_v50 = vpop.f32.mrf.mxu1  ;;  %v5146_v63 = vpop.eup %3844  ;;  %vm2197_vm0 = vweird.f32 %v5096_v0  ;;  %vm5155_vm1 = vmor %vm2181_vm12, %vm2182_vm14 }
 0x2c1   : > { %2679 = vmatpush.bf16.msra.mxu1 %v3767_v16  ;;  %3786 = vmatpush.bf16.msrb.mxu2 %v3767_v16  ;;  %v2178_v8 = vsub.f32 1.0, %v2177_v37  ;;  %v2160_v56 = vmul.f32 %v2159_v48, %v1478_v50  ;;  %v5150_v19 = vpop.eup %3846  ;;  %v2200_v60 = vand.u32 2147483647, %v5073_v22  ;;  %vm5163_vm3 = vmor %vm2196_vm15, %vm2197_vm0  ;;  %v2222_v13 = vmul.f32 %v5146_v63, %v5126_v38 }
 0x2c2   : > { %v2406_v45 = vsel %vm2388_vm13, %v2373_v18, %v2145_v32  ;;  %v2193_v46 = vsub.f32 1.0, %v2192_v10  ;;  %v2207_v20 = vmul.f32 %v5150_v19, %v5133_v7  ;;  %v2188_v33 = vor.u32 1.1754944e-38, %v2187_v34 }
 0x2c3   : > { %v2179_v58 = vmul.f32 %v5092_v1, %v2178_v8  ;;  %v2374_v2 = vperm.slane %v2160_v56, 3  ;;  %v2203_v40 = vor.u32 1.1754944e-38, %v2202_v21  ;;  %vm2186_vm4 = vcmp.eq.f32.partialorder %v2185_v51, 8.507059e+37  ;;  %v5233_v51 = vpop.xlane.xlu2 %1859 }
 0x2c4   : > { %v2194_v17 = vmul.f32 %v5096_v0, %v2193_v46  ;;  %vm2201_vm2 = vcmp.eq.f32.partialorder %v2200_v60, 8.507059e+37  ;;  %v2208_v31 = vsub.f32 1.0, %v2207_v20  ;;  %v2223_v41 = vsub.f32 1.0, %v2222_v13 }
 0x2c5   : > { %v2180_v9 = vadd.f32 %v5092_v1, %v2179_v58  ;;  %v2407_v39 = vsel %vm2388_vm13, %v2374_v2, %v2160_v56  ;;  %vm2212_vm7 = vweird.f32 %v5150_v19  ;;  %vm2227_vm9 = vweird.f32 %v5146_v63 }
 0x2c6   : > { %v2195_v24 = vadd.f32 %v5096_v0, %v2194_v17  ;;  %v2209_v37 = vmul.f32 %v5150_v19, %v2208_v31  ;;  %v2224_v10 = vmul.f32 %v5146_v63, %v2223_v41  ;;  %v2217_v8 = vand.u32 2147483648, %v5133_v7  ;;  %vm5201_vm10 = vmor %vm2211_vm6, %vm2212_vm7 }
 0x2c7   : > { %v2184_v22 = vsel %vm5155_vm1, %v5092_v1, %v2180_v9  ;;  %v5182_v1 = vpop.xlane.xlu0 %1853  ;;  %v2232_v48 = vand.u32 2147483648, %v5126_v38  ;;  %v2230_v50 = vand.u32 2147483647, %v5126_v38  ;;  %vm5210_vm5 = vmor %vm2226_vm8, %vm2227_vm9  ;;  %vm2271_vm7 = vweird.f32 %v5233_v51 }
 0x2c8   : > { %2514 = vmatmul.bf16.gmra.mxu3 %v2425_v49  ;;  %v2372_v49 = vperm.slane %v2130_v29, 3  ;;  %v1547_v27 = vpop.f32.mrf.mxu1  ;;  %v2225_v46 = vadd.f32 %v5146_v63, %v2224_v10  ;;  %vm2241_vm14 = vweird.f32 %v5182_v1 }
 0x2c9   : > { %v2233_v9 = vor.u32 1.1754944e-38, %v2232_v48  ;;  %vm2231_vm12 = vcmp.eq.f32.partialorder %v2230_v50, 8.507059e+37 }
 0x2ca   : > { %v2405_v3 = vsel %vm2388_vm13, %v2372_v49, %v2130_v29  ;;  %v2199_v49 = vsel %vm5163_vm3, %v5096_v0, %v2195_v24  ;;  %v2229_v21 = vsel %vm5210_vm5, %v5146_v63, %v2225_v46 }
 0x2cb   : > { %v2429_v43 = vpack.c.bf16 %v2406_v45, %v2405_v3  ;;  %v1501_v55 = vpop.f32.mrf.mxu2  ;;  %v2204_v30 = vsel %vm2201_vm2, %v2203_v40, %v2199_v49  ;;  %v5186_v3 = vpop.xlane.xlu1 %1856  ;;  %v2234_v13 = vsel %vm2231_vm12, %v2233_v9, %v2229_v21 }
 0x2cc   : > { %v2205_v44 = vmul.f32 %v2204_v30, %v1547_v27  ;;  %vm2256_vm0 = vweird.f32 %v5186_v3  ;;  %v2247_v27 = vand.u32 2147483648, %v5182_v1  ;;  %v2262_v30 = vand.u32 2147483648, %v5186_v3  ;;  %v5282_v50 = vpop.xlane.xlu2 %1868 }
 0x2cf   : > { %v5235_v60 = vpop.xlane.xlu0 %1862 }
 0x2d0   : > { %vm2286_vm9 = vweird.f32 %v5235_v60 }
 0x2d8   : > { %2519 = vmatmul.bf16.gmra.mxu3 %v2426_v54 }
 0x2db   : > { %v5008_v42 = vpop.f32.mrf.mxu3 }
 0x2e3   : > { %v5046_v54 = vpop.f32.mrf.mxu3 }
 0x2e8   : > { %2524 = vmatmul.bf16.gmra.mxu3 %v2427_v35  ;;  %v2170_v35 = vand.u32 2147483647, %v5016_v53  ;;  %v2173_v53 = vor.u32 1.1754944e-38, %v2172_v23  ;;  %v2189_v23 = vsel %vm2186_vm4, %v2188_v33, %v2184_v22 }
 0x2ea   : > { %vm2171_vm11 = vcmp.eq.f32.partialorder %v2170_v35, 8.507059e+37  ;;  %v2190_v35 = vmul.f32 %v2189_v23, %v5008_v42  ;;  %v2377_v42 = vperm.slane %v2205_v44, 3 }
 0x2eb   : > { %v5081_v5 = vpop.f32.mrf.mxu3  ;;  %v2174_v11 = vsel %vm2171_vm11, %v2173_v53, %v2169_v15  ;;  %v2215_v53 = vand.u32 2147483647, %v5133_v7 }
 0x2ec   : > { %v2175_v52 = vmul.f32 %v2174_v11, %v1501_v55  ;;  %v2376_v61 = vperm.slane %v2190_v35, 3  ;;  %v2410_v38 = vsel %vm2388_vm13, %v2377_v42, %v2205_v44  ;;  %v2260_v44 = vand.u32 2147483647, %v5186_v3 }
 0x2ed   : > { %vm5216_vm11 = vcmp.eq.f32.partialorder %v2215_v53, 8.507059e+37  ;;  %v2263_v42 = vor.u32 1.1754944e-38, %v2262_v30 }
 0x2ee   : > { %v2375_v4 = vperm.slane %v2175_v52, 3  ;;  %v2409_v17 = vsel %vm2388_vm13, %v2376_v61, %v2190_v35  ;;  %v2248_v61 = vor.u32 1.1754944e-38, %v2247_v27  ;;  %vm2261_vm6 = vcmp.eq.f32.partialorder %v2260_v44, 8.507059e+37 }
 0x2ef   : > { %v2431_v24 = vpack.c.bf16 %v2410_v38, %v2409_v17 }
 0x2f0   : > { %v2408_v32 = vsel %vm2388_vm13, %v2375_v4, %v2175_v52  ;;  %v2218_v4 = vor.u32 1.1754944e-38, %v2217_v8  ;;  %v5284_v52 = vpop.xlane.xlu1 %1865 }
 0x2f1   : > { %v2430_v18 = vpack.c.bf16 %v2408_v32, %v2407_v39  ;;  %v2235_v39 = vmul.f32 %v2234_v13, %v5046_v54  ;;  %v2292_v13 = vand.u32 2147483648, %v5235_v60 }
 0x2f3   : > { %v5110_v57 = vpop.f32.mrf.mxu3  ;;  %v2379_v31 = vperm.slane %v2235_v39, 3 }
 0x2f5   : > { %v2412_v53 = vsel %vm2388_vm13, %v2379_v31, %v2235_v39 }
 0x2f8   : > { %2529 = vmatmul.bf16.gmra.mxu3 %v2428_v36 }
 0x308   : > { %2534 = vmatmul.bf16.gmra.mxu3 %v2429_v43  ;;  %v2210_v43 = vadd.f32 %v5150_v19, %v2209_v37  ;;  %v5330_v37 = vpop.xlane.xlu0 %1871 }
 0x30a   : > { %v2214_v2 = vsel %vm5201_vm10, %v5150_v19, %v2210_v43 }
 0x30b   : > { %v2495_v28 = vpop.f32.mrf.mxu3  ;;  %v2219_v47 = vsel %vm5216_vm11, %v2218_v4, %v2214_v2 }
 0x30c   : > { %v2496_v62 = vadd.f32 %v2495_v28, %v5142_v12 }
 0x30e   : > { %3848 = vtanh.f32 %v2496_v62  ;;  %v1570_v62 = vpop.f32.mrf.mxu2 }
 0x313   : > { %v2497_v29 = vpop.f32.mrf.mxu3 }
 0x314   : > { %v2498_v16 = vadd.f32 %v2497_v29, %v5142_v12  ;;  %v3849_v14 = vpop.eup %3848  ;;  %v2220_v29 = vmul.f32 %v2219_v47, %v1570_v62  ;;  %v2277_v47 = vand.u32 2147483648, %v5233_v51 }
 0x316   : > { %3850 = vtanh.f32 %v2498_v16 }
 0x317   : > { %3852 = vrcp.f32 %v5182_v1 }
 0x318   : > { %2539 = vmatmul.bf16.gmra.mxu3 %v2430_v18  ;;  %3854 = vrcp.f32 %v5186_v3  ;;  %v2378_v18 = vperm.slane %v2220_v29, 3 }
 0x31b   : > { %v2500_v0 = vpop.f32.mrf.mxu3 }
 0x31c   : > { %v3851_v45 = vpop.eup %3850  ;;  %v2501_v55 = vadd.f32 %v2500_v0, %v5142_v12 }
 0x31d   : > { %v2607_v25 = vpack.c.bf16 %v3851_v45, %v3849_v14  ;;  %v5196_v15 = vpop.eup %3852  ;;  %v2245_v14 = vand.u32 2147483647, %v5182_v1 }
 0x31e   : > { %v5208_v56 = vpop.eup %3854  ;;  %v2237_v7 = vmul.f32 %v5196_v15, %v5182_v1  ;;  %3856 = vtanh.f32 %v2501_v55  ;;  %vm2242_vm15 = vweird.f32 %v5196_v15  ;;  %v2411_v1 = vsel %vm2388_vm13, %v2378_v18, %v2220_v29 }
 0x31f   : > { %2680 = vmatmul.bf16.vlgmr.msra.gmra.mxu1 %v2607_v25  ;;  %v2252_v36 = vmul.f32 %v5208_v56, %v5186_v3  ;;  %vm2257_vm1 = vweird.f32 %v5208_v56  ;;  %vm5255_vm3 = vmor %vm2241_vm14, %vm2242_vm15  ;;  %vm2246_vm2 = vcmp.eq.f32.partialorder %v2245_v14, 8.507059e+37  ;;  %v2432_v11 = vpack.c.bf16 %v2412_v53, %v2411_v1 }
 0x320   : > { %v2238_v19 = vsub.f32 1.0, %v2237_v7  ;;  %vm5265_vm4 = vmor %vm2256_vm0, %vm2257_vm1  ;;  %v1616_v7 = vpop.f32.mrf.mxu1  ;;  %v2290_v29 = vand.u32 2147483647, %v5235_v60  ;;  %v2293_v18 = vor.u32 1.1754944e-38, %v2292_v13  ;;  %vm2316_vm15 = vweird.f32 %v5282_v50 }
 0x321   : > { %v2253_v63 = vsub.f32 1.0, %v2252_v36  ;;  %v2275_v36 = vand.u32 2147483647, %v5233_v51  ;;  %vm2301_vm1 = vweird.f32 %v5284_v52 }
 0x322   : > { %v2239_v33 = vmul.f32 %v5196_v15, %v2238_v19  ;;  %vm2291_vm14 = vcmp.eq.f32.partialorder %v2290_v29, 8.507059e+37 }
 0x323   : > { %v2502_v58 = vpop.f32.mrf.mxu3  ;;  %v2254_v40 = vmul.f32 %v5208_v56, %v2253_v63  ;;  %vm2276_vm12 = vcmp.eq.f32.partialorder %v2275_v36, 8.507059e+37 }
 0x324   : > { %v2503_v34 = vadd.f32 %v2502_v58, %v5142_v12  ;;  %v3857_v20 = vpop.eup %3856  ;;  %v2240_v23 = vadd.f32 %v5196_v15, %v2239_v33  ;;  %v1639_v58 = vpop.f32.mrf.mxu2 }
 0x325   : > { %v2255_v35 = vadd.f32 %v5208_v56, %v2254_v40 }
 0x326   : > { %3858 = vtanh.f32 %v2503_v34  ;;  %v2244_v3 = vsel %vm5255_vm3, %v5196_v15, %v2240_v23 }
 0x327   : > { %3860 = vrcp.f32 %v5233_v51  ;;  %v2259_v8 = vsel %vm5265_vm4, %v5208_v56, %v2255_v35  ;;  %v2249_v46 = vsel %vm2246_vm2, %v2248_v61, %v2244_v3 }
 0x328   : > { %2544 = vmatmul.bf16.gmra.mxu3 %v2431_v24  ;;  %3862 = vrcp.f32 %v5235_v60  ;;  %v2264_v55 = vsel %vm2261_vm6, %v2263_v42, %v2259_v8  ;;  %v2250_v38 = vmul.f32 %v2249_v46, %v1616_v7  ;;  %v1685_v14 = vpop.f32.mrf.mxu1  ;;  %v2305_v46 = vand.u32 2147483647, %v5284_v52 }
 0x329   : > { %v2265_v56 = vmul.f32 %v2264_v55, %v1639_v58  ;;  %v2307_v55 = vand.u32 2147483648, %v5284_v52 }
 0x32a   : > { %v2380_v24 = vperm.slane %v2250_v38, 3 }
 0x32b   : > { %v2505_v32 = vpop.f32.mrf.mxu3  ;;  %v2381_v19 = vperm.slane %v2265_v56, 3 }
 0x32c   : > { %v3859_v22 = vpop.eup %3858  ;;  %v2506_v0 = vadd.f32 %v2505_v32, %v5142_v12  ;;  %v2413_v40 = vsel %vm2388_vm13, %v2380_v24, %v2250_v38 }
 0x32d   : > { %v2608_v16 = vpack.c.bf16 %v3859_v22, %v3857_v20  ;;  %v5246_v49 = vpop.eup %3860 }
 0x32e   : > { %v5250_v54 = vpop.eup %3862  ;;  %v2267_v45 = vmul.f32 %v5246_v49, %v5233_v51  ;;  %3864 = vtanh.f32 %v2506_v0  ;;  %vm2272_vm8 = vweird.f32 %v5246_v49  ;;  %v5328_v0 = vpop.xlane.xlu1 %1874 }
 0x32f   : > { %2685 = vmatmul.bf16.gmra.mxu1 %v2608_v16  ;;  %v2282_v10 = vmul.f32 %v5250_v54, %v5235_v60  ;;  %vm2287_vm10 = vweird.f32 %v5250_v54  ;;  %vm5296_vm5 = vmor %vm2271_vm7, %vm2272_vm8  ;;  %v2414_v60 = vsel %vm2388_vm13, %v2381_v19, %v2265_v56  ;;  %v2278_v16 = vor.u32 1.1754944e-38, %v2277_v47  ;;  %v1708_v47 = vpop.f32.mrf.mxu2 }
 0x330   : > { %v2268_v48 = vsub.f32 1.0, %v2267_v45  ;;  %vm5309_vm11 = vmor %vm2286_vm9, %vm2287_vm10  ;;  %v2433_v30 = vpack.c.bf16 %v2414_v60, %v2413_v40  ;;  %vm2306_vm7 = vcmp.eq.f32.partialorder %v2305_v46, 8.507059e+37  ;;  %vm2331_vm8 = vweird.f32 %v5330_v37 }
 0x331   : > { %v2283_v15 = vsub.f32 1.0, %v2282_v10  ;;  %vm2346_vm10 = vweird.f32 %v5328_v0 }
 0x332   : > { %v2269_v28 = vmul.f32 %v5246_v49, %v2268_v48 }
 0x333   : > { %v2507_v25 = vpop.f32.mrf.mxu3  ;;  %v2284_v9 = vmul.f32 %v5250_v54, %v2283_v15 }
 0x334   : > { %v2508_v43 = vadd.f32 %v2507_v25, %v5142_v12  ;;  %v3865_v17 = vpop.eup %3864  ;;  %v2270_v21 = vadd.f32 %v5246_v49, %v2269_v28 }
 0x335   : > { %v2285_v20 = vadd.f32 %v5250_v54, %v2284_v9  ;;  %v2308_v9 = vor.u32 1.1754944e-38, %v2307_v55 }
 0x336   : > { %3866 = vtanh.f32 %v2508_v43  ;;  %v2274_v51 = vsel %vm5296_vm5, %v5246_v49, %v2270_v21  ;;  %v2322_v43 = vand.u32 2147483648, %v5282_v50 }
 0x337   : > { %3868 = vrcp.f32 %v5282_v50  ;;  %v2289_v27 = vsel %vm5309_vm11, %v5250_v54, %v2285_v20  ;;  %v2279_v41 = vsel %vm2276_vm12, %v2278_v16, %v2274_v51 }
 0x338   : > { %2549 = vmatmul.bf16.gmra.mxu3 %v2432_v11  ;;  %3870 = vrcp.f32 %v5284_v52  ;;  %v2294_v35 = vsel %vm2291_vm14, %v2293_v18, %v2289_v27  ;;  %v2280_v54 = vmul.f32 %v2279_v41, %v5081_v5  ;;  %v2320_v5 = vand.u32 2147483647, %v5282_v50 }
 0x339   : > { %v2295_v25 = vmul.f32 %v2294_v35, %v1685_v14  ;;  %v2323_v38 = vor.u32 1.1754944e-38, %v2322_v43  ;;  %v2350_v14 = vand.u32 2147483647, %v5328_v0 }
 0x33a   : > { %v2382_v8 = vperm.slane %v2280_v54, 3  ;;  %vm2321_vm6 = vcmp.eq.f32.partialorder %v2320_v5, 8.507059e+37 }
 0x33b   : > { %v2510_v2 = vpop.f32.mrf.mxu3  ;;  %v2383_v48 = vperm.slane %v2295_v25, 3 }
 0x33c   : > { %v3867_v4 = vpop.eup %3866  ;;  %v2511_v39 = vadd.f32 %v2510_v2, %v5142_v12 }
 0x33d   : > { %v2609_v34 = vpack.c.bf16 %v3867_v4, %v3865_v17  ;;  %v5302_v63 = vpop.eup %3868  ;;  %v2416_v2 = vsel %vm2388_vm13, %v2383_v48, %v2295_v25 }
 0x33e   : > { %v5307_v32 = vpop.eup %3870  ;;  %v2312_v31 = vmul.f32 %v5302_v63, %v5282_v50  ;;  %3872 = vtanh.f32 %v2511_v39  ;;  %vm2317_vm0 = vweird.f32 %v5302_v63 }
 0x33f   : > { %2690 = vmatmul.bf16.gmra.mxu1 %v2609_v34  ;;  %v2297_v49 = vmul.f32 %v5307_v32, %v5284_v52  ;;  %vm2302_vm3 = vweird.f32 %v5307_v32  ;;  %vm5348_vm4 = vmor %vm2316_vm15, %vm2317_vm0  ;;  %v2415_v52 = vsel %vm2388_vm13, %v2382_v8, %v2280_v54  ;;  %vm2351_vm15 = vcmp.eq.f32.partialorder %v2350_v14, 8.507059e+37 }
 0x340   : > { %v2313_v44 = vsub.f32 1.0, %v2312_v31  ;;  %vm5356_vm2 = vmor %vm2301_vm1, %vm2302_vm3  ;;  %v2434_v19 = vpack.c.bf16 %v2416_v2, %v2415_v52  ;;  %v2337_v31 = vand.u32 2147483648, %v5330_v37  ;;  %vm2761_vm1 = vcmp.eq.s32.totalorder %v4168_v59, 7 }
 0x341   : > { %v2298_v45 = vsub.f32 1.0, %v2297_v49 }
 0x342   : > { %v2314_v3 = vmul.f32 %v5302_v63, %v2313_v44 }
 0x343   : > { %v2512_v33 = vpop.f32.mrf.mxu3  ;;  %v2299_v61 = vmul.f32 %v5307_v32, %v2298_v45 }
 0x344   : > { %v2513_v23 = vadd.f32 %v2512_v33, %v5142_v12  ;;  %v3873_v10 = vpop.eup %3872  ;;  %v2315_v11 = vadd.f32 %v5302_v63, %v2314_v3  ;;  %v1754_v3 = vpop.f32.mrf.mxu1 }
 0x345   : > { %v2300_v50 = vadd.f32 %v5307_v32, %v2299_v61 }
 0x346   : > { %3874 = vtanh.f32 %v2513_v23  ;;  %v2319_v4 = vsel %vm5348_vm4, %v5302_v63, %v2315_v11  ;;  %v2335_v23 = vand.u32 2147483647, %v5330_v37 }
 0x347   : > { %3876 = vrcp.f32 %v5328_v0  ;;  %v2304_v21 = vsel %vm5356_vm2, %v5307_v32, %v2300_v50  ;;  %v2324_v62 = vsel %vm2321_vm6, %v2323_v38, %v2319_v4 }
 0x348   : > { %2554 = vmatmul.bf16.gmra.mxu3 %v2433_v30  ;;  %3878 = vrcp.f32 %v5330_v37  ;;  %v2309_v13 = vsel %vm2306_vm7, %v2308_v9, %v2304_v21  ;;  %v2325_v39 = vmul.f32 %v2324_v62, %v5110_v57  ;;  %v2352_v57 = vand.u32 2147483648, %v5328_v0 }
 0x349   : > { %v2310_v22 = vmul.f32 %v2309_v13, %v1708_v47  ;;  %vm2336_vm14 = vcmp.eq.f32.partialorder %v2335_v23, 8.507059e+37 }
 0x34a   : > { %v2385_v16 = vperm.slane %v2325_v39, 3  ;;  %v2353_v25 = vor.u32 1.1754944e-38, %v2352_v57 }
 0x34b   : > { %v2515_v1 = vpop.f32.mrf.mxu3  ;;  %v2384_v18 = vperm.slane %v2310_v22, 3 }
 0x34c   : > { %v3875_v53 = vpop.eup %3874  ;;  %v2516_v28 = vadd.f32 %v2515_v1, %v5142_v12 }
 0x34d   : > { %v2610_v42 = vpack.c.bf16 %v3875_v53, %v3873_v10  ;;  %v5346_v15 = vpop.eup %3876  ;;  %v2417_v45 = vsel %vm2388_vm13, %v2384_v18, %v2310_v22  ;;  %v2338_v10 = vor.u32 1.1754944e-38, %v2337_v31 }
 0x34e   : > { %v5354_v58 = vpop.eup %3878  ;;  %3880 = vtanh.f32 %v2516_v28  ;;  %v2342_v36 = vmul.f32 %v5346_v15, %v5328_v0  ;;  %vm2347_vm5 = vweird.f32 %v5346_v15 }
 0x34f   : > { %2695 = vmatmul.bf16.gmra.mxu1 %v2610_v42  ;;  %v2327_v24 = vmul.f32 %v5354_v58, %v5330_v37  ;;  %vm2332_vm9 = vweird.f32 %v5354_v58  ;;  %vm5393_vm12 = vmor %vm2346_vm10, %vm2347_vm5  ;;  %v2418_v37 = vsel %vm2388_vm13, %v2385_v16, %v2325_v39  ;;  %v1777_v42 = vpop.f32.mrf.mxu2 }
 0x350   : > { %v2343_v63 = vsub.f32 1.0, %v2342_v36  ;;  %vm5385_vm11 = vmor %vm2331_vm8, %vm2332_vm9  ;;  %v2435_v53 = vpack.c.bf16 %v2418_v37, %v2417_v45 }
 0x351   : > { %v2328_v20 = vsub.f32 1.0, %v2327_v24 }
 0x352   : > { %v2344_v33 = vmul.f32 %v5346_v15, %v2343_v63 }
 0x353   : > { %v2517_v56 = vpop.f32.mrf.mxu3  ;;  %v2329_v40 = vmul.f32 %v5354_v58, %v2328_v20 }
 0x354   : > { %v2518_v34 = vadd.f32 %v2517_v56, %v5142_v12  ;;  %v3881_v29 = vpop.eup %3880  ;;  %v2345_v41 = vadd.f32 %v5346_v15, %v2344_v33 }
 0x355   : > { %v2330_v30 = vadd.f32 %v5354_v58, %v2329_v40 }
 0x356   : > { %3882 = vtanh.f32 %v2518_v34  ;;  %v2349_v1 = vsel %vm5393_vm12, %v5346_v15, %v2345_v41 }
 0x357   : > { %v2334_v0 = vsel %vm5385_vm11, %v5354_v58, %v2330_v30  ;;  %v2354_v43 = vsel %vm2351_vm15, %v2353_v25, %v2349_v1 }
 0x358   : > { %2559 = vmatmul.bf16.gmra.mxu3 %v2434_v19  ;;  %v2339_v61 = vsel %vm2336_vm14, %v2338_v10, %v2334_v0  ;;  %v2355_v48 = vmul.f32 %v2354_v43, %v1777_v42 }
 0x359   : > { %v2340_v8 = vmul.f32 %v2339_v61, %v1754_v3 }
 0x35a   : > { %v2387_v50 = vperm.slane %v2355_v48, 3 }
 0x35b   : > { %v2520_v32 = vpop.f32.mrf.mxu3  ;;  %v2386_v7 = vperm.slane %v2340_v8, 3 }
 0x35c   : > { %v3883_v51 = vpop.eup %3882  ;;  %v2521_v49 = vadd.f32 %v2520_v32, %v5142_v12  ;;  %v2420_v17 = vsel %vm2388_vm13, %v2387_v50, %v2355_v48 }
 0x35d   : > { %v2611_v60 = vpack.c.bf16 %v3883_v51, %v3881_v29  ;;  %v2419_v58 = vsel %vm2388_vm13, %v2386_v7, %v2340_v8  ;;  %v5420_v29 = vperm.slane %v238_v26, 1 }
 0x35e   : > { %3884 = vtanh.f32 %v2521_v49  ;;  %v2436_v56 = vpack.c.bf16 %v2420_v17, %v2419_v58 }
 0x35f   : > { %2700 = vmatmul.bf16.gmra.mxu1 %v2611_v60 }
 0x363   : > { %v2522_v44 = vpop.f32.mrf.mxu3 }
 0x364   : > { %v2523_v54 = vadd.f32 %v2522_v44, %v5142_v12  ;;  %v3885_v5 = vpop.eup %3884 }
 0x366   : > { %3886 = vtanh.f32 %v2523_v54 }
 0x368   : > { %2564 = vmatmul.bf16.gmra.mxu3 %v2435_v53 }
 0x36b   : > { %v2525_v11 = vpop.f32.mrf.mxu3 }
 0x36c   : > { %v3887_v46 = vpop.eup %3886  ;;  %v2526_v28 = vadd.f32 %v2525_v11, %v5142_v12 }
 0x36d   : > { %v2612_v55 = vpack.c.bf16 %v3887_v46, %v3885_v5 }
 0x36e   : > { %3888 = vtanh.f32 %v2526_v28 }
 0x36f   : > { %2705 = vmatmul.bf16.gmra.mxu1 %v2612_v55 }
 0x373   : > { %v2527_v15 = vpop.f32.mrf.mxu3 }
 0x374   : > { %v2528_v38 = vadd.f32 %v2527_v15, %v5142_v12  ;;  %v3889_v52 = vpop.eup %3888 }
 0x376   : > { %3890 = vtanh.f32 %v2528_v38 }
 0x378   : > { %2569 = vmatmul.bf16.gmra.mxu3 %v2436_v56 }
 0x37b   : > { %v2530_v2 = vpop.f32.mrf.mxu3 }
 0x37c   : > { %v3891_v4 = vpop.eup %3890  ;;  %v2531_v34 = vadd.f32 %v2530_v2, %v5142_v12 }
 0x37d   : > { %v2613_v9 = vpack.c.bf16 %v3891_v4, %v3889_v52 }
 0x37e   : > { %3892 = vtanh.f32 %v2531_v34 }
 0x37f   : > { %2710 = vmatmul.bf16.gmra.mxu1 %v2613_v9 }
 0x383   : > { %v2532_v21 = vpop.f32.mrf.mxu3 }
 0x384   : > { %v2533_v36 = vadd.f32 %v2532_v21, %v5142_v12  ;;  %v3893_v24 = vpop.eup %3892 }
 0x386   : > { %3894 = vtanh.f32 %v2533_v36 }
 0x38b   : > { %v2535_v19 = vpop.f32.mrf.mxu3 }
 0x38c   : > { %v3895_v62 = vpop.eup %3894  ;;  %v2536_v13 = vadd.f32 %v2535_v19, %v5142_v12 }
 0x38d   : > { %v2614_v47 = vpack.c.bf16 %v3895_v62, %v3893_v24 }
 0x38e   : > { %3896 = vtanh.f32 %v2536_v13 }
 0x38f   : > { %2715 = vmatmul.bf16.gmra.mxu1 %v2614_v47 }
 0x393   : > { %v2537_v63 = vpop.f32.mrf.mxu3 }
 0x394   : > { %v2538_v20 = vadd.f32 %v2537_v63, %v5142_v12  ;;  %v3897_v39 = vpop.eup %3896 }
 0x396   : > { %3898 = vtanh.f32 %v2538_v20 }
 0x39b   : > { %v2540_v22 = vpop.f32.mrf.mxu3 }
 0x39c   : > { %v3899_v32 = vpop.eup %3898  ;;  %v2681_v51 = vpop.f32.mrf.mxu1  ;;  %v2541_v16 = vadd.f32 %v2540_v22, %v5142_v12 }
 0x39d   : > { %v2682_v33 = vadd.f32 %v2681_v51, %v5420_v29  ;;  %v2615_v40 = vpack.c.bf16 %v3899_v32, %v3897_v39 }
 0x39f   : > { %v3721_v60 = vmul.f32 -1.442695, %v2682_v33  ;;  %2720 = vmatmul.bf16.gmra.mxu1 %v2615_v40 }
 0x3a1   : > { %3900 = vpow2.f32 %v3721_v60 }
 0x3a2   : > { %3902 = vtanh.f32 %v2541_v16 }
 0x3a3   : > { %v2542_v18 = vpop.f32.mrf.mxu3 }
 0x3a4   : > { %v2543_v57 = vadd.f32 %v2542_v18, %v5142_v12  ;;  %v2683_v31 = vpop.f32.mrf.mxu1 }
 0x3a5   : > { %v5426_v6 = vadd.f32 %v2683_v31, %v5420_v29 }
 0x3a6   : > { %3904 = vtanh.f32 %v2543_v57 }
 0x3a7   : > { %v3901_v26 = vpop.eup %3900  ;;  %v3722_v23 = vmul.f32 -1.442695, %v5426_v6 }
 0x3a8   : > { %v2858_v27 = vadd.f32 1.0, %v3901_v26  ;;  %v3903_v49 = vpop.eup %3902 }
 0x3a9   : > { %3906 = vpow2.f32 %v3722_v23 }
 0x3aa   : > { %3908 = vrcp.f32 %v2858_v27  ;;  %v2899_v3 = vand.u32 2147483647, %v2858_v27  ;;  %v2901_v61 = vand.u32 2147483648, %v2858_v27  ;;  %vm2895_vm0 = vweird.f32 %v2858_v27 }
 0x3ab   : > { %v2545_v30 = vpop.f32.mrf.mxu3 }
 0x3ac   : > { %v3905_v41 = vpop.eup %3904  ;;  %v2686_v14 = vpop.f32.mrf.mxu1  ;;  %v2546_v0 = vadd.f32 %v2545_v30, %v5142_v12  ;;  %v2902_v7 = vor.u32 1.1754944e-38, %v2901_v61  ;;  %vm2900_vm4 = vcmp.eq.f32.partialorder %v2899_v3, 8.507059e+37 }
 0x3ad   : > { %v5430_v35 = vadd.f32 %v2686_v14, %v5420_v29  ;;  %v2616_v44 = vpack.c.bf16 %v3905_v41, %v3903_v49 }
 0x3af   : > { %v3907_v45 = vpop.eup %3906  ;;  %v3723_v37 = vmul.f32 -1.442695, %v5430_v35  ;;  %2725 = vmatmul.bf16.gmra.mxu1 %v2616_v44 }
 0x3b0   : > { %v3909_v10 = vpop.eup %3908  ;;  %v2859_v54 = vadd.f32 1.0, %v3907_v45 }
 0x3b1   : > { %v2891_v25 = vmul.f32 %v3909_v10, %v2858_v27  ;;  %3910 = vpow2.f32 %v3723_v37  ;;  %vm2896_vm13 = vweird.f32 %v3909_v10 }
 0x3b2   : > { %3912 = vrcp.f32 %v2859_v54  ;;  %vm2897_vm3 = vmor %vm2895_vm0, %vm2896_vm13  ;;  %v2914_v4 = vand.u32 2147483647, %v2859_v54  ;;  %v2916_v9 = vand.u32 2147483648, %v2859_v54  ;;  %vm2910_vm6 = vweird.f32 %v2859_v54 }
 0x3b3   : > { %v2892_v1 = vsub.f32 1.0, %v2891_v25  ;;  %v2547_v53 = vpop.f32.mrf.mxu3  ;;  %3914 = vtanh.f32 %v2546_v0 }
 0x3b4   : > { %v2548_v42 = vadd.f32 %v2547_v53, %v5142_v12  ;;  %v2688_v43 = vpop.f32.mrf.mxu1  ;;  %vm2915_vm8 = vcmp.eq.f32.partialorder %v2914_v4, 8.507059e+37  ;;  %v2917_v63 = vor.u32 1.1754944e-38, %v2916_v9 }
 0x3b5   : > { %v2893_v5 = vmul.f32 %v3909_v10, %v2892_v1  ;;  %v5436_v8 = vadd.f32 %v2688_v43, %v5420_v29 }
 0x3b6   : > { %3916 = vtanh.f32 %v2548_v42 }
 0x3b7   : > { %v3911_v48 = vpop.eup %3910  ;;  %v2894_v11 = vadd.f32 %v3909_v10, %v2893_v5  ;;  %v3724_v46 = vmul.f32 -1.442695, %v5436_v8 }
 0x3b8   : > { %v3913_v55 = vpop.eup %3912  ;;  %v2860_v50 = vadd.f32 1.0, %v3911_v48 }
 0x3b9   : > { %v2898_v28 = vsel %vm2897_vm3, %v3909_v10, %v2894_v11  ;;  %v2906_v15 = vmul.f32 %v3913_v55, %v2859_v54  ;;  %3918 = vpow2.f32 %v3724_v46  ;;  %v3915_v17 = vpop.eup %3914  ;;  %vm2911_vm2 = vweird.f32 %v3913_v55 }
 0x3ba   : > { %v2903_v58 = vsel %vm2900_vm4, %v2902_v7, %v2898_v28  ;;  %3920 = vrcp.f32 %v2860_v50  ;;  %vm2912_vm7 = vmor %vm2910_vm6, %vm2911_vm2  ;;  %v2929_v16 = vand.u32 2147483647, %v2860_v50  ;;  %v2931_v18 = vand.u32 2147483648, %v2860_v50 }
 0x3bb   : > { %v3370_v38 = vsel %vm2761_vm1, %v2903_v58, %v2682_v33  ;;  %v2907_v56 = vsub.f32 1.0, %v2906_v15  ;;  %v2550_v52 = vpop.f32.mrf.mxu3  ;;  %vm2925_vm10 = vweird.f32 %v2860_v50 }
 0x3bc   : > { %v3917_v2 = vpop.eup %3916  ;;  %3402 = vst [vmem:[%s5445_s18] sm:$0xff] %v3370_v38  ;;  %v2691_v34 = vpop.f32.mrf.mxu1  ;;  %v2551_v32 = vadd.f32 %v2550_v52, %v5142_v12  ;;  %v2932_v41 = vor.u32 1.1754944e-38, %v2931_v18  ;;  %vm2930_vm11 = vcmp.eq.f32.partialorder %v2929_v16, 8.507059e+37 }
 0x3bd   : > { %v2908_v21 = vmul.f32 %v3913_v55, %v2907_v56  ;;  %v5451_v36 = vadd.f32 %v2691_v34, %v5420_v29  ;;  %v2617_v24 = vpack.c.bf16 %v3917_v2, %v3915_v17 }
 0x3bf   : > { %v3919_v19 = vpop.eup %3918  ;;  %v2909_v62 = vadd.f32 %v3913_v55, %v2908_v21  ;;  %v3725_v47 = vmul.f32 -1.442695, %v5451_v36  ;;  %2730 = vmatmul.bf16.gmra.mxu1 %v2617_v24 }
 0x3c0   : > { %v3921_v13 = vpop.eup %3920  ;;  %v2861_v20 = vadd.f32 1.0, %v3919_v19 }
 0x3c1   : > { %v2913_v39 = vsel %vm2912_vm7, %v3913_v55, %v2909_v62  ;;  %v2921_v22 = vmul.f32 %v3921_v13, %v2860_v50  ;;  %3922 = vpow2.f32 %v3725_v47  ;;  %vm2926_vm9 = vweird.f32 %v3921_v13 }
 0x3c2   : > { %v2918_v51 = vsel %vm2915_vm8, %v2917_v63, %v2913_v39  ;;  %3924 = vrcp.f32 %v2861_v20  ;;  %vm2927_vm5 = vmor %vm2925_vm10, %vm2926_vm9  ;;  %v2944_v53 = vand.u32 2147483647, %v2861_v20  ;;  %v2946_v3 = vand.u32 2147483648, %v2861_v20 }
 0x3c3   : > { %v3371_v33 = vsel %vm2761_vm1, %v2918_v51, %v5426_v6  ;;  %v2922_v40 = vsub.f32 1.0, %v2921_v22  ;;  %v2552_v60 = vpop.f32.mrf.mxu3  ;;  %3926 = vtanh.f32 %v2551_v32  ;;  %vm2940_vm14 = vweird.f32 %v2861_v20 }
 0x3c4   : > { %3403 = vst [vmem:[%s5445_s18 + $0x8] sm:$0xff] %v3371_v33  ;;  %v2553_v57 = vadd.f32 %v2552_v60, %v5142_v12  ;;  %v2693_v31 = vpop.f32.mrf.mxu1  ;;  %vm2945_vm13 = vcmp.eq.f32.partialorder %v2944_v53, 8.507059e+37  ;;  %v2947_v55 = vor.u32 1.1754944e-38, %v2946_v3 }
 0x3c5   : > { %v2923_v26 = vmul.f32 %v3921_v13, %v2922_v40  ;;  %v5461_v23 = vadd.f32 %v2693_v31, %v5420_v29 }
 0x3c6   : > { %3928 = vtanh.f32 %v2553_v57 }
 0x3c7   : > { %v3923_v27 = vpop.eup %3922  ;;  %v2924_v49 = vadd.f32 %v3921_v13, %v2923_v26  ;;  %v3726_v6 = vmul.f32 -1.442695, %v5461_v23 }
 0x3c8   : > { %v3925_v30 = vpop.eup %3924  ;;  %v2862_v14 = vadd.f32 1.0, %v3923_v27 }
 0x3c9   : > { %v2928_v44 = vsel %vm2927_vm5, %v3921_v13, %v2924_v49  ;;  %v2936_v45 = vmul.f32 %v3925_v30, %v2861_v20  ;;  %3930 = vpow2.f32 %v3726_v6  ;;  %v3927_v10 = vpop.eup %3926  ;;  %vm2941_vm12 = vweird.f32 %v3925_v30 }
 0x3ca   : > { %v2933_v37 = vsel %vm2930_vm11, %v2932_v41, %v2928_v44  ;;  %3932 = vrcp.f32 %v2862_v14  ;;  %vm2942_vm15 = vmor %vm2940_vm14, %vm2941_vm12  ;;  %v2959_v52 = vand.u32 2147483647, %v2862_v14  ;;  %v2961_v2 = vand.u32 2147483648, %v2862_v14 }
 0x3cb   : > { %v3372_v54 = vsel %vm2761_vm1, %v2933_v37, %v5430_v35  ;;  %v2937_v25 = vsub.f32 1.0, %v2936_v45  ;;  %v2555_v0 = vpop.f32.mrf.mxu3  ;;  %vm2955_vm3 = vweird.f32 %v2862_v14 }
 0x3cc   : > { %v3929_v1 = vpop.eup %3928  ;;  %3404 = vst [vmem:[%s5445_s18 + $0x10] sm:$0xff] %v3372_v54  ;;  %v2696_v61 = vpop.f32.mrf.mxu1  ;;  %v2556_v15 = vadd.f32 %v2555_v0, %v5142_v12  ;;  %v2962_v47 = vor.u32 1.1754944e-38, %v2961_v2  ;;  %vm2960_vm2 = vcmp.eq.f32.partialorder %v2959_v52, 8.507059e+37 }
 0x3cd   : > { %v2938_v42 = vmul.f32 %v3925_v30, %v2937_v25  ;;  %v5469_v43 = vadd.f32 %v2696_v61, %v5420_v29  ;;  %v2618_v5 = vpack.c.bf16 %v3929_v1, %v3927_v10 }
 0x3cf   : > { %v3931_v48 = vpop.eup %3930  ;;  %v2939_v11 = vadd.f32 %v3925_v30, %v2938_v42  ;;  %v3727_v46 = vmul.f32 -1.442695, %v5469_v43  ;;  %2735 = vmatmul.bf16.gmra.mxu1 %v2618_v5 }
 0x3d0   : > { %v3933_v35 = vpop.eup %3932  ;;  %v2863_v7 = vadd.f32 1.0, %v3931_v48 }
 0x3d1   : > { %v2943_v50 = vsel %vm2942_vm15, %v3925_v30, %v2939_v11  ;;  %v2951_v28 = vmul.f32 %v3933_v35, %v2862_v14  ;;  %3934 = vpow2.f32 %v3727_v46  ;;  %vm2956_vm0 = vweird.f32 %v3933_v35 }
 0x3d2   : > { %v2948_v58 = vsel %vm2945_vm13, %v2947_v55, %v2943_v50  ;;  %3936 = vrcp.f32 %v2863_v7  ;;  %vm2957_vm4 = vmor %vm2955_vm3, %vm2956_vm0  ;;  %v2974_v60 = vand.u32 2147483647, %v2863_v7  ;;  %v2976_v16 = vand.u32 2147483648, %v2863_v7 }
 0x3d3   : > { %v3373_v17 = vsel %vm2761_vm1, %v2948_v58, %v5436_v8  ;;  %v2952_v38 = vsub.f32 1.0, %v2951_v28  ;;  %v2557_v56 = vpop.f32.mrf.mxu3  ;;  %3938 = vtanh.f32 %v2556_v15  ;;  %vm2970_vm7 = vweird.f32 %v2863_v7 }
 0x3d4   : > { %3405 = vst [vmem:[%s5445_s18 + $0x18] sm:$0xff] %v3373_v17  ;;  %v2558_v4 = vadd.f32 %v2557_v56, %v5142_v12  ;;  %v2698_v9 = vpop.f32.mrf.mxu1  ;;  %vm2975_vm9 = vcmp.eq.f32.partialorder %v2974_v60, 8.507059e+37  ;;  %v2977_v30 = vor.u32 1.1754944e-38, %v2976_v16 }
 0x3d5   : > { %v2953_v34 = vmul.f32 %v3933_v35, %v2952_v38  ;;  %v5479_v21 = vadd.f32 %v2698_v9, %v5420_v29 }
 0x3d6   : > { %3940 = vtanh.f32 %v2558_v4 }
 0x3d7   : > { %v3935_v24 = vpop.eup %3934  ;;  %v2954_v19 = vadd.f32 %v3933_v35, %v2953_v34  ;;  %v3728_v8 = vmul.f32 -1.442695, %v5479_v21 }
 0x3d8   : > { %v3937_v62 = vpop.eup %3936  ;;  %v2864_v13 = vadd.f32 1.0, %v3935_v24 }
 0x3d9   : > { %v2958_v63 = vsel %vm2957_vm4, %v3933_v35, %v2954_v19  ;;  %v2966_v20 = vmul.f32 %v3937_v62, %v2863_v7  ;;  %3942 = vpow2.f32 %v3728_v8  ;;  %v3939_v22 = vpop.eup %3938  ;;  %vm2971_vm6 = vweird.f32 %v3937_v62 }
 0x3da   : > { %v2963_v39 = vsel %vm2960_vm2, %v2962_v47, %v2958_v63  ;;  %3944 = vrcp.f32 %v2864_v13  ;;  %vm2972_vm8 = vmor %vm2970_vm7, %vm2971_vm6  ;;  %v2989_v0 = vand.u32 2147483647, %v2864_v13  ;;  %v2991_v1 = vand.u32 2147483648, %v2864_v13 }
 0x3db   : > { %v3374_v32 = vsel %vm2761_vm1, %v2963_v39, %v5451_v36  ;;  %v2967_v51 = vsub.f32 1.0, %v2966_v20  ;;  %v2560_v33 = vpop.f32.mrf.mxu3  ;;  %vm2985_vm5 = vweird.f32 %v2864_v13 }
 0x3dc   : > { %v3941_v40 = vpop.eup %3940  ;;  %3406 = vst [vmem:[%s5445_s18 + $0x20] sm:$0xff] %v3374_v32  ;;  %v2701_v18 = vpop.f32.mrf.mxu1  ;;  %v2561_v45 = vadd.f32 %v2560_v33, %v5142_v12  ;;  %v2992_v46 = vor.u32 1.1754944e-38, %v2991_v1  ;;  %vm2990_vm12 = vcmp.eq.f32.partialorder %v2989_v0, 8.507059e+37 }
 0x3dd   : > { %v2968_v57 = vmul.f32 %v3937_v62, %v2967_v51  ;;  %v5487_v31 = vadd.f32 %v2701_v18, %v5420_v29  ;;  %v2619_v26 = vpack.c.bf16 %v3941_v40, %v3939_v22 }
 0x3df   : > { %v3943_v27 = vpop.eup %3942  ;;  %v2969_v49 = vadd.f32 %v3937_v62, %v2968_v57  ;;  %v3729_v6 = vmul.f32 -1.442695, %v5487_v31  ;;  %2740 = vmatmul.bf16.gmra.mxu1 %v2619_v26 }
 0x3e0   : > { %v3945_v36 = vpop.eup %3944  ;;  %v2865_v41 = vadd.f32 1.0, %v3943_v27 }
 0x3e1   : > { %v2973_v14 = vsel %vm2972_vm8, %v3937_v62, %v2969_v49  ;;  %v2981_v44 = vmul.f32 %v3945_v36, %v2864_v13  ;;  %3946 = vpow2.f32 %v3729_v6  ;;  %vm2986_vm10 = vweird.f32 %v3945_v36 }
 0x3e2   : > { %v2978_v37 = vsel %vm2975_vm9, %v2977_v30, %v2973_v14  ;;  %3948 = vrcp.f32 %v2865_v41  ;;  %vm2987_vm11 = vmor %vm2985_vm5, %vm2986_vm10  ;;  %v3004_v56 = vand.u32 2147483647, %v2865_v41  ;;  %v3006_v52 = vand.u32 2147483648, %v2865_v41 }
 0x3e3   : > { %v3375_v10 = vsel %vm2761_vm1, %v2978_v37, %v5461_v23  ;;  %v2982_v54 = vsub.f32 1.0, %v2981_v44  ;;  %v2562_v25 = vpop.f32.mrf.mxu3  ;;  %3950 = vtanh.f32 %v2561_v45  ;;  %vm3000_vm15 = vweird.f32 %v2865_v41 }
 0x3e4   : > { %3407 = vst [vmem:[%s5445_s18 + $0x28] sm:$0xff] %v3375_v10  ;;  %v2563_v53 = vadd.f32 %v2562_v25, %v5142_v12  ;;  %v2703_v3 = vpop.f32.mrf.mxu1  ;;  %vm3005_vm0 = vcmp.eq.f32.partialorder %v3004_v56, 8.507059e+37  ;;  %v3007_v62 = vor.u32 1.1754944e-38, %v3006_v52 }
 0x3e5   : > { %v2983_v61 = vmul.f32 %v3945_v36, %v2982_v54  ;;  %v5497_v42 = vadd.f32 %v2703_v3, %v5420_v29 }
 0x3e6   : > { %3952 = vtanh.f32 %v2563_v53 }
 0x3e7   : > { %v3947_v5 = vpop.eup %3946  ;;  %v2984_v48 = vadd.f32 %v3945_v36, %v2983_v61  ;;  %v3730_v23 = vmul.f32 -1.442695, %v5497_v42 }
 0x3e8   : > { %v3949_v11 = vpop.eup %3948  ;;  %v2866_v35 = vadd.f32 1.0, %v3947_v5 }
 0x3e9   : > { %v2988_v55 = vsel %vm2987_vm11, %v3945_v36, %v2984_v48  ;;  %v2996_v7 = vmul.f32 %v3949_v11, %v2865_v41  ;;  %3954 = vpow2.f32 %v3730_v23  ;;  %v3951_v28 = vpop.eup %3950  ;;  %vm3001_vm14 = vweird.f32 %v3949_v11 }
 0x3ea   : > { %v2993_v50 = vsel %vm2990_vm12, %v2992_v46, %v2988_v55  ;;  %3956 = vrcp.f32 %v2866_v35  ;;  %vm3002_vm13 = vmor %vm3000_vm15, %vm3001_vm14  ;;  %v3019_v33 = vand.u32 2147483647, %v2866_v35  ;;  %v3021_v40 = vand.u32 2147483648, %v2866_v35 }
 0x3eb   : > { %v3376_v15 = vsel %vm2761_vm1, %v2993_v50, %v5469_v43  ;;  %v2997_v58 = vsub.f32 1.0, %v2996_v7  ;;  %v2565_v17 = vpop.f32.mrf.mxu3  ;;  %vm3015_vm4 = vweird.f32 %v2866_v35 }
 0x3ec   : > { %v3953_v38 = vpop.eup %3952  ;;  %3408 = vst [vmem:[%s5445_s18 + $0x30] sm:$0xff] %v3376_v15  ;;  %v2706_v2 = vpop.f32.mrf.mxu1  ;;  %v2566_v20 = vadd.f32 %v2565_v17, %v5142_v12  ;;  %v3022_v6 = vor.u32 1.1754944e-38, %v3021_v40  ;;  %vm3020_vm6 = vcmp.eq.f32.partialorder %v3019_v33, 8.507059e+37 }
 0x3ed   : > { %v2998_v4 = vmul.f32 %v3949_v11, %v2997_v58  ;;  %v5505_v9 = vadd.f32 %v2706_v2, %v5420_v29  ;;  %v2620_v34 = vpack.c.bf16 %v3953_v38, %v3951_v28 }
 0x3ef   : > { %v3955_v24 = vpop.eup %3954  ;;  %v2999_v19 = vadd.f32 %v3949_v11, %v2998_v4  ;;  %v3731_v8 = vmul.f32 -1.442695, %v5505_v9  ;;  %2745 = vmatmul.bf16.gmra.mxu1 %v2620_v34 }
 0x3f0   : > { %v3957_v43 = vpop.eup %3956  ;;  %v2867_v47 = vadd.f32 1.0, %v3955_v24 }
 0x3f1   : > { %v3003_v13 = vsel %vm3002_vm13, %v3949_v11, %v2999_v19  ;;  %v3011_v63 = vmul.f32 %v3957_v43, %v2866_v35  ;;  %3958 = vpow2.f32 %v3731_v8  ;;  %vm3016_vm3 = vweird.f32 %v3957_v43 }
 0x3f2   : > { %v3008_v39 = vsel %vm3005_vm0, %v3007_v62, %v3003_v13  ;;  %3960 = vrcp.f32 %v2867_v47  ;;  %vm3017_vm2 = vmor %vm3015_vm4, %vm3016_vm3  ;;  %v3034_v25 = vand.u32 2147483647, %v2867_v47  ;;  %v3036_v0 = vand.u32 2147483648, %v2867_v47 }
 0x3f3   : > { %v3377_v22 = vsel %vm2761_vm1, %v3008_v39, %v5479_v21  ;;  %v3012_v32 = vsub.f32 1.0, %v3011_v63  ;;  %v2567_v51 = vpop.f32.mrf.mxu3  ;;  %3962 = vtanh.f32 %v2566_v20  ;;  %vm3030_vm8 = vweird.f32 %v2867_v47 }
 0x3f4   : > { %3409 = vst [vmem:[%s5445_s18 + $0x38] sm:$0xff] %v3377_v22  ;;  %v2568_v60 = vadd.f32 %v2567_v51, %v5142_v12  ;;  %v2708_v16 = vpop.f32.mrf.mxu1  ;;  %vm3035_vm10 = vcmp.eq.f32.partialorder %v3034_v25, 8.507059e+37  ;;  %v3037_v11 = vor.u32 1.1754944e-38, %v3036_v0 }
 0x3f5   : > { %v3013_v18 = vmul.f32 %v3957_v43, %v3012_v32  ;;  %v5515_v57 = vadd.f32 %v2708_v16, %v5420_v29 }
 0x3f6   : > { %3964 = vtanh.f32 %v2568_v60 }
 0x3f7   : > { %v3959_v26 = vpop.eup %3958  ;;  %v3014_v27 = vadd.f32 %v3957_v43, %v3013_v18  ;;  %v3732_v21 = vmul.f32 -1.442695, %v5515_v57 }
 0x3f8   : > { %v3961_v49 = vpop.eup %3960  ;;  %v2868_v36 = vadd.f32 1.0, %v3959_v26 }
 0x3f9   : > { %v3018_v30 = vsel %vm3017_vm2, %v3957_v43, %v3014_v27  ;;  %v3026_v41 = vmul.f32 %v3961_v49, %v2867_v47  ;;  %3966 = vpow2.f32 %v3732_v21  ;;  %v3963_v44 = vpop.eup %3962  ;;  %vm3031_vm7 = vweird.f32 %v3961_v49 }
 0x3fa   : > { %v3023_v14 = vsel %vm3020_vm6, %v3022_v6, %v3018_v30  ;;  %3968 = vrcp.f32 %v2868_v36  ;;  %vm3032_vm9 = vmor %vm3030_vm8, %vm3031_vm7  ;;  %v3049_v17 = vand.u32 2147483647, %v2868_v36  ;;  %v3051_v38 = vand.u32 2147483648, %v2868_v36 }
 0x3fb   : > { %v3378_v45 = vsel %vm2761_vm1, %v3023_v14, %v5487_v31  ;;  %v3027_v37 = vsub.f32 1.0, %v3026_v41  ;;  %v2570_v10 = vpop.f32.mrf.mxu3  ;;  %vm3045_vm11 = vweird.f32 %v2868_v36 }
 0x3fc   : > { %v3965_v54 = vpop.eup %3964  ;;  %3410 = vst [vmem:[%s5445_s18 + $0x40] sm:$0xff] %v3378_v45  ;;  %v2711_v1 = vpop.f32.mrf.mxu1  ;;  %v2571_v7 = vadd.f32 %v2570_v10, %v5142_v12  ;;  %v3052_v8 = vor.u32 1.1754944e-38, %v3051_v38  ;;  %vm3050_vm14 = vcmp.eq.f32.partialorder %v3049_v17, 8.507059e+37 }
 0x3fd   : > { %v3028_v53 = vmul.f32 %v3961_v49, %v3027_v37  ;;  %v5523_v3 = vadd.f32 %v2711_v1, %v5420_v29  ;;  %v2621_v61 = vpack.c.bf16 %v3965_v54, %v3963_v44 }
 0x3ff   : > { %v3967_v5 = vpop.eup %3966  ;;  %v3029_v48 = vadd.f32 %v3961_v49, %v3028_v53  ;;  %v3733_v23 = vmul.f32 -1.442695, %v5523_v3  ;;  %2750 = vmatmul.bf16.gmra.mxu1 %v2621_v61 }
 0x400   : > { %v3969_v31 = vpop.eup %3968  ;;  %v2869_v46 = vadd.f32 1.0, %v3967_v5 }
 0x401   : > { %v3033_v35 = vsel %vm3032_vm9, %v3961_v49, %v3029_v48  ;;  %v3041_v55 = vmul.f32 %v3969_v31, %v2868_v36  ;;  %3970 = vpow2.f32 %v3733_v23  ;;  %vm3046_vm5 = vweird.f32 %v3969_v31 }
 0x402   : > { %v3038_v50 = vsel %vm3035_vm10, %v3037_v11, %v3033_v35  ;;  %3972 = vrcp.f32 %v2869_v46  ;;  %vm3047_vm12 = vmor %vm3045_vm11, %vm3046_vm5  ;;  %v3064_v22 = vand.u32 2147483647, %v2869_v46  ;;  %v3066_v32 = vand.u32 2147483648, %v2869_v46 }
 0x403   : > { %v3379_v28 = vsel %vm2761_vm1, %v3038_v50, %v5497_v42  ;;  %v3042_v15 = vsub.f32 1.0, %v3041_v55  ;;  %v2572_v58 = vpop.f32.mrf.mxu3  ;;  %3974 = vtanh.f32 %v2571_v7  ;;  %vm3060_vm13 = vweird.f32 %v2869_v46 }
 0x404   : > { %3411 = vst [vmem:[%s5445_s18 + $0x48] sm:$0xff] %v3379_v28  ;;  %v2573_v56 = vadd.f32 %v2572_v58, %v5142_v12  ;;  %v2713_v52 = vpop.f32.mrf.mxu1  ;;  %v3067_v27 = vor.u32 1.1754944e-38, %v3066_v32  ;;  %vm3065_vm3 = vcmp.eq.f32.partialorder %v3064_v22, 8.507059e+37 }
 0x405   : > { %v3043_v2 = vmul.f32 %v3969_v31, %v3042_v15  ;;  %v5533_v4 = vadd.f32 %v2713_v52, %v5420_v29 }
 0x406   : > { %3976 = vtanh.f32 %v2573_v56 }
 0x407   : > { %v3971_v34 = vpop.eup %3970  ;;  %v3044_v24 = vadd.f32 %v3969_v31, %v3043_v2  ;;  %v3734_v42 = vmul.f32 -1.442695, %v5533_v4 }
 0x408   : > { %v3973_v19 = vpop.eup %3972  ;;  %v2870_v43 = vadd.f32 1.0, %v3971_v34 }
 0x409   : > { %v3048_v62 = vsel %vm3047_vm12, %v3969_v31, %v3044_v24  ;;  %v3056_v12 = vmul.f32 %v3973_v19, %v2869_v46  ;;  %3978 = vpow2.f32 %v3734_v42  ;;  %v3975_v13 = vpop.eup %3974  ;;  %vm3061_vm15 = vweird.f32 %v3973_v19 }
 0x40a   : > { %v3053_v47 = vsel %vm3050_vm14, %v3052_v8, %v3048_v62  ;;  %3980 = vrcp.f32 %v2870_v43  ;;  %vm3062_vm0 = vmor %vm3060_vm13, %vm3061_vm15  ;;  %v3081_v14 = vand.u32 2147483648, %v2870_v43  ;;  %v3079_v37 = vand.u32 2147483647, %v2870_v43 }
 0x40b   : > { %v3380_v63 = vsel %vm2761_vm1, %v3053_v47, %v5505_v9  ;;  %v3057_v20 = vsub.f32 1.0, %v3056_v12  ;;  %vm3075_vm2 = vweird.f32 %v2870_v43 }
 0x40c   : > { %v3977_v39 = vpop.eup %3976  ;;  %3412 = vst [vmem:[%s5445_s18 + $0x50] sm:$0xff] %v3380_v63  ;;  %v2716_v51 = vpop.f32.mrf.mxu1  ;;  %v3082_v53 = vor.u32 1.1754944e-38, %v3081_v14  ;;  %vm3080_vm7 = vcmp.eq.f32.partialorder %v3079_v37, 8.507059e+37 }
 0x40d   : > { %v3058_v33 = vmul.f32 %v3973_v19, %v3057_v20  ;;  %v2622_v40 = vpack.c.bf16 %v3977_v39, %v3975_v13  ;;  %v5541_v60 = vadd.f32 %v2716_v51, %v5420_v29 }
 0x40f   : > { %v3979_v16 = vpop.eup %3978  ;;  %v3059_v18 = vadd.f32 %v3973_v19, %v3058_v33  ;;  %v3735_v26 = vmul.f32 -1.442695, %v5541_v60  ;;  %2755 = vmatmul.bf16.vlgmr.msrb.gmra.mxu2 %v2622_v40 }
 0x410   : > { %v3981_v9 = vpop.eup %3980  ;;  %v2871_v21 = vadd.f32 1.0, %v3979_v16 }
 0x411   : > { %v3063_v49 = vsel %vm3062_vm0, %v3973_v19, %v3059_v18  ;;  %v3071_v6 = vmul.f32 %v3981_v9, %v2870_v43  ;;  %3982 = vpow2.f32 %v3735_v26  ;;  %vm3076_vm4 = vweird.f32 %v3981_v9 }
 0x412   : > { %v3068_v36 = vsel %vm3065_vm3, %v3067_v27, %v3063_v49  ;;  %3984 = vrcp.f32 %v2871_v21  ;;  %vm3077_vm6 = vmor %vm3075_vm2, %vm3076_vm4  ;;  %v3096_v11 = vand.u32 2147483648, %v2871_v21  ;;  %v3094_v55 = vand.u32 2147483647, %v2871_v21 }
 0x413   : > { %v3381_v30 = vsel %vm2761_vm1, %v3068_v36, %v5515_v57  ;;  %v3072_v41 = vsub.f32 1.0, %v3071_v6  ;;  %vm3090_vm9 = vweird.f32 %v2871_v21 }
 0x414   : > { %3413 = vst [vmem:[%s5445_s18 + $0x58] sm:$0xff] %v3381_v30  ;;  %v2718_v44 = vpop.f32.mrf.mxu1  ;;  %v3097_v17 = vor.u32 1.1754944e-38, %v3096_v11  ;;  %vm3095_vm5 = vcmp.eq.f32.partialorder %v3094_v55, 8.507059e+37 }
 0x415   : > { %v3073_v45 = vmul.f32 %v3981_v9, %v3072_v41  ;;  %v5549_v10 = vadd.f32 %v2718_v44, %v5420_v29 }
 0x417   : > { %v3983_v54 = vpop.eup %3982  ;;  %v3074_v25 = vadd.f32 %v3981_v9, %v3073_v45  ;;  %v3736_v0 = vmul.f32 -1.442695, %v5549_v10 }
 0x418   : > { %v3985_v1 = vpop.eup %3984  ;;  %v2872_v57 = vadd.f32 1.0, %v3983_v54 }
 0x419   : > { %v3078_v61 = vsel %vm3077_vm6, %v3981_v9, %v3074_v25  ;;  %v3086_v5 = vmul.f32 %v3985_v1, %v2871_v21  ;;  %3986 = vpow2.f32 %v3736_v0  ;;  %vm3091_vm8 = vweird.f32 %v3985_v1 }
 0x41a   : > { %v3083_v48 = vsel %vm3080_vm7, %v3082_v53, %v3078_v61  ;;  %3988 = vrcp.f32 %v2872_v57  ;;  %vm3092_vm10 = vmor %vm3090_vm9, %vm3091_vm8  ;;  %v3111_v24 = vand.u32 2147483648, %v2872_v57  ;;  %v3109_v8 = vand.u32 2147483647, %v2872_v57 }
 0x41b   : > { %v3382_v23 = vsel %vm2761_vm1, %v3083_v48, %v5523_v3  ;;  %v3087_v31 = vsub.f32 1.0, %v3086_v5  ;;  %vm3105_vm12 = vweird.f32 %v2872_v57 }
 0x41c   : > { %3414 = vst [vmem:[%s5445_s18 + $0x60] sm:$0xff] %v3382_v23  ;;  %v2721_v46 = vpop.f32.mrf.mxu1  ;;  %v3112_v63 = vor.u32 1.1754944e-38, %v3111_v24  ;;  %vm3110_vm15 = vcmp.eq.f32.partialorder %v3109_v8, 8.507059e+37 }
 0x41d   : > { %v3088_v35 = vmul.f32 %v3985_v1, %v3087_v31  ;;  %v5557_v7 = vadd.f32 %v2721_v46, %v5420_v29 }
 0x41f   : > { %v3987_v50 = vpop.eup %3986  ;;  %v3089_v28 = vadd.f32 %v3985_v1, %v3088_v35  ;;  %v3737_v15 = vmul.f32 -1.442695, %v5557_v7 }
 0x420   : > { %v3989_v58 = vpop.eup %3988  ;;  %v2873_v3 = vadd.f32 1.0, %v3987_v50 }
 0x421   : > { %v3093_v38 = vsel %vm3092_vm10, %v3985_v1, %v3089_v28  ;;  %v3101_v56 = vmul.f32 %v3989_v58, %v2872_v57  ;;  %3990 = vpow2.f32 %v3737_v15  ;;  %vm3106_vm11 = vweird.f32 %v3989_v58 }
 0x422   : > { %v3098_v52 = vsel %vm3095_vm5, %v3097_v17, %v3093_v38  ;;  %3992 = vrcp.f32 %v2873_v3  ;;  %vm3107_vm14 = vmor %vm3105_vm12, %vm3106_vm11  ;;  %v3126_v33 = vand.u32 2147483648, %v2873_v3  ;;  %v3124_v18 = vand.u32 2147483647, %v2873_v3 }
 0x423   : > { %v3383_v2 = vsel %vm2761_vm1, %v3098_v52, %v5533_v4  ;;  %v3102_v34 = vsub.f32 1.0, %v3101_v56  ;;  %vm3120_vm0 = vweird.f32 %v2873_v3 }
 0x424   : > { %3415 = vst [vmem:[%s5445_s18 + $0x68] sm:$0xff] %v3383_v2  ;;  %v2723_v42 = vpop.f32.mrf.mxu1  ;;  %v3127_v6 = vor.u32 1.1754944e-38, %v3126_v33  ;;  %vm3125_vm4 = vcmp.eq.f32.partialorder %v3124_v18, 8.507059e+37 }
 0x425   : > { %v3103_v19 = vmul.f32 %v3989_v58, %v3102_v34  ;;  %v5565_v43 = vadd.f32 %v2723_v42, %v5420_v29 }
 0x427   : > { %v3991_v62 = vpop.eup %3990  ;;  %v3104_v12 = vadd.f32 %v3989_v58, %v3103_v19  ;;  %v3738_v47 = vmul.f32 -1.442695, %v5565_v43 }
 0x428   : > { %v3993_v13 = vpop.eup %3992  ;;  %v2874_v4 = vadd.f32 1.0, %v3991_v62 }
 0x429   : > { %v3108_v20 = vsel %vm3107_vm14, %v3989_v58, %v3104_v12  ;;  %v3116_v39 = vmul.f32 %v3993_v13, %v2873_v3  ;;  %3994 = vpow2.f32 %v3738_v47  ;;  %vm3121_vm13 = vweird.f32 %v3993_v13 }
 0x42a   : > { %v3113_v22 = vsel %vm3110_vm15, %v3112_v63, %v3108_v20  ;;  %3996 = vrcp.f32 %v2874_v4  ;;  %vm3122_vm3 = vmor %vm3120_vm0, %vm3121_vm13  ;;  %v3141_v45 = vand.u32 2147483648, %v2874_v4  ;;  %v3139_v25 = vand.u32 2147483647, %v2874_v4 }
 0x42b   : > { %v3384_v32 = vsel %vm2761_vm1, %v3113_v22, %v5541_v60  ;;  %v3117_v51 = vsub.f32 1.0, %v3116_v39  ;;  %vm3135_vm6 = vweird.f32 %v2874_v4 }
 0x42c   : > { %3416 = vst [vmem:[%s5445_s18 + $0x70] sm:$0xff] %v3384_v32  ;;  %v2726_v40 = vpop.f32.mrf.mxu1  ;;  %v3142_v5 = vor.u32 1.1754944e-38, %v3141_v45  ;;  %vm3140_vm8 = vcmp.eq.f32.partialorder %v3139_v25, 8.507059e+37 }
 0x42d   : > { %v3118_v16 = vmul.f32 %v3993_v13, %v3117_v51  ;;  %v5573_v26 = vadd.f32 %v2726_v40, %v5420_v29 }
 0x42f   : > { %v3995_v9 = vpop.eup %3994  ;;  %v3119_v27 = vadd.f32 %v3993_v13, %v3118_v16  ;;  %v3739_v21 = vmul.f32 -1.442695, %v5573_v26 }
 0x430   : > { %v3997_v49 = vpop.eup %3996  ;;  %v2875_v60 = vadd.f32 1.0, %v3995_v9 }
 0x431   : > { %v3123_v36 = vsel %vm3122_vm3, %v3993_v13, %v3119_v27  ;;  %v3131_v30 = vmul.f32 %v3997_v49, %v2874_v4  ;;  %3998 = vpow2.f32 %v3739_v21  ;;  %vm3136_vm2 = vweird.f32 %v3997_v49 }
 0x432   : > { %v3128_v41 = vsel %vm3125_vm4, %v3127_v6, %v3123_v36  ;;  %4000 = vrcp.f32 %v2875_v60  ;;  %vm3137_vm7 = vmor %vm3135_vm6, %vm3136_vm2  ;;  %v3156_v35 = vand.u32 2147483648, %v2875_v60  ;;  %v3154_v28 = vand.u32 2147483647, %v2875_v60 }
 0x433   : > { %v3385_v14 = vsel %vm2761_vm1, %v3128_v41, %v5549_v10  ;;  %v3132_v44 = vsub.f32 1.0, %v3131_v30  ;;  %vm3150_vm10 = vweird.f32 %v2875_v60 }
 0x434   : > { %3417 = vst [vmem:[%s5445_s18 + $0x78] sm:$0xff] %v3385_v14  ;;  %v2728_v37 = vpop.f32.mrf.mxu1  ;;  %v3157_v56 = vor.u32 1.1754944e-38, %v3156_v35  ;;  %vm3155_vm11 = vcmp.eq.f32.partialorder %v3154_v28, 8.507059e+37 }
 0x435   : > { %v3133_v54 = vmul.f32 %v3997_v49, %v3132_v44  ;;  %v5581_v0 = vadd.f32 %v2728_v37, %v5420_v29 }
 0x437   : > { %v3999_v1 = vpop.eup %3998  ;;  %v3134_v53 = vadd.f32 %v3997_v49, %v3133_v54  ;;  %v3740_v57 = vmul.f32 -1.442695, %v5581_v0 }
 0x438   : > { %v4001_v61 = vpop.eup %4000  ;;  %v2876_v10 = vadd.f32 1.0, %v3999_v1 }
 0x439   : > { %v3138_v48 = vsel %vm3137_vm7, %v3997_v49, %v3134_v53  ;;  %v3146_v23 = vmul.f32 %v4001_v61, %v2875_v60  ;;  %4002 = vpow2.f32 %v3740_v57  ;;  %vm3151_vm9 = vweird.f32 %v4001_v61 }
 0x43a   : > { %v3143_v31 = vsel %vm3140_vm8, %v3142_v5, %v3138_v48  ;;  %4004 = vrcp.f32 %v2876_v10  ;;  %vm3152_vm5 = vmor %vm3150_vm10, %vm3151_vm9  ;;  %v3171_v19 = vand.u32 2147483648, %v2876_v10  ;;  %v3169_v12 = vand.u32 2147483647, %v2876_v10 }
 0x43b   : > { %v3386_v11 = vsel %vm2761_vm1, %v3143_v31, %v5557_v7  ;;  %v3147_v46 = vsub.f32 1.0, %v3146_v23  ;;  %vm3165_vm14 = vweird.f32 %v2876_v10 }
 0x43c   : > { %3418 = vst [vmem:[%s5445_s18 + $0x80] sm:$0xff] %v3386_v11  ;;  %v2731_v55 = vpop.f32.mrf.mxu1  ;;  %v3172_v39 = vor.u32 1.1754944e-38, %v3171_v19  ;;  %vm3170_vm13 = vcmp.eq.f32.partialorder %v3169_v12, 8.507059e+37 }
 0x43d   : > { %v3148_v50 = vmul.f32 %v4001_v61, %v3147_v46  ;;  %v5589_v15 = vadd.f32 %v2731_v55, %v5420_v29 }
 0x43f   : > { %v4003_v58 = vpop.eup %4002  ;;  %v3149_v17 = vadd.f32 %v4001_v61, %v3148_v50  ;;  %v3741_v3 = vmul.f32 -1.442695, %v5589_v15 }
 0x440   : > { %v4005_v38 = vpop.eup %4004  ;;  %v2877_v7 = vadd.f32 1.0, %v4003_v58 }
 0x441   : > { %v3153_v52 = vsel %vm3152_vm5, %v4001_v61, %v3149_v17  ;;  %v3161_v2 = vmul.f32 %v4005_v38, %v2876_v10  ;;  %4006 = vpow2.f32 %v3741_v3  ;;  %vm3166_vm12 = vweird.f32 %v4005_v38 }
 0x442   : > { %v3158_v34 = vsel %vm3155_vm11, %v3157_v56, %v3153_v52  ;;  %4008 = vrcp.f32 %v2877_v7  ;;  %vm3167_vm15 = vmor %vm3165_vm14, %vm3166_vm12  ;;  %v3186_v16 = vand.u32 2147483648, %v2877_v7  ;;  %v3184_v27 = vand.u32 2147483647, %v2877_v7 }
 0x443   : > { %v3387_v24 = vsel %vm2761_vm1, %v3158_v34, %v5565_v43  ;;  %v3162_v42 = vsub.f32 1.0, %v3161_v2  ;;  %vm3180_vm3 = vweird.f32 %v2877_v7 }
 0x444   : > { %3419 = vst [vmem:[%s5445_s18 + $0x88] sm:$0xff] %v3387_v24  ;;  %v2733_v8 = vpop.f32.mrf.mxu1  ;;  %v3187_v30 = vor.u32 1.1754944e-38, %v3186_v16  ;;  %vm3185_vm2 = vcmp.eq.f32.partialorder %v3184_v27, 8.507059e+37 }
 0x445   : > { %v3163_v62 = vmul.f32 %v4005_v38, %v3162_v42  ;;  %v5597_v47 = vadd.f32 %v2733_v8, %v5420_v29 }
 0x447   : > { %v4007_v13 = vpop.eup %4006  ;;  %v3164_v63 = vadd.f32 %v4005_v38, %v3163_v62  ;;  %v3742_v4 = vmul.f32 -1.442695, %v5597_v47 }
 0x448   : > { %v4009_v20 = vpop.eup %4008  ;;  %v2878_v43 = vadd.f32 1.0, %v4007_v13 }
 0x449   : > { %v3168_v22 = vsel %vm3167_vm15, %v4005_v38, %v3164_v63  ;;  %v3176_v32 = vmul.f32 %v4009_v20, %v2877_v7  ;;  %4010 = vpow2.f32 %v3742_v4  ;;  %vm3181_vm0 = vweird.f32 %v4009_v20 }
 0x44a   : > { %v3173_v51 = vsel %vm3170_vm13, %v3172_v39, %v3168_v22  ;;  %4012 = vrcp.f32 %v2878_v43  ;;  %vm3182_vm4 = vmor %vm3180_vm3, %vm3181_vm0  ;;  %v3201_v54 = vand.u32 2147483648, %v2878_v43  ;;  %v3199_v53 = vand.u32 2147483647, %v2878_v43 }
 0x44b   : > { %v3388_v33 = vsel %vm2761_vm1, %v3173_v51, %v5573_v26  ;;  %v3177_v40 = vsub.f32 1.0, %v3176_v32  ;;  %vm3195_vm7 = vweird.f32 %v2878_v43 }
 0x44c   : > { %3420 = vst [vmem:[%s5445_s18 + $0x90] sm:$0xff] %v3388_v33  ;;  %v2736_v18 = vpop.f32.mrf.mxu1  ;;  %v3202_v23 = vor.u32 1.1754944e-38, %v3201_v54  ;;  %vm3200_vm9 = vcmp.eq.f32.partialorder %v3199_v53, 8.507059e+37 }
 0x44d   : > { %v3178_v9 = vmul.f32 %v4009_v20, %v3177_v40  ;;  %v5605_v21 = vadd.f32 %v2736_v18, %v5420_v29 }
 0x44f   : > { %v4011_v49 = vpop.eup %4010  ;;  %v3179_v6 = vadd.f32 %v4009_v20, %v3178_v9  ;;  %v3743_v60 = vmul.f32 -1.442695, %v5605_v21 }
 0x450   : > { %v4013_v36 = vpop.eup %4012  ;;  %v2879_v26 = vadd.f32 1.0, %v4011_v49 }
 0x451   : > { %v3183_v41 = vsel %vm3182_vm4, %v4009_v20, %v3179_v6  ;;  %v3191_v14 = vmul.f32 %v4013_v36, %v2878_v43  ;;  %4014 = vpow2.f32 %v3743_v60  ;;  %vm3196_vm6 = vweird.f32 %v4013_v36 }
 0x452   : > { %v3188_v44 = vsel %vm3185_vm2, %v3187_v30, %v3183_v41  ;;  %4016 = vrcp.f32 %v2879_v26  ;;  %vm3197_vm8 = vmor %vm3195_vm7, %vm3196_vm6  ;;  %v3216_v50 = vand.u32 2147483648, %v2879_v26  ;;  %v3214_v17 = vand.u32 2147483647, %v2879_v26 }
 0x453   : > { %v3389_v45 = vsel %vm2761_vm1, %v3188_v44, %v5581_v0  ;;  %v3192_v37 = vsub.f32 1.0, %v3191_v14  ;;  %vm3210_vm5 = vweird.f32 %v2879_v26 }
 0x454   : > { %3421 = vst [vmem:[%s5445_s18 + $0x98] sm:$0xff] %v3389_v45  ;;  %v2738_v25 = vpop.f32.mrf.mxu1  ;;  %v3217_v2 = vor.u32 1.1754944e-38, %v3216_v50  ;;  %vm3215_vm12 = vcmp.eq.f32.partialorder %v3214_v17, 8.507059e+37 }
 0x455   : > { %v3193_v1 = vmul.f32 %v4013_v36, %v3192_v37  ;;  %v5613_v57 = vadd.f32 %v2738_v25, %v5420_v29 }
 0x457   : > { %v4015_v61 = vpop.eup %4014  ;;  %v3194_v5 = vadd.f32 %v4013_v36, %v3193_v1  ;;  %v3744_v10 = vmul.f32 -1.442695, %v5613_v57 }
 0x458   : > { %v4017_v48 = vpop.eup %4016  ;;  %v2880_v0 = vadd.f32 1.0, %v4015_v61 }
 0x459   : > { %v3198_v31 = vsel %vm3197_vm8, %v4013_v36, %v3194_v5  ;;  %v3206_v11 = vmul.f32 %v4017_v48, %v2879_v26  ;;  %4018 = vpow2.f32 %v3744_v10  ;;  %vm3211_vm10 = vweird.f32 %v4017_v48 }
 0x45a   : > { %v3203_v46 = vsel %vm3200_vm9, %v3202_v23, %v3198_v31  ;;  %4020 = vrcp.f32 %v2880_v0  ;;  %vm3212_vm11 = vmor %vm3210_vm5, %vm3211_vm10  ;;  %v3231_v62 = vand.u32 2147483648, %v2880_v0  ;;  %v3229_v63 = vand.u32 2147483647, %v2880_v0 }
 0x45b   : > { %v3390_v35 = vsel %vm2761_vm1, %v3203_v46, %v5589_v15  ;;  %v3207_v55 = vsub.f32 1.0, %v3206_v11  ;;  %vm3225_vm15 = vweird.f32 %v2880_v0 }
 0x45c   : > { %3422 = vst [vmem:[%s5445_s18 + $0xa0] sm:$0xff] %v3390_v35  ;;  %v2741_v28 = vpop.f32.mrf.mxu1  ;;  %v3232_v32 = vor.u32 1.1754944e-38, %v3231_v62  ;;  %vm3230_vm0 = vcmp.eq.f32.partialorder %v3229_v63, 8.507059e+37 }
 0x45d   : > { %v3208_v58 = vmul.f32 %v4017_v48, %v3207_v55  ;;  %v5621_v3 = vadd.f32 %v2741_v28, %v5420_v29 }
 0x45f   : > { %v4019_v38 = vpop.eup %4018  ;;  %v3209_v56 = vadd.f32 %v4017_v48, %v3208_v58  ;;  %v3745_v7 = vmul.f32 -1.442695, %v5621_v3 }
 0x460   : > { %v4021_v52 = vpop.eup %4020  ;;  %v2881_v15 = vadd.f32 1.0, %v4019_v38 }
 0x461   : > { %v3213_v34 = vsel %vm3212_vm11, %v4017_v48, %v3209_v56  ;;  %v3221_v24 = vmul.f32 %v4021_v52, %v2880_v0  ;;  %4022 = vpow2.f32 %v3745_v7  ;;  %vm3226_vm14 = vweird.f32 %v4021_v52 }
 0x462   : > { %v3218_v42 = vsel %vm3215_vm12, %v3217_v2, %v3213_v34  ;;  %4024 = vrcp.f32 %v2881_v15  ;;  %vm3227_vm13 = vmor %vm3225_vm15, %vm3226_vm14  ;;  %v3246_v9 = vand.u32 2147483648, %v2881_v15  ;;  %v3244_v6 = vand.u32 2147483647, %v2881_v15 }
 0x463   : > { %v3391_v19 = vsel %vm2761_vm1, %v3218_v42, %v5597_v47  ;;  %v3222_v8 = vsub.f32 1.0, %v3221_v24  ;;  %vm3240_vm4 = vweird.f32 %v2881_v15 }
 0x464   : > { %3423 = vst [vmem:[%s5445_s18 + $0xa8] sm:$0xff] %v3391_v19  ;;  %v2743_v12 = vpop.f32.mrf.mxu1  ;;  %v3247_v14 = vor.u32 1.1754944e-38, %v3246_v9  ;;  %vm3245_vm6 = vcmp.eq.f32.partialorder %v3244_v6, 8.507059e+37 }
 0x465   : > { %v3223_v13 = vmul.f32 %v4021_v52, %v3222_v8  ;;  %v5629_v4 = vadd.f32 %v2743_v12, %v5420_v29 }
 0x467   : > { %v4023_v20 = vpop.eup %4022  ;;  %v3224_v39 = vadd.f32 %v4021_v52, %v3223_v13  ;;  %v3746_v43 = vmul.f32 -1.442695, %v5629_v4 }
 0x468   : > { %v4025_v22 = vpop.eup %4024  ;;  %v2882_v47 = vadd.f32 1.0, %v4023_v20 }
 0x469   : > { %v3228_v51 = vsel %vm3227_vm13, %v4021_v52, %v3224_v39  ;;  %v3236_v33 = vmul.f32 %v4025_v22, %v2881_v15  ;;  %4026 = vpow2.f32 %v3746_v43  ;;  %vm3241_vm3 = vweird.f32 %v4025_v22 }
 0x46a   : > { %v3233_v40 = vsel %vm3230_vm0, %v3232_v32, %v3228_v51  ;;  %4028 = vrcp.f32 %v2882_v47  ;;  %vm3242_vm2 = vmor %vm3240_vm4, %vm3241_vm3  ;;  %v3261_v1 = vand.u32 2147483648, %v2882_v47  ;;  %v3259_v5 = vand.u32 2147483647, %v2882_v47 }
 0x46b   : > { %v3392_v16 = vsel %vm2761_vm1, %v3233_v40, %v5605_v21  ;;  %v3237_v18 = vsub.f32 1.0, %v3236_v33  ;;  %vm3255_vm8 = vweird.f32 %v2882_v47 }
 0x46c   : > { %3424 = vst [vmem:[%s5445_s18 + $0xb0] sm:$0xff] %v3392_v16  ;;  %v2746_v27 = vpop.f32.mrf.mxu1  ;;  %v3262_v11 = vor.u32 1.1754944e-38, %v3261_v1  ;;  %vm3260_vm10 = vcmp.eq.f32.partialorder %v3259_v5, 8.507059e+37 }
 0x46d   : > { %v3238_v49 = vmul.f32 %v4025_v22, %v3237_v18  ;;  %v5637_v60 = vadd.f32 %v2746_v27, %v5420_v29 }
 0x46f   : > { %v4027_v36 = vpop.eup %4026  ;;  %v3239_v30 = vadd.f32 %v4025_v22, %v3238_v49  ;;  %v3747_v26 = vmul.f32 -1.442695, %v5637_v60 }
 0x470   : > { %v4029_v41 = vpop.eup %4028  ;;  %v2883_v21 = vadd.f32 1.0, %v4027_v36 }
 0x471   : > { %v3243_v44 = vsel %vm3242_vm2, %v4025_v22, %v3239_v30  ;;  %v3251_v45 = vmul.f32 %v4029_v41, %v2882_v47  ;;  %4030 = vpow2.f32 %v3747_v26  ;;  %vm3256_vm7 = vweird.f32 %v4029_v41 }
 0x472   : > { %v3248_v37 = vsel %vm3245_vm6, %v3247_v14, %v3243_v44  ;;  %4032 = vrcp.f32 %v2883_v21  ;;  %vm3257_vm9 = vmor %vm3255_vm8, %vm3256_vm7  ;;  %v3276_v58 = vand.u32 2147483648, %v2883_v21  ;;  %v3274_v56 = vand.u32 2147483647, %v2883_v21 }
 0x473   : > { %v3393_v54 = vsel %vm2761_vm1, %v3248_v37, %v5613_v57  ;;  %v3252_v25 = vsub.f32 1.0, %v3251_v45  ;;  %vm3270_vm11 = vweird.f32 %v2883_v21 }
 0x474   : > { %3425 = vst [vmem:[%s5445_s18 + $0xb8] sm:$0xff] %v3393_v54  ;;  %v2748_v53 = vpop.f32.mrf.mxu1  ;;  %v3277_v24 = vor.u32 1.1754944e-38, %v3276_v58  ;;  %vm3275_vm14 = vcmp.eq.f32.partialorder %v3274_v56, 8.507059e+37 }
 0x475   : > { %v3253_v61 = vmul.f32 %v4029_v41, %v3252_v25  ;;  %v5645_v10 = vadd.f32 %v2748_v53, %v5420_v29 }
 0x477   : > { %v4031_v48 = vpop.eup %4030  ;;  %v3254_v23 = vadd.f32 %v4029_v41, %v3253_v61  ;;  %v3748_v0 = vmul.f32 -1.442695, %v5645_v10 }
 0x478   : > { %v4033_v31 = vpop.eup %4032  ;;  %v2884_v57 = vadd.f32 1.0, %v4031_v48 }
 0x479   : > { %v3258_v46 = vsel %vm3257_vm9, %v4029_v41, %v3254_v23  ;;  %v3266_v35 = vmul.f32 %v4033_v31, %v2883_v21  ;;  %4034 = vpow2.f32 %v3748_v0  ;;  %vm3271_vm5 = vweird.f32 %v4033_v31 }
 0x47a   : > { %v3263_v55 = vsel %vm3260_vm10, %v3262_v11, %v3258_v46  ;;  %4036 = vrcp.f32 %v2884_v57  ;;  %vm3272_vm12 = vmor %vm3270_vm11, %vm3271_vm5  ;;  %v3291_v13 = vand.u32 2147483648, %v2884_v57  ;;  %v3289_v39 = vand.u32 2147483647, %v2884_v57 }
 0x47b   : > { %v3394_v50 = vsel %vm2761_vm1, %v3263_v55, %v5621_v3  ;;  %v3267_v28 = vsub.f32 1.0, %v3266_v35  ;;  %vm3285_vm13 = vweird.f32 %v2884_v57 }
 0x47c   : > { %3426 = vst [vmem:[%s5445_s18 + $0xc0] sm:$0xff] %v3394_v50  ;;  %v2751_v17 = vpop.f32.mrf.mxu1  ;;  %v3292_v33 = vor.u32 1.1754944e-38, %v3291_v13  ;;  %vm3290_vm3 = vcmp.eq.f32.partialorder %v3289_v39, 8.507059e+37 }
 0x47d   : > { %v3268_v38 = vmul.f32 %v4033_v31, %v3267_v28  ;;  %v5653_v7 = vadd.f32 %v2751_v17, %v5420_v29 }
 0x47f   : > { %v4035_v52 = vpop.eup %4034  ;;  %v3269_v2 = vadd.f32 %v4033_v31, %v3268_v38  ;;  %v3749_v15 = vmul.f32 -1.442695, %v5653_v7 }
 0x480   : > { %v4037_v34 = vpop.eup %4036  ;;  %v2885_v3 = vadd.f32 1.0, %v4035_v52 }
 0x481   : > { %v3273_v42 = vsel %vm3272_vm12, %v4033_v31, %v3269_v2  ;;  %v3281_v19 = vmul.f32 %v4037_v34, %v2884_v57  ;;  %4038 = vpow2.f32 %v3749_v15  ;;  %vm3286_vm15 = vweird.f32 %v4037_v34 }
 0x482   : > { %v3278_v8 = vsel %vm3275_vm14, %v3277_v24, %v3273_v42  ;;  %4040 = vrcp.f32 %v2885_v3  ;;  %vm3287_vm0 = vmor %vm3285_vm13, %vm3286_vm15  ;;  %v3306_v49 = vand.u32 2147483648, %v2885_v3  ;;  %v3304_v36 = vand.u32 2147483647, %v2885_v3 }
 0x483   : > { %v3395_v62 = vsel %vm2761_vm1, %v3278_v8, %v5629_v4  ;;  %v3282_v12 = vsub.f32 1.0, %v3281_v19  ;;  %vm3300_vm2 = vweird.f32 %v2885_v3 }
 0x484   : > { %3427 = vst [vmem:[%s5445_s18 + $0xc8] sm:$0xff] %v3395_v62  ;;  %v2753_v63 = vpop.f32.mrf.mxu1  ;;  %v3307_v14 = vor.u32 1.1754944e-38, %v3306_v49  ;;  %vm3305_vm7 = vcmp.eq.f32.partialorder %v3304_v36, 8.507059e+37 }
 0x485   : > { %v3283_v20 = vmul.f32 %v4037_v34, %v3282_v12  ;;  %v5661_v43 = vadd.f32 %v2753_v63, %v5420_v29 }
 0x487   : > { %v4039_v22 = vpop.eup %4038  ;;  %v3284_v32 = vadd.f32 %v4037_v34, %v3283_v20  ;;  %v3750_v47 = vmul.f32 -1.442695, %v5661_v43 }
 0x488   : > { %v4041_v51 = vpop.eup %4040  ;;  %v2886_v4 = vadd.f32 1.0, %v4039_v22 }
 0x489   : > { %v3288_v40 = vsel %vm3287_vm0, %v4037_v34, %v3284_v32  ;;  %v3296_v16 = vmul.f32 %v4041_v51, %v2885_v3  ;;  %4042 = vpow2.f32 %v3750_v47  ;;  %vm3301_vm4 = vweird.f32 %v4041_v51 }
 0x48a   : > { %v3293_v18 = vsel %vm3290_vm3, %v3292_v33, %v3288_v40  ;;  %4044 = vrcp.f32 %v2886_v4  ;;  %vm3302_vm6 = vmor %vm3300_vm2, %vm3301_vm4  ;;  %v3321_v53 = vand.u32 2147483648, %v2886_v4  ;;  %v3319_v5 = vand.u32 2147483647, %v2886_v4 }
 0x48b   : > { %v3396_v9 = vsel %vm2761_vm1, %v3293_v18, %v5637_v60  ;;  %v3297_v27 = vsub.f32 1.0, %v3296_v16  ;;  %vm3315_vm9 = vweird.f32 %v2886_v4 }
 0x48c   : > { %3428 = vst [vmem:[%s5445_s18 + $0xd0] sm:$0xff] %v3396_v9  ;;  %v3322_v31 = vor.u32 1.1754944e-38, %v3321_v53  ;;  %vm3320_vm5 = vcmp.eq.f32.partialorder %v3319_v5, 8.507059e+37 }
 0x48d   : > { %v3298_v6 = vmul.f32 %v4041_v51, %v3297_v27 }
 0x48f   : > { %v4043_v30 = vpop.eup %4042  ;;  %v3299_v26 = vadd.f32 %v4041_v51, %v3298_v6 }
 0x490   : > { %v4045_v41 = vpop.eup %4044  ;;  %v2887_v21 = vadd.f32 1.0, %v4043_v30 }
 0x491   : > { %v3303_v44 = vsel %vm3302_vm6, %v4041_v51, %v3299_v26  ;;  %v3311_v45 = vmul.f32 %v4045_v41, %v2886_v4  ;;  %vm3316_vm8 = vweird.f32 %v4045_v41 }
 0x492   : > { %v3308_v37 = vsel %vm3305_vm7, %v3307_v14, %v3303_v44  ;;  %4046 = vrcp.f32 %v2887_v21  ;;  %v2756_v60 = vpop.f32.mrf.mxu2  ;;  %vm3317_vm10 = vmor %vm3315_vm9, %vm3316_vm8  ;;  %v3336_v28 = vand.u32 2147483648, %v2887_v21  ;;  %v3334_v38 = vand.u32 2147483647, %v2887_v21 }
 0x493   : > { %v3397_v54 = vsel %vm2761_vm1, %v3308_v37, %v5645_v10  ;;  %v3312_v25 = vsub.f32 1.0, %v3311_v45  ;;  %v2757_v1 = vadd.f32 %v2756_v60, %v5420_v29  ;;  %vm3330_vm12 = vweird.f32 %v2887_v21 }
 0x494   : > { %3429 = vst [vmem:[%s5445_s18 + $0xd8] sm:$0xff] %v3397_v54  ;;  %v3337_v15 = vor.u32 1.1754944e-38, %v3336_v28  ;;  %vm3335_vm15 = vcmp.eq.f32.partialorder %v3334_v38, 8.507059e+37 }
 0x495   : > { %v3313_v61 = vmul.f32 %v4045_v41, %v3312_v25  ;;  %v3751_v48 = vmul.f32 -1.442695, %v2757_v1 }
 0x497   : > { %v3314_v23 = vadd.f32 %v4045_v41, %v3313_v61  ;;  %4048 = vpow2.f32 %v3751_v48 }
 0x498   : > { %v4047_v0 = vpop.eup %4046 }
 0x499   : > { %v3318_v11 = vsel %vm3317_vm10, %v4045_v41, %v3314_v23  ;;  %v3326_v57 = vmul.f32 %v4047_v0, %v2887_v21  ;;  %vm3331_vm11 = vweird.f32 %v4047_v0 }
 0x49a   : > { %v3323_v10 = vsel %vm3320_vm5, %v3322_v31, %v3318_v11  ;;  %v2758_v46 = vpop.f32.mrf.mxu2  ;;  %vm3332_vm14 = vmor %vm3330_vm12, %vm3331_vm11 }
 0x49b   : > { %v3398_v35 = vsel %vm2761_vm1, %v3323_v10, %v5653_v7  ;;  %v3327_v55 = vsub.f32 1.0, %v3326_v57  ;;  %v2759_v50 = vadd.f32 %v2758_v46, %v5420_v29 }
 0x49c   : > { %3430 = vst [vmem:[%s5445_s18 + $0xe0] sm:$0xff] %v3398_v35 }
 0x49d   : > { %v4049_v58 = vpop.eup %4048  ;;  %v3328_v17 = vmul.f32 %v4047_v0, %v3327_v55  ;;  %v3752_v56 = vmul.f32 -1.442695, %v2759_v50 }
 0x49e   : > { %v2888_v52 = vadd.f32 1.0, %v4049_v58 }
 0x49f   : > { %v3329_v2 = vadd.f32 %v4047_v0, %v3328_v17  ;;  %4050 = vpow2.f32 %v3752_v56 }
 0x4a0   : > { %4052 = vrcp.f32 %v2888_v52  ;;  %v3351_v62 = vand.u32 2147483648, %v2888_v52  ;;  %v3349_v13 = vand.u32 2147483647, %v2888_v52  ;;  %vm3345_vm0 = vweird.f32 %v2888_v52 }
 0x4a1   : > { %v3333_v34 = vsel %vm3332_vm14, %v4047_v0, %v3329_v2 }
 0x4a2   : > { %v3338_v7 = vsel %vm3335_vm15, %v3337_v15, %v3333_v34  ;;  %v3352_v39 = vor.u32 1.1754944e-38, %v3351_v62  ;;  %vm3350_vm4 = vcmp.eq.f32.partialorder %v3349_v13, 8.507059e+37 }
 0x4a3   : > { %v3399_v29 = vsel %vm2761_vm1, %v3338_v7, %v5661_v43 }
 0x4a4   : > { %3431 = vst [vmem:[%s5445_s18 + $0xe8] sm:$0xff] %v3399_v29 }
 0x4a5   : > { %v4051_v24 = vpop.eup %4050 }
 0x4a6   : > { %v4053_v3 = vpop.eup %4052  ;;  %v2889_v42 = vadd.f32 1.0, %v4051_v24 }
 0x4a7   : > { %v3341_v19 = vmul.f32 %v4053_v3, %v2888_v52  ;;  %vm3346_vm13 = vweird.f32 %v4053_v3 }
 0x4a8   : > { %4054 = vrcp.f32 %v2889_v42  ;;  %vm3347_vm3 = vmor %vm3345_vm0, %vm3346_vm13  ;;  %v3366_v33 = vand.u32 2147483648, %v2889_v42  ;;  %v3364_v40 = vand.u32 2147483647, %v2889_v42  ;;  %vm3360_vm6 = vweird.f32 %v2889_v42 }
 0x4a9   : > { %v3342_v8 = vsub.f32 1.0, %v3341_v19 }
 0x4aa   : > { %v3367_v18 = vor.u32 1.1754944e-38, %v3366_v33  ;;  %vm3365_vm8 = vcmp.eq.f32.partialorder %v3364_v40, 8.507059e+37 }
 0x4ab   : > { %v3343_v12 = vmul.f32 %v4053_v3, %v3342_v8 }
 0x4ad   : > { %v3344_v63 = vadd.f32 %v4053_v3, %v3343_v12 }
 0x4ae   : > { %v4055_v20 = vpop.eup %4054 }
 0x4af   : > { %v3348_v22 = vsel %vm3347_vm3, %v4053_v3, %v3344_v63  ;;  %v3356_v43 = vmul.f32 %v4055_v20, %v2889_v42  ;;  %vm3361_vm2 = vweird.f32 %v4055_v20 }
 0x4b0   : > { %v3353_v32 = vsel %vm3350_vm4, %v3352_v39, %v3348_v22  ;;  %vm3362_vm7 = vmor %vm3360_vm6, %vm3361_vm2 }
 0x4b1   : > { %v3400_v47 = vsel %vm2761_vm1, %v3353_v32, %v2757_v1  ;;  %v3357_v51 = vsub.f32 1.0, %v3356_v43 }
 0x4b2   : > { %3432 = vst [vmem:[%s5445_s18 + $0xf0] sm:$0xff] %v3400_v47 }
 0x4b3   : > { %v3358_v4 = vmul.f32 %v4055_v20, %v3357_v51 }
 0x4b5   : > { %v3359_v16 = vadd.f32 %v4055_v20, %v3358_v4 }
 0x4b7   : > { %v3363_v9 = vsel %vm3362_vm7, %v4055_v20, %v3359_v16 }
 0x4b8   : > { %v3368_v27 = vsel %vm3365_vm8, %v3367_v18, %v3363_v9 }
 0x4b9   : > { %v3401_v49 = vsel %vm2761_vm1, %v3368_v27, %v2759_v50 }
 0x4ba   : > { %3433 = vst [vmem:[%s5445_s18 + $0xf8] sm:$0xff] %v3401_v49 }
 0x4bb PF: > { %s13_s12 = sadd.s32 1, %s4062_s12  }
 0x4bc   : > { %p10_p5 = scmp.ge.s32.totalorder %s13_s12, 4  }
 0x4be   :  { %12 = sbr.rel (!%p10_p5) target bundleno = 1 (0x1), region = 65 }

</bundles_post_ra>
